<compile_context>
chip_gen: v7x
topology: tpu7x:2x2x1
jax: 0.10.0
libtpu: 0.0.40
codegen_flags: <defaults>
</compile_context>

<pallas_src>
import jax
import jax.numpy as jnp
from jax.experimental import pallas as pl
from jax.experimental.pallas import tpu as pltpu

IN_DIM = 128
HID_DIM = 1024
OUT_DIM = 784
OUT_PAD = 896   # 7 * 128, lane-dense output
TILE_CAP = 512  # max batch rows per grid step


def _round_up(v, m):
    return ((v + m - 1) // m) * m


def generator_kernel(x_ref, w1_ref, b1_ref, w2_ref, b2_ref, w3_ref, b3_ref, o_ref):
    # Layer 1: Linear(128 -> 1024) + ReLU   (bf16 MXU matmul, f32 accumulate)
    x = x_ref[...]  # already bf16
    h1 = jnp.dot(x, w1_ref[...], preferred_element_type=jnp.float32)
    h1 = jnp.maximum(h1 + b1_ref[...], 0.0)
    # Layer 2: Linear(1024 -> 1024) + ReLU
    h2 = jnp.dot(h1.astype(jnp.bfloat16), w2_ref[...],
                 preferred_element_type=jnp.float32)
    h2 = jnp.maximum(h2 + b2_ref[...], 0.0)
    # Layer 3: Linear(1024 -> 896 padded) + Tanh   (tanh on EUP, kept f32 for v5e)
    h3 = jnp.dot(h2.astype(jnp.bfloat16), w3_ref[...],
                 preferred_element_type=jnp.float32)
    o_ref[...] = jnp.tanh(h3 + b3_ref[...]).astype(o_ref.dtype)


def prepare_params(params_f32):
    """Cast weights to bf16 and pad the last layer to a lane-dense 896 columns."""
    w1, b1, w2, b2, w3, b3 = params_f32
    w3p = jnp.pad(w3, ((0, 0), (0, OUT_PAD - OUT_DIM)))
    b3p = jnp.pad(b3, ((0, 0), (0, OUT_PAD - OUT_DIM)))
    return (
        w1.astype(jnp.bfloat16), b1.astype(jnp.float32),
        w2.astype(jnp.bfloat16), b2.astype(jnp.float32),
        w3p.astype(jnp.bfloat16), b3p.astype(jnp.float32),
    )


def generator_forward(x, prepared_params):
    """x: [B, 128] f32.  prepared_params: output of prepare_params.  Returns [B, 784] f32."""
    w1, b1, w2, b2, w3, b3 = prepared_params
    B = x.shape[0]

    # Adaptive batch tiling: pad by less than one (8-row-rounded) tile, cap the
    # tile at 512 rows, and force >= 2 grid steps once B > 8 so the "parallel"
    # axis can shard across both TensorCores on v7x megacore.
    num_tiles = pl.cdiv(B, TILE_CAP)
    if B > 8:
        num_tiles = max(num_tiles, 2)
    tile_m = _round_up(pl.cdiv(B, num_tiles), 8)
    b_pad = tile_m * num_tiles

    x = x.astype(jnp.bfloat16)
    if b_pad != B:
        x = jnp.pad(x, ((0, b_pad - B), (0, 0)))

    # Weights/biases: same block every grid step -> single-buffered, VMEM-resident.
    const_blk = lambda i: (0, 0)
    grid_spec = pltpu.PrefetchScalarGridSpec(
        num_scalar_prefetch=0,
        grid=(num_tiles,),
        in_specs=[
            pl.BlockSpec((tile_m, IN_DIM), lambda i: (i, 0)),
            pl.BlockSpec((IN_DIM, HID_DIM), const_blk, pipeline_mode=pl.Buffered(1)),
            pl.BlockSpec((1, HID_DIM), const_blk, pipeline_mode=pl.Buffered(1)),
            pl.BlockSpec((HID_DIM, HID_DIM), const_blk, pipeline_mode=pl.Buffered(1)),
            pl.BlockSpec((1, HID_DIM), const_blk, pipeline_mode=pl.Buffered(1)),
            pl.BlockSpec((HID_DIM, OUT_PAD), const_blk, pipeline_mode=pl.Buffered(1)),
            pl.BlockSpec((1, OUT_PAD), const_blk, pipeline_mode=pl.Buffered(1)),
        ],
        out_specs=pl.BlockSpec((tile_m, OUT_PAD), lambda i: (i, 0)),
    )

    flops = 2 * b_pad * (IN_DIM * HID_DIM + HID_DIM * HID_DIM + HID_DIM * OUT_PAD)
    bytes_accessed = (
        2 * (IN_DIM * HID_DIM + HID_DIM * HID_DIM + HID_DIM * OUT_PAD)  # bf16 weights
        + 4 * (2 * HID_DIM + OUT_PAD)                                   # f32 biases
        + 2 * b_pad * (IN_DIM + OUT_PAD)                                # bf16 x + bf16 out
    )
    cost = pl.CostEstimate(flops=flops, transcendentals=b_pad * OUT_PAD,
                           bytes_accessed=bytes_accessed)

    out = pl.pallas_call(
        generator_kernel,
        out_shape=jax.ShapeDtypeStruct((b_pad, OUT_PAD), jnp.bfloat16),
        grid_spec=grid_spec,
        compiler_params=pltpu.CompilerParams(dimension_semantics=("parallel",)),
        cost_estimate=cost,
    )(x, w1, b1, w2, b2, w3, b3)

    # Match the nn.Module's f32 output dtype.
    return out[:B, :OUT_DIM].astype(jnp.float32)


def init_params(key):
    """Deterministic f32 init mimicking PyTorch nn.Linear default U(-1/sqrt(in), 1/sqrt(in)).
    Weights stored [in_features, out_features] (transposed vs. nn.Linear)."""
    dims = [(IN_DIM, HID_DIM), (HID_DIM, HID_DIM), (HID_DIM, OUT_DIM)]
    params = []
    for fan_in, fan_out in dims:
        kw, kb, key = jax.random.split(key, 3)
        bound = 1.0 / (fan_in ** 0.5)
        w = jax.random.uniform(kw, (fan_in, fan_out), jnp.float32, -bound, bound)
        b = jax.random.uniform(kb, (1, fan_out), jnp.float32, -bound, bound)
        params += [w, b]
    return params


if __name__ == "__main__":
    key = jax.random.PRNGKey(0)
    k_x, k_p = jax.random.split(key)

    B = 8
    x = jax.random.normal(k_x, (B, IN_DIM), dtype=jnp.float32)
    params = init_params(k_p)
    prepared = prepare_params(params)

    out = generator_forward(x, prepared)
    jax.block_until_ready(out)

    # sanity: shape and tanh range
    assert out.shape == (B, OUT_DIM), out.shape
    assert bool(jnp.all(jnp.abs(out) <= 1.0 + 1e-6))

    # reference in plain JAX using the same bf16 weights / f32 accumulation
    w1, b1, w2, b2, w3, b3 = prepared
    xb = x.astype(jnp.bfloat16)
    h = jnp.maximum(jnp.dot(xb, w1, preferred_element_type=jnp.float32) + b1, 0.0)
    h = jnp.maximum(jnp.dot(h.astype(jnp.bfloat16), w2,
                            preferred_element_type=jnp.float32) + b2, 0.0)
    ref = jnp.tanh(jnp.dot(h.astype(jnp.bfloat16), w3,
                           preferred_element_type=jnp.float32) + b3)[:, :OUT_DIM]
    assert bool(jnp.allclose(out, ref, atol=2e-2, rtol=2e-2))

    # also loosely against the original f32 params (bf16 quantization error only)
    w1f, b1f, w2f, b2f, w3f, b3f = params
    hf = jnp.maximum(x @ w1f + b1f, 0.0)
    hf = jnp.maximum(hf @ w2f + b2f, 0.0)
    ref_f32 = jnp.tanh(hf @ w3f + b3f)
    assert bool(jnp.allclose(out, ref_f32, atol=5e-2, rtol=5e-2))

    print("KERNEL_OK")
</pallas_src>

<mosaic_0001>
module attributes {stable_mosaic.version = 11 : i64} {
  func.func @generator_kernel(%arg0: i32, %arg1: memref<8x128xbf16, #tpu.memory_space<vmem>>, %arg2: memref<128x1024xbf16, #tpu.memory_space<vmem>>, %arg3: memref<1x1024xf32, #tpu.memory_space<vmem>>, %arg4: memref<1024x1024xbf16, #tpu.memory_space<vmem>>, %arg5: memref<1x1024xf32, #tpu.memory_space<vmem>>, %arg6: memref<1024x896xbf16, #tpu.memory_space<vmem>>, %arg7: memref<1x896xf32, #tpu.memory_space<vmem>>, %arg8: memref<8x896xbf16, #tpu.memory_space<vmem>>) attributes {dimension_semantics = [#tpu.dimension_semantics<parallel>], iteration_bounds = array<i64: 1>, scalar_prefetch = 0 : i64, scratch_operands = 0 : i64, tpu.core_type = #tpu.core_type<tc>, window_params = [{transform_indices = @transform_0, window_bounds = array<i64: 8, 128>}, {pipeline_mode = #tpu.pipeline_mode<synchronous>, transform_indices = @transform_1, window_bounds = array<i64: 128, 1024>}, {pipeline_mode = #tpu.pipeline_mode<synchronous>, transform_indices = @transform_2, window_bounds = array<i64: 1, 1024>}, {pipeline_mode = #tpu.pipeline_mode<synchronous>, transform_indices = @transform_3, window_bounds = array<i64: 1024, 1024>}, {pipeline_mode = #tpu.pipeline_mode<synchronous>, transform_indices = @transform_4, window_bounds = array<i64: 1, 1024>}, {pipeline_mode = #tpu.pipeline_mode<synchronous>, transform_indices = @transform_5, window_bounds = array<i64: 1024, 896>}, {pipeline_mode = #tpu.pipeline_mode<synchronous>, transform_indices = @transform_6, window_bounds = array<i64: 1, 896>}, {transform_indices = @transform_7, window_bounds = array<i64: 8, 896>}]} {
    %c0 = arith.constant 0 : index
    %c0_0 = arith.constant 0 : index
    %0 = vector.load %arg1[%c0, %c0_0] : memref<8x128xbf16, #tpu.memory_space<vmem>>, vector<8x128xbf16>
    %c0_1 = arith.constant 0 : index
    %c0_2 = arith.constant 0 : index
    %1 = vector.load %arg2[%c0_1, %c0_2] : memref<128x1024xbf16, #tpu.memory_space<vmem>>, vector<128x1024xbf16>
    %cst = arith.constant dense<0.000000e+00> : vector<8x1024xf32>
    %2 = tpu.matmul %0, %1, %cst {dimension_numbers = #tpu.dot_dimension_numbers<[1], [0], [0], [1], [0, 0, 1, 1], [], []>} : vector<8x128xbf16>, vector<128x1024xbf16>, vector<8x1024xf32> -> vector<8x1024xf32>
    %c0_3 = arith.constant 0 : index
    %c0_4 = arith.constant 0 : index
    %3 = vector.load %arg3[%c0_3, %c0_4] : memref<1x1024xf32, #tpu.memory_space<vmem>>, vector<1x1024xf32>
    %4 = vector.broadcast %3 : vector<1x1024xf32> to vector<8x1024xf32>
    %5 = arith.addf %2, %4 : vector<8x1024xf32>
    %cst_5 = arith.constant 0.000000e+00 : f32
    %6 = vector.broadcast %cst_5 : f32 to vector<8x1024xf32>
    %7 = arith.maximumf %5, %6 : vector<8x1024xf32>
    %8 = arith.truncf %7 : vector<8x1024xf32> to vector<8x1024xbf16>
    %c0_6 = arith.constant 0 : index
    %c0_7 = arith.constant 0 : index
    %9 = vector.load %arg4[%c0_6, %c0_7] : memref<1024x1024xbf16, #tpu.memory_space<vmem>>, vector<1024x1024xbf16>
    %cst_8 = arith.constant dense<0.000000e+00> : vector<8x1024xf32>
    %10 = tpu.matmul %8, %9, %cst_8 {dimension_numbers = #tpu.dot_dimension_numbers<[1], [0], [0], [1], [0, 0, 1, 1], [], []>} : vector<8x1024xbf16>, vector<1024x1024xbf16>, vector<8x1024xf32> -> vector<8x1024xf32>
    %c0_9 = arith.constant 0 : index
    %c0_10 = arith.constant 0 : index
    %11 = vector.load %arg5[%c0_9, %c0_10] : memref<1x1024xf32, #tpu.memory_space<vmem>>, vector<1x1024xf32>
    %12 = vector.broadcast %11 : vector<1x1024xf32> to vector<8x1024xf32>
    %13 = arith.addf %10, %12 : vector<8x1024xf32>
    %cst_11 = arith.constant 0.000000e+00 : f32
    %14 = vector.broadcast %cst_11 : f32 to vector<8x1024xf32>
    %15 = arith.maximumf %13, %14 : vector<8x1024xf32>
    %16 = arith.truncf %15 : vector<8x1024xf32> to vector<8x1024xbf16>
    %c0_12 = arith.constant 0 : index
    %c0_13 = arith.constant 0 : index
    %17 = vector.load %arg6[%c0_12, %c0_13] : memref<1024x896xbf16, #tpu.memory_space<vmem>>, vector<1024x896xbf16>
    %cst_14 = arith.constant dense<0.000000e+00> : vector<8x896xf32>
    %18 = tpu.matmul %16, %17, %cst_14 {dimension_numbers = #tpu.dot_dimension_numbers<[1], [0], [0], [1], [0, 0, 1, 1], [], []>} : vector<8x1024xbf16>, vector<1024x896xbf16>, vector<8x896xf32> -> vector<8x896xf32>
    %c0_15 = arith.constant 0 : index
    %c0_16 = arith.constant 0 : index
    %19 = vector.load %arg7[%c0_15, %c0_16] : memref<1x896xf32, #tpu.memory_space<vmem>>, vector<1x896xf32>
    %20 = vector.broadcast %19 : vector<1x896xf32> to vector<8x896xf32>
    %21 = arith.addf %18, %20 : vector<8x896xf32>
    %22 = math.tanh %21 : vector<8x896xf32>
    %23 = arith.truncf %22 : vector<8x896xf32> to vector<8x896xbf16>
    %c0_17 = arith.constant 0 : index
    %c0_18 = arith.constant 0 : index
    %24 = vector.load %arg8[%c0_17, %c0_18] : memref<8x896xbf16, #tpu.memory_space<vmem>>, vector<8x896xbf16>
    tpu.vector_store %arg8[%c0_17, %c0_18], %23 {strides = array<i32>} : memref<8x896xbf16, #tpu.memory_space<vmem>>, vector<8x896xbf16>,
    return
  }
  func.func @transform_0(%arg0: i32) -> (i32, i32) {
    %c0_i32 = arith.constant 0 : i32
    %c0_i32_0 = arith.constant 0 : i32
    return %arg0, %c0_i32 : i32, i32
  }
  func.func @transform_1(%arg0: i32) -> (i32, i32) {
    %c0_i32 = arith.constant 0 : i32
    %c0_i32_0 = arith.constant 0 : i32
    %c0_i32_1 = arith.constant 0 : i32
    return %c0_i32, %c0_i32_0 : i32, i32
  }
  func.func @transform_2(%arg0: i32) -> (i32, i32) {
    %c0_i32 = arith.constant 0 : i32
    %c0_i32_0 = arith.constant 0 : i32
    %c0_i32_1 = arith.constant 0 : i32
    return %c0_i32, %c0_i32_0 : i32, i32
  }
  func.func @transform_3(%arg0: i32) -> (i32, i32) {
    %c0_i32 = arith.constant 0 : i32
    %c0_i32_0 = arith.constant 0 : i32
    %c0_i32_1 = arith.constant 0 : i32
    return %c0_i32, %c0_i32_0 : i32, i32
  }
  func.func @transform_4(%arg0: i32) -> (i32, i32) {
    %c0_i32 = arith.constant 0 : i32
    %c0_i32_0 = arith.constant 0 : i32
    %c0_i32_1 = arith.constant 0 : i32
    return %c0_i32, %c0_i32_0 : i32, i32
  }
  func.func @transform_5(%arg0: i32) -> (i32, i32) {
    %c0_i32 = arith.constant 0 : i32
    %c0_i32_0 = arith.constant 0 : i32
    %c0_i32_1 = arith.constant 0 : i32
    return %c0_i32, %c0_i32_0 : i32, i32
  }
  func.func @transform_6(%arg0: i32) -> (i32, i32) {
    %c0_i32 = arith.constant 0 : i32
    %c0_i32_0 = arith.constant 0 : i32
    %c0_i32_1 = arith.constant 0 : i32
    return %c0_i32, %c0_i32_0 : i32, i32
  }
  func.func @transform_7(%arg0: i32) -> (i32, i32) {
    %c0_i32 = arith.constant 0 : i32
    %c0_i32_0 = arith.constant 0 : i32
    return %arg0, %c0_i32 : i32, i32
  }
}

</mosaic_0001>

<bundles_post_ra>
// kernel: tpu_custom_call.1
= control target key start
LH: loop header
LB: loop body
LE: loop exit
PB: predicated region body
PF: predicated region fallthrough
CT: control target
= control target key end

     0   :  { %12 = vsyncpa [#allocation3], 0  ;;  %s10504_s0 = inlined_call_operand.hbm [shape: bf16[8,128], index: 0, kind: input, shape index: {}]   ;;  %s10505_s1 = inlined_call_operand.hbm [shape: bf16[128,1024], index: 1, kind: input, shape index: {}]   ;;  %s10506_s2 = inlined_call_operand.hbm [shape: f32[1,1024], index: 2, kind: input, shape index: {}]   ;;  %s10507_s3 = inlined_call_operand.hbm [shape: bf16[1024,1024], index: 3, kind: input, shape index: {}]   ;;  %s10508_s4 = inlined_call_operand.hbm [shape: f32[1,1024], index: 4, kind: input, shape index: {}]   ;;  %s10509_s5 = inlined_call_operand.hbm [shape: bf16[1024,896], index: 5, kind: input, shape index: {}]   ;;  %s10510_s6 = inlined_call_operand.hbm [shape: f32[1,896], index: 6, kind: input, shape index: {}]   ;;  %s10511_s7 = inlined_call_operand.hbm [shape: bf16[8,896], index: 7, kind: output, shape index: {}]  }
   0x1   :  { %13 = vsyncpa [#allocation6], 0 }
   0x2   :  { %14 = vsyncpa [#allocation9], 0 }
   0x3   :  { %15 = vsyncpa [#allocation12], 0 }
   0x4   :  { %16 = vsyncpa [#allocation4], 0  ;;  %s10141_s24 = smov [#allocation5]   ;;  %s9955_s28 = scalar_lea.hbm %s10505_s1, 8192 }
   0x5   :  { %s32_s25 = sshll.u32 %s10141_s24, 4  ;;  %p9956_p0 = scmp.ne.s32.totalorder %s10505_s1, %s9955_s28  ;;  %s33_s25 = int_to_ptr.vmem [resolvable:$true] %s32_s25 }
   0x6   :  { %p9959_p1 = scmp.lt.u32.totalorder %s9955_s28, %s10505_s1 }
   0x8   :  { %p9961_p2 = pnand %p9959_p1, %p9956_p0 }
   0xa   :  { %9964 = shalt.err (!%p9961_p2)
}
   0xb   :  { %s9965_s10 = scalar_lea.vmem %s33_s25, 8192  ;;  %p9970_p4 = scmp.lt.s32.totalorder %s33_s25, %s33_s25 }
   0xc   :  { %p9966_p3 = scmp.ne.s32.totalorder %s33_s25, %s9965_s10  ;;  %p9971_p5 = scmp.lt.s32.totalorder %s9965_s10, %s9965_s10 }
   0xe   :  { %p9972_p6 = por %p9971_p5, %p9970_p4 }
  0x10   :  { %p9973_p7 = pnand %p9972_p6, %p9966_p3 }
  0x12   :  { %9976 = shalt.err (!%p9973_p7)
}
  0x13   :  { %s10142_s11 = smov 512   ;;  %s10143_s12 = smov 32  }
  0x14   :  { %38 = dma.hbm_to_vmem [thread:$0]  %s10505_s1, 8192, %s33_s25, [#allocation6], %s10142_s11, %s10142_s11, %s10143_s12  }
  0x15   :  { %s10144_s15 = smov [#allocation8]   ;;  %s10145_s17 = smov [#allocation11]  }
  0x16   :  { %s54_s16 = sshll.u32 %s10144_s15, 4  ;;  %s76_s18 = sshll.u32 %s10145_s17, 4  ;;  %s55_s16 = int_to_ptr.vmem [resolvable:$true] %s54_s16  ;;  %s77_s18 = int_to_ptr.vmem [resolvable:$true] %s76_s18 }
  0x17   :  { %s9977_s21 = scalar_lea.hbm %s10507_s3, 65536 }
  0x18   :  { %p9978_p8 = scmp.ne.s32.totalorder %s10507_s3, %s9977_s21  ;;  %p9981_p9 = scmp.lt.u32.totalorder %s9977_s21, %s10507_s3 }
  0x1a   :  { %p9983_p10 = pnand %p9981_p9, %p9978_p8 }
  0x1c   :  { %9986 = shalt.err (!%p9983_p10)
}
  0x1d   :  { %s9987_s1 = scalar_lea.vmem %s55_s16, 65536  ;;  %p9992_p12 = scmp.lt.s32.totalorder %s55_s16, %s55_s16 }
  0x1e   :  { %p9988_p11 = scmp.ne.s32.totalorder %s55_s16, %s9987_s1  ;;  %p9993_p13 = scmp.lt.s32.totalorder %s9987_s1, %s9987_s1 }
  0x20   :  { %p9994_p0 = por %p9993_p13, %p9992_p12 }
  0x22   :  { %p9995_p1 = pnand %p9994_p0, %p9988_p11 }
  0x24   :  { %9998 = shalt.err (!%p9995_p1)
}
  0x25   :  { %60 = dma.hbm_to_vmem [thread:$0]  %s10507_s3, 65536, %s55_s16, [#allocation9], %s10142_s11, %s10142_s11, %s10143_s12  }
  0x26   :  { %s9999_s30 = scalar_lea.hbm %s10509_s5, 57344 }
  0x27   :  { %p10000_p2 = scmp.ne.s32.totalorder %s10509_s5, %s9999_s30  ;;  %p10003_p3 = scmp.lt.u32.totalorder %s9999_s30, %s10509_s5 }
  0x29   :  { %p10005_p4 = pnand %p10003_p3, %p10000_p2 }
  0x2b   :  { %10008 = shalt.err (!%p10005_p4)
}
  0x2c   :  { %s10009_s14 = scalar_lea.vmem %s77_s18, 57344  ;;  %p10014_p6 = scmp.lt.s32.totalorder %s77_s18, %s77_s18 }
  0x2d   :  { %p10010_p5 = scmp.ne.s32.totalorder %s77_s18, %s10009_s14  ;;  %p10015_p7 = scmp.lt.s32.totalorder %s10009_s14, %s10009_s14 }
  0x2f   :  { %p10016_p8 = por %p10015_p7, %p10014_p6 }
  0x31   :  { %p10017_p9 = pnand %p10016_p8, %p10010_p5 }
  0x33   :  { %10020 = shalt.err (!%p10017_p9)
}
  0x34   :  { %s10146_s3 = smov 448   ;;  %s10147_s11 = smov 28  }
  0x35   :  { %82 = dma.hbm_to_vmem [thread:$0]  %s10509_s5, 57344, %s77_s18, [#allocation12], %s10146_s3, %s10146_s3, %s10147_s11  }
  0x36   :  { %s10148_s16 = smov [#allocation2]   ;;  %s10149_s19 = smov [#allocation7]  }
  0x37   :  { %s23_s17 = sshll.u32 %s10148_s16, 4  ;;  %s45_s20 = sshll.u32 %s10149_s19, 4  ;;  %s24_s17 = int_to_ptr.vmem [resolvable:$true] %s23_s17  ;;  %s46_s20 = int_to_ptr.vmem [resolvable:$true] %s45_s20 }
  0x38   :  { %s10021_s23 = scalar_lea.hbm %s10504_s0, 64 }
  0x39   :  { %p10022_p10 = scmp.ne.s32.totalorder %s10504_s0, %s10021_s23  ;;  %p10025_p11 = scmp.lt.u32.totalorder %s10021_s23, %s10504_s0 }
  0x3b   :  { %p10027_p12 = pnand %p10025_p11, %p10022_p10 }
  0x3d   :  { %10030 = shalt.err (!%p10027_p12)
}
  0x3e   :  { %s10031_s5 = scalar_lea.vmem %s24_s17, 64  ;;  %p10036_p0 = scmp.lt.s32.totalorder %s24_s17, %s24_s17 }
  0x3f   :  { %p10032_p13 = scmp.ne.s32.totalorder %s24_s17, %s10031_s5  ;;  %p10037_p1 = scmp.lt.s32.totalorder %s10031_s5, %s10031_s5 }
  0x41   :  { %p10038_p2 = por %p10037_p1, %p10036_p0 }
  0x43   :  { %p10039_p3 = pnand %p10038_p2, %p10032_p13 }
  0x45   :  { %10042 = shalt.err (!%p10039_p3)
}
  0x46   :  { %26 = dma.hbm_to_vmem [thread:$0]  %s10504_s0, 64, %s24_s17, [#allocation3]  }
  0x47   :  { %s10043_s30 = scalar_lea.hbm %s10506_s2, 128 }
  0x48   :  { %p10044_p4 = scmp.ne.s32.totalorder %s10506_s2, %s10043_s30  ;;  %p10047_p5 = scmp.lt.u32.totalorder %s10043_s30, %s10506_s2 }
  0x4a   :  { %p10049_p6 = pnand %p10047_p5, %p10044_p4 }
  0x4c   :  { %10052 = shalt.err (!%p10049_p6)
}
  0x4d   :  { %s10053_s14 = scalar_lea.vmem %s46_s20, 128  ;;  %p10058_p8 = scmp.lt.s32.totalorder %s46_s20, %s46_s20 }
  0x4e   :  { %p10054_p7 = scmp.ne.s32.totalorder %s46_s20, %s10053_s14  ;;  %p10059_p9 = scmp.lt.s32.totalorder %s10053_s14, %s10053_s14 }
  0x50   :  { %p10060_p10 = por %p10059_p9, %p10058_p8 }
  0x52   :  { %p10061_p11 = pnand %p10060_p10, %p10054_p7 }
  0x54   :  { %10064 = shalt.err (!%p10061_p11)
}
  0x55   :  { %48 = dma.hbm_to_vmem [thread:$0]  %s10506_s2, 128, %s46_s20, [#allocation6]  }
  0x56   :  { %s10150_s11 = smov [#allocation10]   ;;  %s10151_s15 = smov [#allocation13]  }
  0x57   :  { %s67_s12 = sshll.u32 %s10150_s11, 4  ;;  %s89_s16 = sshll.u32 %s10151_s15, 4  ;;  %s68_s12 = int_to_ptr.vmem [resolvable:$true] %s67_s12  ;;  %s90_s16 = int_to_ptr.vmem [resolvable:$true] %s89_s16 }
  0x58   :  { %s10065_s21 = scalar_lea.hbm %s10508_s4, 128 }
  0x59   :  { %p10066_p12 = scmp.ne.s32.totalorder %s10508_s4, %s10065_s21  ;;  %p10069_p13 = scmp.lt.u32.totalorder %s10065_s21, %s10508_s4 }
  0x5b   :  { %p10071_p0 = pnand %p10069_p13, %p10066_p12 }
  0x5d   :  { %10074 = shalt.err (!%p10071_p0)
}
  0x5e   :  { %s10075_s2 = scalar_lea.vmem %s68_s12, 128  ;;  %p10080_p2 = scmp.lt.s32.totalorder %s68_s12, %s68_s12 }
  0x5f   :  { %p10076_p1 = scmp.ne.s32.totalorder %s68_s12, %s10075_s2  ;;  %p10081_p3 = scmp.lt.s32.totalorder %s10075_s2, %s10075_s2 }
  0x61   :  { %p10082_p4 = por %p10081_p3, %p10080_p2 }
  0x63   :  { %p10083_p5 = pnand %p10082_p4, %p10076_p1 }
  0x65   :  { %10086 = shalt.err (!%p10083_p5)
}
  0x66   :  { %70 = dma.hbm_to_vmem [thread:$0]  %s10508_s4, 128, %s68_s12, [#allocation9]  }
  0x67   :  { %s10087_s18 = scalar_lea.hbm %s10510_s6, 112 }
  0x68   :  { %p10088_p6 = scmp.ne.s32.totalorder %s10510_s6, %s10087_s18  ;;  %p10091_p7 = scmp.lt.u32.totalorder %s10087_s18, %s10510_s6 }
  0x6a   :  { %p10093_p8 = pnand %p10091_p7, %p10088_p6 }
  0x6c   :  { %10096 = shalt.err (!%p10093_p8)
}
  0x6d   :  { %s10097_s8 = scalar_lea.vmem %s90_s16, 112  ;;  %s10101_s9 = scalar_lea.vmem %s90_s16, 128 }
  0x6e   :  { %p10098_p9 = scmp.ne.s32.totalorder %s90_s16, %s10097_s8  ;;  %p10102_p10 = scmp.lt.s32.totalorder %s90_s16, %s90_s16 }
  0x6f   :  { %p10103_p11 = scmp.lt.s32.totalorder %s10101_s9, %s10097_s8 }
  0x71   :  { %p10104_p12 = por %p10103_p11, %p10102_p10 }
  0x73   :  { %p10105_p13 = pnand %p10104_p12, %p10098_p9 }
  0x75   :  { %10108 = shalt.err (!%p10105_p13)
}
  0x76   :  { %92 = dma.hbm_to_vmem [thread:$0]  %s10510_s6, 112, %s90_s16, [#allocation12]  }
  0x77   :  { %10131 = dma.done.wait [#allocation3], 64  }
  0x78   :  { %10132 = vsyncadd [#allocation3], 4294967232 }
  0x79   :  { %10133 = dma.done.wait [#allocation6], 8320  }
  0x7a   :  { %10134 = vsyncadd [#allocation6], 4294958976 }
  0x7b   :  { %10135 = dma.done.wait [#allocation9], 65664  }
  0x7c   :  { %10136 = vsyncadd [#allocation9], 4294901632 }
  0x7d   :  { %10137 = dma.done.wait [#allocation12], 57456  }
  0x7e   :  { %10138 = vsyncadd [#allocation12], 4294909840  ;;  %v10152_v0 = vmov 0   ;;  %v116_v1 = vld [vmem:[#allocation5] sm:$0xff]  ;;  %v117_v3 = vld [vmem:[#allocation5 + $0x8] sm:$0xff]  ;;  %s10153_s6 = smov [#allocation14]  }
  0x7f   :  { %574 = vmatprep.mubr.bf16.mxu0 %v10152_v0  ;;  %615 = vmatprep.mubr.bf16.mxu1 %v10152_v0  ;;  %v120_v2 = vld [vmem:[#allocation5 + $0x20] sm:$0xff]  ;;  %v121_v5 = vld [vmem:[#allocation5 + $0x28] sm:$0xff]  ;;  %v118_v63 = vld [vmem:[#allocation5 + $0x10] sm:$0xff]  ;;  %s8059_s13 = sshll.u32 %s10153_s6, 4  ;;  %s8060_s13 = int_to_ptr.vmem [resolvable:$true] %s8059_s13 }
  0x80   :  { %v8072_v4 = vcombine.high %v116_v1, %v120_v2  ;;  %v8071_v6 = vcombine.low %v116_v1, %v120_v2  ;;  %v124_v7 = vld [vmem:[#allocation5 + $0x40] sm:$0xff]  ;;  %v8074_v9 = vcombine.high %v117_v3, %v121_v5  ;;  %v8073_v10 = vcombine.low %v117_v3, %v121_v5  ;;  %v125_v12 = vld [vmem:[#allocation5 + $0x48] sm:$0xff]  ;;  %v122_v1 = vld [vmem:[#allocation5 + $0x30] sm:$0xff]  ;;  %s10109_s14 = scalar_lea.vmem %s8060_s13, 448  ;;  %p10114_p1 = scmp.lt.s32.totalorder %s8060_s13, %s8060_s13 }
  0x81   :  { %v128_v8 = vld [vmem:[#allocation5 + $0x60] sm:$0xff]  ;;  %v129_v13 = vld [vmem:[#allocation5 + $0x68] sm:$0xff]  ;;  %v119_v2 = vld [vmem:[#allocation5 + $0x18] sm:$0xff]  ;;  %p10110_p0 = scmp.ne.s32.totalorder %s8060_s13, %s10109_s14  ;;  %p10115_p2 = scmp.lt.s32.totalorder %s10109_s14, %s10109_s14 }
  0x82   :  { %v8080_v11 = vcombine.high %v124_v7, %v128_v8  ;;  %v132_v14 = vld [vmem:[#allocation5 + $0x80] sm:$0xff]  ;;  %542 = vmatprep.subr.bf16.mxu0 %v8072_v4  ;;  %v8082_v15 = vcombine.high %v125_v12, %v129_v13  ;;  %v133_v17 = vld [vmem:[#allocation5 + $0x88] sm:$0xff]  ;;  %583 = vmatprep.subr.bf16.mxu1 %v8074_v9  ;;  %v8079_v19 = vcombine.low %v124_v7, %v128_v8  ;;  %v123_v3 = vld [vmem:[#allocation5 + $0x38] sm:$0xff] }
  0x83   :  { %v136_v16 = vld [vmem:[#allocation5 + $0xa0] sm:$0xff]  ;;  %v137_v18 = vld [vmem:[#allocation5 + $0xa8] sm:$0xff]  ;;  %543 = vmatpush1.bf16.msra.mxu0 %v8071_v6  ;;  %584 = vmatpush1.bf16.msra.mxu1 %v8073_v10  ;;  %v8081_v20 = vcombine.low %v125_v12, %v129_v13  ;;  %v8076_v6 = vcombine.high %v118_v63, %v122_v1  ;;  %v126_v7 = vld [vmem:[#allocation5 + $0x50] sm:$0xff]  ;;  %v8078_v9 = vcombine.high %v119_v2, %v123_v3  ;;  %p10116_p3 = por %p10115_p2, %p10114_p1 }
  0x84   :  { %544 = vmatprep.subr.bf16.mxu0 %v8080_v11  ;;  %v8088_v21 = vcombine.high %v132_v14, %v136_v16  ;;  %585 = vmatprep.subr.bf16.mxu1 %v8082_v15  ;;  %v8090_v22 = vcombine.high %v133_v17, %v137_v18  ;;  %v140_v23 = vld [vmem:[#allocation5 + $0xc0] sm:$0xff]  ;;  %v141_v25 = vld [vmem:[#allocation5 + $0xc8] sm:$0xff]  ;;  %v8087_v27 = vcombine.low %v132_v14, %v136_v16  ;;  %v130_v8 = vld [vmem:[#allocation5 + $0x70] sm:$0xff] }
  0x85   :  { %v144_v24 = vld [vmem:[#allocation5 + $0xe0] sm:$0xff]  ;;  %v145_v26 = vld [vmem:[#allocation5 + $0xe8] sm:$0xff]  ;;  %v8089_v28 = vcombine.low %v133_v17, %v137_v18  ;;  %v10280_v10 = vld [vmem:[#allocation2] sm:$0xf]  ;;  %v8075_v11 = vcombine.low %v118_v63, %v122_v1  ;;  %v8084_v14 = vcombine.high %v126_v7, %v130_v8  ;;  %v8077_v17 = vcombine.low %v119_v2, %v123_v3  ;;  %p10117_p4 = pnand %p10116_p3, %p10110_p0 }
  0x86   :  { %v8096_v29 = vcombine.high %v140_v23, %v144_v24  ;;  %v8098_v30 = vcombine.high %v141_v25, %v145_v26  ;;  %v148_v31 = vld [vmem:[#allocation5 + $0x100] sm:$0xff]  ;;  %v149_v33 = vld [vmem:[#allocation5 + $0x108] sm:$0xff]  ;;  %v8095_v35 = vcombine.low %v140_v23, %v144_v24  ;;  %v8097_v36 = vcombine.low %v141_v25, %v145_v26  ;;  %v127_v12 = vld [vmem:[#allocation5 + $0x58] sm:$0xff] }
  0x87   :  { %545 = vmatpush1.bf16.msra.mxu0 %v8079_v19  ;;  %586 = vmatpush1.bf16.msra.mxu1 %v8081_v20  ;;  %v152_v32 = vld [vmem:[#allocation5 + $0x120] sm:$0xff]  ;;  %v153_v34 = vld [vmem:[#allocation5 + $0x128] sm:$0xff]  ;;  %v131_v13 = vld [vmem:[#allocation5 + $0x78] sm:$0xff]  ;;  %v8083_v19 = vcombine.low %v126_v7, %v130_v8 }
  0x88   :  { %546 = vmatprep.subr.bf16.mxu0 %v8088_v21  ;;  %587 = vmatprep.subr.bf16.mxu1 %v8090_v22  ;;  %v8104_v37 = vcombine.high %v148_v31, %v152_v32  ;;  %v8106_v38 = vcombine.high %v149_v33, %v153_v34  ;;  %v156_v39 = vld [vmem:[#allocation5 + $0x140] sm:$0xff]  ;;  %v157_v41 = vld [vmem:[#allocation5 + $0x148] sm:$0xff]  ;;  %v8103_v43 = vcombine.low %v148_v31, %v152_v32  ;;  %v134_v15 = vld [vmem:[#allocation5 + $0x90] sm:$0xff] }
  0x89   :  { %v160_v40 = vld [vmem:[#allocation5 + $0x160] sm:$0xff]  ;;  %v161_v42 = vld [vmem:[#allocation5 + $0x168] sm:$0xff]  ;;  %v8105_v44 = vcombine.low %v149_v33, %v153_v34  ;;  %v138_v16 = vld [vmem:[#allocation5 + $0xb0] sm:$0xff]  ;;  %v8086_v18 = vcombine.high %v127_v12, %v131_v13  ;;  %v8085_v25 = vcombine.low %v127_v12, %v131_v13 }
  0x8a   :  { %v8112_v45 = vcombine.high %v156_v39, %v160_v40  ;;  %v8114_v46 = vcombine.high %v157_v41, %v161_v42  ;;  %v164_v47 = vld [vmem:[#allocation5 + $0x180] sm:$0xff]  ;;  %v165_v49 = vld [vmem:[#allocation5 + $0x188] sm:$0xff]  ;;  %v8111_v51 = vcombine.low %v156_v39, %v160_v40  ;;  %v8113_v52 = vcombine.low %v157_v41, %v161_v42  ;;  %v135_v20 = vld [vmem:[#allocation5 + $0x98] sm:$0xff] }
  0x8b   :  { %547 = vmatpush1.bf16.msra.mxu0 %v8087_v27  ;;  %588 = vmatpush1.bf16.msra.mxu1 %v8089_v28  ;;  %v168_v48 = vld [vmem:[#allocation5 + $0x1a0] sm:$0xff]  ;;  %v169_v50 = vld [vmem:[#allocation5 + $0x1a8] sm:$0xff]  ;;  %v139_v21 = vld [vmem:[#allocation5 + $0xb8] sm:$0xff]  ;;  %v8092_v22 = vcombine.high %v134_v15, %v138_v16  ;;  %v8091_v27 = vcombine.low %v134_v15, %v138_v16 }
  0x8c   :  { %548 = vmatprep.subr.bf16.mxu0 %v8096_v29  ;;  %589 = vmatprep.subr.bf16.mxu1 %v8098_v30  ;;  %v8120_v53 = vcombine.high %v164_v47, %v168_v48  ;;  %v8122_v54 = vcombine.high %v165_v49, %v169_v50  ;;  %v172_v55 = vld [vmem:[#allocation5 + $0x1c0] sm:$0xff]  ;;  %v173_v57 = vld [vmem:[#allocation5 + $0x1c8] sm:$0xff]  ;;  %v8119_v59 = vcombine.low %v164_v47, %v168_v48  ;;  %v142_v23 = vld [vmem:[#allocation5 + $0xd0] sm:$0xff] }
  0x8d   :  { %v176_v56 = vld [vmem:[#allocation5 + $0x1e0] sm:$0xff]  ;;  %v177_v58 = vld [vmem:[#allocation5 + $0x1e8] sm:$0xff]  ;;  %v8121_v60 = vcombine.low %v165_v49, %v169_v50  ;;  %v146_v24 = vld [vmem:[#allocation5 + $0xf0] sm:$0xff]  ;;  %v8094_v26 = vcombine.high %v135_v20, %v139_v21  ;;  %v8093_v33 = vcombine.low %v135_v20, %v139_v21 }
  0x8e   :  { %v8128_v61 = vcombine.high %v172_v55, %v176_v56  ;;  %v8130_v62 = vcombine.high %v173_v57, %v177_v58  ;;  %v8127_v4 = vcombine.low %v172_v55, %v176_v56  ;;  %v8129_v5 = vcombine.low %v173_v57, %v177_v58  ;;  %v150_v28 = vld [vmem:[#allocation5 + $0x110] sm:$0xff]  ;;  %v143_v30 = vld [vmem:[#allocation5 + $0xd8] sm:$0xff]  ;;  %v722_v2 = vld [vmem:[#allocation8] sm:$0xff] }
  0x8f   :  { %549 = vmatpush1.bf16.msra.mxu0 %v8095_v35  ;;  %590 = vmatpush1.bf16.msra.mxu1 %v8097_v36  ;;  %v154_v29 = vld [vmem:[#allocation5 + $0x130] sm:$0xff]  ;;  %v147_v31 = vld [vmem:[#allocation5 + $0xf8] sm:$0xff]  ;;  %v8100_v32 = vcombine.high %v142_v23, %v146_v24  ;;  %v726_v3 = vld [vmem:[#allocation8 + $0x20] sm:$0xff] }
  0x90   :  { %550 = vmatprep.subr.bf16.mxu0 %v8104_v37  ;;  %591 = vmatprep.subr.bf16.mxu1 %v8106_v38  ;;  %v151_v34 = vld [vmem:[#allocation5 + $0x118] sm:$0xff]  ;;  %v8102_v36 = vcombine.high %v143_v30, %v147_v31  ;;  %v8099_v37 = vcombine.low %v142_v23, %v146_v24  ;;  %v158_v38 = vld [vmem:[#allocation5 + $0x150] sm:$0xff]  ;;  %v8108_v39 = vcombine.high %v150_v28, %v154_v29  ;;  %v862_v7 = vld [vmem:[#allocation8 + $0x460] sm:$0xff] }
  0x91   :  { %v155_v35 = vld [vmem:[#allocation5 + $0x138] sm:$0xff]  ;;  %v8101_v40 = vcombine.low %v143_v30, %v147_v31  ;;  %v734_v12 = vld [vmem:[#allocation8 + $0x60] sm:$0xff]  ;;  %v8136_v13 = vcombine.high %v722_v2, %v726_v3 }
  0x92   :  { %v159_v41 = vld [vmem:[#allocation5 + $0x158] sm:$0xff]  ;;  %v8109_v48 = vcombine.low %v151_v34, %v155_v35  ;;  %v866_v15 = vld [vmem:[#allocation8 + $0x480] sm:$0xff] }
  0x93   :  { %551 = vmatpush1.bf16.msra.mxu0 %v8103_v43  ;;  %592 = vmatpush1.bf16.msra.mxu1 %v8105_v44  ;;  %v163_v42 = vld [vmem:[#allocation5 + $0x178] sm:$0xff]  ;;  %v8110_v43 = vcombine.high %v151_v34, %v155_v35  ;;  %v8107_v44 = vcombine.low %v150_v28, %v154_v29  ;;  %v870_v16 = vld [vmem:[#allocation8 + $0x4a0] sm:$0xff] }
  0x94   :  { %552 = vmatprep.subr.bf16.mxu0 %v8112_v45  ;;  %593 = vmatprep.subr.bf16.mxu1 %v8114_v46  ;;  %v166_v45 = vld [vmem:[#allocation5 + $0x190] sm:$0xff]  ;;  %v167_v49 = vld [vmem:[#allocation5 + $0x198] sm:$0xff]  ;;  %v8117_v56 = vcombine.low %v159_v41, %v163_v42  ;;  %v742_v20 = vld [vmem:[#allocation8 + $0xa0] sm:$0xff]  ;;  %v8279_v30 = vcombine.low %v866_v15, %v870_v16 }
  0x95   :  { %v170_v46 = vld [vmem:[#allocation5 + $0x1b0] sm:$0xff]  ;;  %v171_v50 = vld [vmem:[#allocation5 + $0x1b8] sm:$0xff]  ;;  %v874_v23 = vld [vmem:[#allocation8 + $0x4c0] sm:$0xff] }
  0x96   :  { %v8124_v55 = vcombine.high %v166_v45, %v170_v46  ;;  %v175_v57 = vld [vmem:[#allocation5 + $0x1d8] sm:$0xff]  ;;  %v8125_v1 = vcombine.low %v167_v49, %v171_v50  ;;  %v878_v24 = vld [vmem:[#allocation8 + $0x4e0] sm:$0xff] }
  0x97   :  { %553 = vmatpush1.bf16.msra.mxu0 %v8111_v51  ;;  %594 = vmatpush1.bf16.msra.mxu1 %v8113_v52  ;;  %v8118_v51 = vcombine.high %v159_v41, %v163_v42  ;;  %v179_v58 = vld [vmem:[#allocation5 + $0x1f8] sm:$0xff]  ;;  %v750_v28 = vld [vmem:[#allocation8 + $0xe0] sm:$0xff] }
  0x98   :  { %554 = vmatprep.subr.bf16.mxu0 %v8120_v53  ;;  %595 = vmatprep.subr.bf16.mxu1 %v8122_v54  ;;  %v174_v53 = vld [vmem:[#allocation5 + $0x1d0] sm:$0xff]  ;;  %v882_v31 = vld [vmem:[#allocation8 + $0x500] sm:$0xff] }
  0x99   :  { %v178_v54 = vld [vmem:[#allocation5 + $0x1f0] sm:$0xff]  ;;  %v754_v35 = vld [vmem:[#allocation8 + $0x100] sm:$0xff] }
  0x9a   :  { %v8132_v63 = vcombine.high %v174_v53, %v178_v54  ;;  %v762_v41 = vld [vmem:[#allocation8 + $0x140] sm:$0xff] }
  0x9b   :  { %555 = vmatpush1.bf16.msra.mxu0 %v8119_v59  ;;  %596 = vmatpush1.bf16.msra.mxu1 %v8121_v60  ;;  %v8126_v59 = vcombine.high %v167_v49, %v171_v50  ;;  %v8123_v60 = vcombine.low %v166_v45, %v170_v46  ;;  %v766_v42 = vld [vmem:[#allocation8 + $0x160] sm:$0xff] }
  0x9c   :  { %556 = vmatprep.subr.bf16.mxu0 %v8128_v61  ;;  %597 = vmatprep.subr.bf16.mxu1 %v8130_v62  ;;  %v850_v61 = vld [vmem:[#allocation8 + $0x400] sm:$0xff] }
  0x9d   :  { %v854_v62 = vld [vmem:[#allocation8 + $0x420] sm:$0xff] }
  0x9e   :  { %v8264_v8 = vcombine.high %v850_v61, %v854_v62  ;;  %v898_v45 = vld [vmem:[#allocation8 + $0x580] sm:$0xff] }
  0x9f   :  { %557 = vmatpush1.bf16.msra.mxu0 %v8127_v4  ;;  %598 = vmatpush1.bf16.msra.mxu1 %v8129_v5  ;;  %v8134_v4 = vcombine.high %v175_v57, %v179_v58  ;;  %v8131_v5 = vcombine.low %v174_v53, %v178_v54  ;;  %v902_v46 = vld [vmem:[#allocation8 + $0x5a0] sm:$0xff] }
  0xa0   :  { %624 = vmatprep.subr.bf16.mxu0 %v8076_v6  ;;  %665 = vmatprep.subr.bf16.mxu1 %v8078_v9  ;;  %v858_v6 = vld [vmem:[#allocation8 + $0x440] sm:$0xff]  ;;  %v8133_v9 = vcombine.low %v175_v57, %v179_v58 }
  0xa1   :  { %v770_v49 = vld [vmem:[#allocation8 + $0x180] sm:$0xff] }
  0xa2   :  { %575 = vmatmul.mubr.bf16.vlgmr.msra.gmra.mrb[0].mxu0 %v10280_v10  ;;  %616 = vmatmul.mubr.bf16.vlgmr.msra.gmra.mrb[0].mxu1 %v10280_v10  ;;  %v774_v50 = vld [vmem:[#allocation8 + $0x1a0] sm:$0xff] }
  0xa3   :  { %625 = vmatpush1.bf16.msra.mxu0 %v8075_v11  ;;  %656 = vmatprep.mubr.bf16.mxu0 %v10152_v0  ;;  %v730_v11 = vld [vmem:[#allocation8 + $0x40] sm:$0xff] }
  0xa4   :  { %626 = vmatprep.subr.bf16.mxu0 %v8084_v14  ;;  %666 = vmatpush1.bf16.msra.mxu1 %v8077_v17  ;;  %v8263_v14 = vcombine.low %v850_v61, %v854_v62  ;;  %v8272_v17 = vcombine.high %v858_v6, %v862_v7  ;;  %v8144_v21 = vcombine.high %v730_v11, %v734_v12  ;;  %v906_v53 = vld [vmem:[#allocation8 + $0x5c0] sm:$0xff] }
  0xa5   :  { %697 = vmatprep.mubr.bf16.mxu1 %v10152_v0  ;;  %667 = vmatprep.subr.bf16.mxu1 %v8086_v18  ;;  %v162_v0 = vld [vmem:[#allocation5 + $0x170] sm:$0xff]  ;;  %v8135_v18 = vcombine.low %v722_v2, %v726_v3  ;;  %v910_v54 = vld [vmem:[#allocation8 + $0x5e0] sm:$0xff] }
  0xa6   :  { %v8116_v47 = vcombine.high %v158_v38, %v162_v0  ;;  %v8115_v52 = vcombine.low %v158_v38, %v162_v0  ;;  %v890_v38 = vld [vmem:[#allocation8 + $0x540] sm:$0xff] }
  0xa7   :  { %627 = vmatpush1.bf16.msra.mxu0 %v8083_v19  ;;  %v738_v19 = vld [vmem:[#allocation8 + $0x80] sm:$0xff] }
  0xa8   :  { %628 = vmatprep.subr.bf16.mxu0 %v8092_v22  ;;  %668 = vmatpush1.bf16.msra.mxu1 %v8085_v25  ;;  %v8271_v22 = vcombine.low %v858_v6, %v862_v7  ;;  %v8280_v25 = vcombine.high %v866_v15, %v870_v16  ;;  %v8152_v29 = vcombine.high %v738_v19, %v742_v20  ;;  %v894_v0 = vld [vmem:[#allocation8 + $0x560] sm:$0xff] }
  0xa9   :  { %669 = vmatprep.subr.bf16.mxu1 %v8094_v26  ;;  %v8143_v26 = vcombine.low %v730_v11, %v734_v12  ;;  %v8151_v34 = vcombine.low %v738_v19, %v742_v20  ;;  %v778_v57 = vld [vmem:[#allocation8 + $0x1c0] sm:$0xff] }
  0xaa   :  { %v782_v58 = vld [vmem:[#allocation8 + $0x1e0] sm:$0xff] }
  0xab   :  { %629 = vmatpush1.bf16.msra.mxu0 %v8091_v27  ;;  %v746_v27 = vld [vmem:[#allocation8 + $0xc0] sm:$0xff] }
  0xac   :  { %630 = vmatprep.subr.bf16.mxu0 %v8100_v32  ;;  %670 = vmatpush1.bf16.msra.mxu1 %v8093_v33  ;;  %v886_v32 = vld [vmem:[#allocation8 + $0x520] sm:$0xff]  ;;  %v8288_v33 = vcombine.high %v874_v23, %v878_v24 }
  0xad   :  { %671 = vmatprep.subr.bf16.mxu1 %v8102_v36  ;;  %v758_v36 = vld [vmem:[#allocation8 + $0x120] sm:$0xff] }
  0xae   :  { %v914_v61 = vld [vmem:[#allocation8 + $0x600] sm:$0xff] }
  0xaf   :  { %631 = vmatpush1.bf16.msra.mxu0 %v8099_v37  ;;  %v8287_v37 = vcombine.low %v874_v23, %v878_v24  ;;  %v918_v62 = vld [vmem:[#allocation8 + $0x620] sm:$0xff] }
  0xb0   :  { %632 = vmatprep.subr.bf16.mxu0 %v8108_v39  ;;  %672 = vmatpush1.bf16.msra.mxu1 %v8101_v40  ;;  %v8296_v39 = vcombine.high %v882_v31, %v886_v32  ;;  %v8159_v40 = vcombine.low %v746_v27, %v750_v28  ;;  %v786_v2 = vld [vmem:[#allocation8 + $0x200] sm:$0xff] }
  0xb1   :  { %673 = vmatprep.subr.bf16.mxu1 %v8110_v43  ;;  %v8168_v43 = vcombine.high %v754_v35, %v758_v36  ;;  %v790_v3 = vld [vmem:[#allocation8 + $0x220] sm:$0xff] }
  0xb2   :  { %v922_v6 = vld [vmem:[#allocation8 + $0x640] sm:$0xff] }
  0xb3   :  { %633 = vmatpush1.bf16.msra.mxu0 %v8107_v44  ;;  %v8295_v44 = vcombine.low %v882_v31, %v886_v32  ;;  %v926_v7 = vld [vmem:[#allocation8 + $0x660] sm:$0xff] }
  0xb4   :  { %634 = vmatprep.subr.bf16.mxu0 %v8116_v47  ;;  %674 = vmatpush1.bf16.msra.mxu1 %v8109_v48  ;;  %v8304_v47 = vcombine.high %v890_v38, %v894_v0  ;;  %v8167_v48 = vcombine.low %v754_v35, %v758_v36  ;;  %v794_v11 = vld [vmem:[#allocation8 + $0x240] sm:$0xff] }
  0xb5   :  { %675 = vmatprep.subr.bf16.mxu1 %v8118_v51  ;;  %v8176_v51 = vcombine.high %v762_v41, %v766_v42  ;;  %v798_v12 = vld [vmem:[#allocation8 + $0x260] sm:$0xff] }
  0xb6   :  { %v930_v15 = vld [vmem:[#allocation8 + $0x680] sm:$0xff] }
  0xb7   :  { %635 = vmatpush1.bf16.msra.mxu0 %v8115_v52  ;;  %v8303_v52 = vcombine.low %v890_v38, %v894_v0  ;;  %v934_v16 = vld [vmem:[#allocation8 + $0x6a0] sm:$0xff] }
  0xb8   :  { %636 = vmatprep.subr.bf16.mxu0 %v8124_v55  ;;  %676 = vmatpush1.bf16.msra.mxu1 %v8117_v56  ;;  %v8312_v55 = vcombine.high %v898_v45, %v902_v46  ;;  %v8175_v56 = vcombine.low %v762_v41, %v766_v42  ;;  %v802_v19 = vld [vmem:[#allocation8 + $0x280] sm:$0xff] }
  0xb9   :  { %677 = vmatprep.subr.bf16.mxu1 %v8126_v59  ;;  %v8184_v59 = vcombine.high %v770_v49, %v774_v50  ;;  %v806_v20 = vld [vmem:[#allocation8 + $0x2a0] sm:$0xff] }
  0xba   :  { %v938_v23 = vld [vmem:[#allocation8 + $0x6c0] sm:$0xff] }
  0xbb   :  { %637 = vmatpush1.bf16.msra.mxu0 %v8123_v60  ;;  %v8311_v60 = vcombine.low %v898_v45, %v902_v46  ;;  %v942_v24 = vld [vmem:[#allocation8 + $0x6e0] sm:$0xff] }
  0xbc   :  { %638 = vmatprep.subr.bf16.mxu0 %v8132_v63  ;;  %678 = vmatpush1.bf16.msra.mxu1 %v8125_v1  ;;  %v8320_v63 = vcombine.high %v906_v53, %v910_v54  ;;  %v8183_v1 = vcombine.low %v770_v49, %v774_v50  ;;  %v946_v31 = vld [vmem:[#allocation8 + $0x700] sm:$0xff] }
  0xbd   :  { %679 = vmatprep.subr.bf16.mxu1 %v8134_v4  ;;  %v8192_v4 = vcombine.high %v778_v57, %v782_v58  ;;  %v950_v32 = vld [vmem:[#allocation8 + $0x720] sm:$0xff] }
  0xbe   :  { %v818_v35 = vld [vmem:[#allocation8 + $0x300] sm:$0xff] }
  0xbf   :  { %639 = vmatpush1.bf16.msra.mxu0 %v8131_v5  ;;  %v8319_v5 = vcombine.low %v906_v53, %v910_v54  ;;  %v822_v36 = vld [vmem:[#allocation8 + $0x320] sm:$0xff] }
  0xc0   :  { %3877 = vmatprep.subr.bf16.mxu0 %v8264_v8  ;;  %680 = vmatpush1.bf16.msra.mxu1 %v8133_v9  ;;  %v8328_v8 = vcombine.high %v914_v61, %v918_v62  ;;  %v8191_v9 = vcombine.low %v778_v57, %v782_v58  ;;  %v954_v38 = vld [vmem:[#allocation8 + $0x740] sm:$0xff]  ;;  %v8231_v46 = vcombine.low %v818_v35, %v822_v36 }
  0xc1   :  { %3836 = vmatprep.subr.bf16.mxu1 %v8136_v13  ;;  %v8200_v13 = vcombine.high %v786_v2, %v790_v3  ;;  %v958_v0 = vld [vmem:[#allocation8 + $0x760] sm:$0xff] }
  0xc2   :  { %657 = vmatmul.mubr.bf16.vlgmr.msra.gmra.mrb[4].mxu0 %v10280_v10  ;;  %v826_v41 = vld [vmem:[#allocation8 + $0x340] sm:$0xff]  ;;  %v8368_v45 = vcombine.high %v954_v38, %v958_v0 }
  0xc3   :  { %3878 = vmatpush1.bf16.msra.mxu0 %v8263_v14  ;;  %698 = vmatmul.mubr.bf16.vlgmr.msra.gmra.mrb[4].mxu1 %v10280_v10  ;;  %v8160_v10 = vcombine.high %v746_v27, %v750_v28  ;;  %v8327_v14 = vcombine.low %v914_v61, %v918_v62  ;;  %v810_v27 = vld [vmem:[#allocation8 + $0x2c0] sm:$0xff] }
  0xc4   :  { %3879 = vmatprep.subr.bf16.mxu0 %v8272_v17  ;;  %3837 = vmatpush1.bf16.msra.mxu1 %v8135_v18  ;;  %v8336_v17 = vcombine.high %v922_v6, %v926_v7  ;;  %v8199_v18 = vcombine.low %v786_v2, %v790_v3  ;;  %v814_v28 = vld [vmem:[#allocation8 + $0x2e0] sm:$0xff] }
  0xc5   :  { %3838 = vmatprep.subr.bf16.mxu1 %v8144_v21  ;;  %v8208_v21 = vcombine.high %v794_v11, %v798_v12  ;;  %v830_v42 = vld [vmem:[#allocation8 + $0x360] sm:$0xff] }
  0xc6   :  { %v834_v49 = vld [vmem:[#allocation8 + $0x380] sm:$0xff]  ;;  %v8239_v53 = vcombine.low %v826_v41, %v830_v42 }
  0xc7   :  { %3880 = vmatpush1.bf16.msra.mxu0 %v8271_v22  ;;  %v8335_v22 = vcombine.low %v922_v6, %v926_v7  ;;  %v838_v50 = vld [vmem:[#allocation8 + $0x3a0] sm:$0xff]  ;;  %v727_v6 = vld [vmem:[#allocation8 + $0x28] sm:$0xff] }
  0xc8   :  { %3881 = vmatprep.subr.bf16.mxu0 %v8280_v25  ;;  %3839 = vmatpush1.bf16.msra.mxu1 %v8143_v26  ;;  %v8344_v25 = vcombine.high %v930_v15, %v934_v16  ;;  %v8207_v26 = vcombine.low %v794_v11, %v798_v12  ;;  %v842_v57 = vld [vmem:[#allocation8 + $0x3c0] sm:$0xff]  ;;  %v8247_v61 = vcombine.low %v834_v49, %v838_v50  ;;  %v182_v12 = vlaneseq }
  0xc9   :  { %3840 = vmatprep.subr.bf16.mxu1 %v8152_v29  ;;  %v8216_v29 = vcombine.high %v802_v19, %v806_v20  ;;  %v846_v58 = vld [vmem:[#allocation8 + $0x3e0] sm:$0xff] }
  0xca   :  { %v10288_v2 = vld [vmem:[#allocation8 + $0x800] sm:$0xff]  ;;  %v8255_v7 = vcombine.low %v842_v57, %v846_v58 }
  0xcb   :  { %3882 = vmatpush1.bf16.msra.mxu0 %v8279_v30  ;;  %v8343_v30 = vcombine.low %v930_v15, %v934_v16  ;;  %v982_v3 = vld [vmem:[#allocation8 + $0x820] sm:$0xff] }
  0xcc   :  { %3883 = vmatprep.subr.bf16.mxu0 %v8288_v33  ;;  %3841 = vmatpush1.bf16.msra.mxu1 %v8151_v34  ;;  %v8352_v33 = vcombine.high %v938_v23, %v942_v24  ;;  %v8215_v34 = vcombine.low %v802_v19, %v806_v20 }
  0xcd   :  { %3842 = vmatprep.subr.bf16.mxu1 %v8160_v10  ;;  %v8224_v10 = vcombine.high %v810_v27, %v814_v28 }
  0xcf   :  { %3884 = vmatpush1.bf16.msra.mxu0 %v8287_v37  ;;  %v8351_v37 = vcombine.low %v938_v23, %v942_v24 }
  0xd0   :  { %3885 = vmatprep.subr.bf16.mxu0 %v8296_v39  ;;  %3843 = vmatpush1.bf16.msra.mxu1 %v8159_v40  ;;  %v8360_v39 = vcombine.high %v946_v31, %v950_v32  ;;  %v8223_v40 = vcombine.low %v810_v27, %v814_v28 }
  0xd1   :  { %3844 = vmatprep.subr.bf16.mxu1 %v8168_v43  ;;  %v8232_v43 = vcombine.high %v818_v35, %v822_v36  ;;  %v990_v35 = vld [vmem:[#allocation8 + $0x860] sm:$0xff]  ;;  %v731_v36 = vld [vmem:[#allocation8 + $0x48] sm:$0xff] }
  0xd3   :  { %3886 = vmatpush1.bf16.msra.mxu0 %v8295_v44  ;;  %v8359_v44 = vcombine.low %v946_v31, %v950_v32 }
  0xd4   :  { %3887 = vmatprep.subr.bf16.mxu0 %v8304_v47  ;;  %3845 = vmatpush1.bf16.msra.mxu1 %v8167_v48  ;;  %v8240_v47 = vcombine.high %v826_v41, %v830_v42  ;;  %v8367_v48 = vcombine.low %v954_v38, %v958_v0  ;;  %v735_v0 = vld [vmem:[#allocation8 + $0x68] sm:$0xff] }
  0xd5   :  { %3846 = vmatprep.subr.bf16.mxu1 %v8176_v51  ;;  %v962_v51 = vld [vmem:[#allocation8 + $0x780] sm:$0xff] }
  0xd7   :  { %3888 = vmatpush1.bf16.msra.mxu0 %v8303_v52  ;;  %v966_v52 = vld [vmem:[#allocation8 + $0x7a0] sm:$0xff] }
  0xd8   :  { %3889 = vmatprep.subr.bf16.mxu0 %v8312_v55  ;;  %3847 = vmatpush1.bf16.msra.mxu1 %v8175_v56  ;;  %v8376_v54 = vcombine.high %v962_v51, %v966_v52  ;;  %v8248_v55 = vcombine.high %v834_v49, %v838_v50  ;;  %v8375_v56 = vcombine.low %v962_v51, %v966_v52  ;;  %v743_v50 = vld [vmem:[#allocation8 + $0xa8] sm:$0xff] }
  0xd9   :  { %3848 = vmatprep.subr.bf16.mxu1 %v8184_v59  ;;  %v970_v59 = vld [vmem:[#allocation8 + $0x7c0] sm:$0xff]  ;;  %v8146_v49 = vcombine.high %v731_v36, %v735_v0  ;;  %v8145_v51 = vcombine.low %v731_v36, %v735_v0 }
  0xdb   :  { %3890 = vmatpush1.bf16.msra.mxu0 %v8311_v60  ;;  %v974_v60 = vld [vmem:[#allocation8 + $0x7e0] sm:$0xff] }
  0xdc   :  { %3891 = vmatprep.subr.bf16.mxu0 %v8320_v63  ;;  %3849 = vmatpush1.bf16.msra.mxu1 %v8183_v1  ;;  %v8384_v62 = vcombine.high %v970_v59, %v974_v60  ;;  %v8256_v63 = vcombine.high %v842_v57, %v846_v58  ;;  %v8383_v1 = vcombine.low %v970_v59, %v974_v60  ;;  %v1002_v57 = vld [vmem:[#allocation8 + $0x8c0] sm:$0xff] }
  0xdd   :  { %3850 = vmatprep.subr.bf16.mxu1 %v8192_v4  ;;  %v723_v4 = vld [vmem:[#allocation8 + $0x8] sm:$0xff]  ;;  %v1006_v58 = vld [vmem:[#allocation8 + $0x8e0] sm:$0xff] }
  0xde   :  { %v8138_v11 = vcombine.high %v723_v4, %v727_v6 }
  0xdf   :  { %3892 = vmatpush1.bf16.msra.mxu0 %v8319_v5  ;;  %v8392_v5 = vcombine.high %v10288_v2, %v982_v3 }
  0xe0   :  { %3893 = vmatprep.subr.bf16.mxu0 %v8328_v8  ;;  %3851 = vmatpush1.bf16.msra.mxu1 %v8191_v9  ;;  %v8391_v8 = vcombine.low %v10288_v2, %v982_v3  ;;  %v8137_v9 = vcombine.low %v723_v4, %v727_v6  ;;  %v1010_v2 = vld [vmem:[#allocation8 + $0x900] sm:$0xff] }
  0xe1   :  { %3852 = vmatprep.subr.bf16.mxu1 %v8200_v13  ;;  %v10292_v13 = vshrl.u32 %v182_v12, 7  ;;  %v1014_v3 = vld [vmem:[#allocation8 + $0x920] sm:$0xff] }
  0xe2   :  { %v1022_v12 = vld [vmem:[#allocation8 + $0x960] sm:$0xff] }
  0xe3   :  { %3894 = vmatpush1.bf16.msra.mxu0 %v8327_v14  ;;  %v10294_v14 = vld [vmem:[#allocation7] sm:$0xff]  ;;  %v10297_v15 = vsub.s32 0, %v10292_v13  ;;  %v10300_v16 = vsub.s32 2, %v10292_v13 }
  0xe4   :  { %3895 = vmatprep.subr.bf16.mxu0 %v8336_v17  ;;  %3853 = vmatpush1.bf16.msra.mxu1 %v8199_v18  ;;  %v10303_v17 = vsub.s32 1, %v10292_v13  ;;  %v10306_v18 = vsub.s32 3, %v10292_v13 }
  0xe5   :  { %3854 = vmatprep.subr.bf16.mxu1 %v8208_v21  ;;  %v185_v19 = vrot.slane %v10294_v14, %v10297_v15  ;;  %v193_v20 = vrot.slane %v10294_v14, %v10300_v16 }
  0xe6   :  { %v189_v21 = vrot.slane %v10294_v14, %v10303_v17 }
  0xe7   :  { %3896 = vmatpush1.bf16.msra.mxu0 %v8335_v22  ;;  %v197_v22 = vrot.slane %v10294_v14, %v10306_v18 }
  0xe8   :  { %3897 = vmatprep.subr.bf16.mxu0 %v8344_v25  ;;  %3855 = vmatpush1.bf16.msra.mxu1 %v8207_v26 }
  0xe9   :  { %3856 = vmatprep.subr.bf16.mxu1 %v8216_v29 }
  0xeb   :  { %3898 = vmatpush1.bf16.msra.mxu0 %v8343_v30 }
  0xec   :  { %3899 = vmatprep.subr.bf16.mxu0 %v8352_v33  ;;  %3857 = vmatpush1.bf16.msra.mxu1 %v8215_v34  ;;  %v986_v34 = vld [vmem:[#allocation8 + $0x840] sm:$0xff] }
  0xed   :  { %3858 = vmatprep.subr.bf16.mxu1 %v8224_v10  ;;  %v8399_v52 = vcombine.low %v986_v34, %v990_v35 }
  0xef   :  { %3900 = vmatpush1.bf16.msra.mxu0 %v8351_v37 }
  0xf0   :  { %3901 = vmatprep.subr.bf16.mxu0 %v8360_v39  ;;  %3859 = vmatpush1.bf16.msra.mxu1 %v8223_v40 }
  0xf1   :  { %3860 = vmatprep.subr.bf16.mxu1 %v8232_v43 }
  0xf3   :  { %3902 = vmatpush1.bf16.msra.mxu0 %v8359_v44 }
  0xf4   :  { %3903 = vmatprep.subr.bf16.mxu0 %v8368_v45  ;;  %3861 = vmatpush1.bf16.msra.mxu1 %v8231_v46  ;;  %v994_v45 = vld [vmem:[#allocation8 + $0x880] sm:$0xff] }
  0xf5   :  { %3862 = vmatprep.subr.bf16.mxu1 %v8240_v47  ;;  %v998_v46 = vld [vmem:[#allocation8 + $0x8a0] sm:$0xff]  ;;  %v739_v47 = vld [vmem:[#allocation8 + $0x88] sm:$0xff] }
  0xf6   :  { %v8153_v59 = vcombine.low %v739_v47, %v743_v50  ;;  %v8407_v60 = vcombine.low %v994_v45, %v998_v46 }
  0xf7   :  { %3904 = vmatpush1.bf16.msra.mxu0 %v8367_v48  ;;  %v8400_v48 = vcombine.high %v986_v34, %v990_v35  ;;  %v1034_v34 = vld [vmem:[#allocation8 + $0x9c0] sm:$0xff] }
  0xf8   :  { %3905 = vmatprep.subr.bf16.mxu0 %v8376_v54  ;;  %3863 = vmatpush1.bf16.msra.mxu1 %v8239_v53  ;;  %v8154_v53 = vcombine.high %v739_v47, %v743_v50  ;;  %v8408_v54 = vcombine.high %v994_v45, %v998_v46  ;;  %v1038_v35 = vld [vmem:[#allocation8 + $0x9e0] sm:$0xff] }
  0xf9   :  { %3864 = vmatprep.subr.bf16.mxu1 %v8248_v55  ;;  %v747_v55 = vld [vmem:[#allocation8 + $0xc8] sm:$0xff]  ;;  %v8448_v0 = vcombine.high %v1034_v34, %v1038_v35  ;;  %v1042_v46 = vld [vmem:[#allocation8 + $0xa00] sm:$0xff] }
  0xfa   :  { %v1046_v47 = vld [vmem:[#allocation8 + $0xa20] sm:$0xff] }
  0xfb   :  { %3906 = vmatpush1.bf16.msra.mxu0 %v8375_v56  ;;  %v751_v56 = vld [vmem:[#allocation8 + $0xe8] sm:$0xff] }
  0xfc   :  { %3907 = vmatprep.subr.bf16.mxu0 %v8384_v62  ;;  %3865 = vmatpush1.bf16.msra.mxu1 %v8247_v61  ;;  %v8162_v61 = vcombine.high %v747_v55, %v751_v56  ;;  %v8416_v62 = vcombine.high %v1002_v57, %v1006_v58  ;;  %v8161_v4 = vcombine.low %v747_v55, %v751_v56 }
  0xfd   :  { %3866 = vmatprep.subr.bf16.mxu1 %v8256_v63  ;;  %v755_v63 = vld [vmem:[#allocation8 + $0x108] sm:$0xff] }
  0xff   :  { %3908 = vmatpush1.bf16.msra.mxu0 %v8383_v1  ;;  %v759_v1 = vld [vmem:[#allocation8 + $0x128] sm:$0xff] }
 0x100   :  { %3918 = vmatprep.subr.bf16.mxu0 %v8392_v5  ;;  %3867 = vmatpush1.bf16.msra.mxu1 %v8255_v7  ;;  %v8415_v5 = vcombine.low %v1002_v57, %v1006_v58  ;;  %v8170_v6 = vcombine.high %v755_v63, %v759_v1  ;;  %v8424_v7 = vcombine.high %v1010_v2, %v1014_v3  ;;  %v795_v58 = vld [vmem:[#allocation8 + $0x248] sm:$0xff] }
 0x101   :  { %4000 = vmatprep.subr.bf16.mxu1 %v8138_v11  ;;  %v1018_v11 = vld [vmem:[#allocation8 + $0x940] sm:$0xff]  ;;  %v8456_v57 = vcombine.high %v1042_v46, %v1046_v47 }
 0x175   :  { %v576_v23 = vpop.f32.mrb[0].mxu0  ;;  %v617_v25 = vpop.f32.mrb[0].mxu1 }
 0x176   :  { %v577_v24 = vadd.f32 %v576_v23, %v185_v19  ;;  %v578_v26 = vpop.f32.mrb[1].mxu0  ;;  %v618_v27 = vadd.f32 %v617_v25, %v193_v20  ;;  %v619_v29 = vpop.f32.mrb[1].mxu1  ;;  %v8169_v19 = vcombine.low %v755_v63, %v759_v1  ;;  %v8423_v20 = vcombine.low %v1010_v2, %v1014_v3  ;;  %v771_v23 = vld [vmem:[#allocation8 + $0x188] sm:$0xff]  ;;  %v1026_v25 = vld [vmem:[#allocation8 + $0x980] sm:$0xff] }
 0x177   :  { %v579_v28 = vadd.f32 %v578_v26, %v189_v21  ;;  %v580_v30 = vpop.f32.mrb[2].mxu0  ;;  %v620_v32 = vadd.f32 %v619_v29, %v197_v22  ;;  %v621_v10 = vpop.f32.mrb[2].mxu1  ;;  %v8432_v22 = vcombine.high %v1018_v11, %v1022_v12  ;;  %v1030_v26 = vld [vmem:[#allocation8 + $0x9a0] sm:$0xff]  ;;  %v8431_v29 = vcombine.low %v1018_v11, %v1022_v12 }
 0x178   :  { %v706_v31 = vmax.f32 %v577_v24, 0.0  ;;  %v581_v33 = vpop.f32.mrb[3].mxu0  ;;  %v708_v37 = vmax.f32 %v618_v27, 0.0  ;;  %v622_v39 = vpop.f32.mrb[3].mxu1  ;;  %v775_v24 = vld [vmem:[#allocation8 + $0x1a8] sm:$0xff]  ;;  %v1054_v63 = vld [vmem:[#allocation8 + $0xa60] sm:$0xff] }
 0x179   :  { %v707_v38 = vmax.f32 %v579_v28, 0.0  ;;  %v709_v40 = vmax.f32 %v620_v32, 0.0  ;;  %v10330_v28 = vsub.s32 5, %v10292_v13  ;;  %v8186_v30 = vcombine.high %v771_v23, %v775_v24  ;;  %v779_v32 = vld [vmem:[#allocation8 + $0x1c8] sm:$0xff]  ;;  %v1062_v11 = vld [vmem:[#allocation8 + $0xaa0] sm:$0xff] }
 0x17a   :  { %v10316_v41 = vpack.c.bf16 %v708_v37, %v708_v37  ;;  %v10320_v43 = vpack.c.bf16 %v706_v31, %v706_v31  ;;  %v8440_v31 = vcombine.high %v1026_v25, %v1030_v26  ;;  %v783_v33 = vld [vmem:[#allocation8 + $0x1e8] sm:$0xff]  ;;  %v8185_v36 = vcombine.low %v771_v23, %v775_v24  ;;  %v1066_v24 = vld [vmem:[#allocation8 + $0xac0] sm:$0xff] }
 0x17b   :  { %v10318_v42 = vpack.c.bf16 %v707_v38, %v707_v38  ;;  %v10322_v44 = vpack.c.bf16 %v709_v40, %v709_v40  ;;  %v205_v10 = vrot.slane %v10294_v14, %v10330_v28  ;;  %v8439_v37 = vcombine.low %v1026_v25, %v1030_v26  ;;  %v787_v39 = vld [vmem:[#allocation8 + $0x208] sm:$0xff]  ;;  %v1070_v25 = vld [vmem:[#allocation8 + $0xae0] sm:$0xff] }
 0x17c   :  { %v8194_v38 = vcombine.high %v779_v32, %v783_v33  ;;  %v791_v40 = vld [vmem:[#allocation8 + $0x228] sm:$0xff] }
 0x17d   :  { %3868 = vmatprep.mubr.bf16.mxu1 %v10318_v42  ;;  %3909 = vmatprep.mubr.bf16.mxu0 %v10322_v44  ;;  %v8201_v2 = vcombine.low %v787_v39, %v791_v40  ;;  %v815_v23 = vld [vmem:[#allocation8 + $0x2e8] sm:$0xff] }
 0x17e   :  { %3869 = vmatmul.mubr.bf16.vlgmr.msra.gmra.mrb[8].mxu1 %v10320_v43  ;;  %3910 = vmatmul.mubr.bf16.vlgmr.msra.gmra.mrb[8].mxu0 %v10316_v41 }
 0x17f   :  { %4001 = vmatpush1.bf16.msra.mxu1 %v8137_v9  ;;  %3919 = vmatpush1.bf16.msra.mxu0 %v8391_v8  ;;  %v763_v8 = vld [vmem:[#allocation8 + $0x148] sm:$0xff] }
 0x180   :  { %4032 = vmatprep.mubr.bf16.mxu1 %v10318_v42  ;;  %3920 = vmatprep.subr.bf16.mxu0 %v8400_v48  ;;  %v767_v9 = vld [vmem:[#allocation8 + $0x168] sm:$0xff] }
 0x181   :  { %4002 = vmatprep.subr.bf16.mxu1 %v8146_v49  ;;  %v8178_v21 = vcombine.high %v763_v8, %v767_v9  ;;  %v8177_v27 = vcombine.low %v763_v8, %v767_v9  ;;  %v8193_v49 = vcombine.low %v779_v32, %v783_v33  ;;  %v807_v8 = vld [vmem:[#allocation8 + $0x2a8] sm:$0xff]  ;;  %v1058_v9 = vld [vmem:[#allocation8 + $0xa80] sm:$0xff] }
 0x182   :  { %v823_v32 = vld [vmem:[#allocation8 + $0x328] sm:$0xff]  ;;  %v1074_v33 = vld [vmem:[#allocation8 + $0xb00] sm:$0xff] }
 0x183   :  { %4003 = vmatpush1.bf16.msra.mxu1 %v8145_v51  ;;  %3921 = vmatpush1.bf16.msra.mxu0 %v8399_v52 }
 0x184   :  { %4004 = vmatprep.subr.bf16.mxu1 %v8154_v53  ;;  %3922 = vmatprep.subr.bf16.mxu0 %v8408_v54  ;;  %v8447_v53 = vcombine.low %v1034_v34, %v1038_v35  ;;  %v8202_v54 = vcombine.high %v787_v39, %v791_v40  ;;  %v1078_v34 = vld [vmem:[#allocation8 + $0xb20] sm:$0xff] }
 0x185   :  { %v1082_v39 = vld [vmem:[#allocation8 + $0xb40] sm:$0xff] }
 0x186   :  { %v1086_v40 = vld [vmem:[#allocation8 + $0xb60] sm:$0xff] }
 0x187   :  { %4005 = vmatpush1.bf16.msra.mxu1 %v8153_v59  ;;  %3923 = vmatpush1.bf16.msra.mxu0 %v8407_v60  ;;  %v799_v59 = vld [vmem:[#allocation8 + $0x268] sm:$0xff] }
 0x188   :  { %4006 = vmatprep.subr.bf16.mxu1 %v8162_v61  ;;  %3924 = vmatprep.subr.bf16.mxu0 %v8416_v62  ;;  %v1050_v62 = vld [vmem:[#allocation8 + $0xa40] sm:$0xff]  ;;  %v8209_v12 = vcombine.low %v795_v58, %v799_v59 }
 0x18b   :  { %4007 = vmatpush1.bf16.msra.mxu1 %v8161_v4  ;;  %3925 = vmatpush1.bf16.msra.mxu0 %v8415_v5  ;;  %v8455_v4 = vcombine.low %v1042_v46, %v1046_v47  ;;  %v8210_v5 = vcombine.high %v795_v58, %v799_v59  ;;  %v10344_v47 = vsub.s32 4, %v10292_v13 }
 0x18c   :  { %4008 = vmatprep.subr.bf16.mxu1 %v8170_v6  ;;  %3926 = vmatprep.subr.bf16.mxu0 %v8424_v7  ;;  %v8464_v6 = vcombine.high %v1050_v62, %v1054_v63  ;;  %v803_v7 = vld [vmem:[#allocation8 + $0x288] sm:$0xff] }
 0x18d   :  { %v8217_v26 = vcombine.low %v803_v7, %v807_v8  ;;  %v201_v59 = vrot.slane %v10294_v14, %v10344_v47 }
 0x18f   :  { %4009 = vmatpush1.bf16.msra.mxu1 %v8169_v19  ;;  %3927 = vmatpush1.bf16.msra.mxu0 %v8423_v20  ;;  %v8463_v19 = vcombine.low %v1050_v62, %v1054_v63  ;;  %v8218_v20 = vcombine.high %v803_v7, %v807_v8  ;;  %v843_v63 = vld [vmem:[#allocation8 + $0x3c8] sm:$0xff] }
 0x190   :  { %4010 = vmatprep.subr.bf16.mxu1 %v8178_v21  ;;  %3928 = vmatprep.subr.bf16.mxu0 %v8432_v22  ;;  %v8472_v21 = vcombine.high %v1058_v9, %v1062_v11  ;;  %v811_v22 = vld [vmem:[#allocation8 + $0x2c8] sm:$0xff] }
 0x191   :  { %v8225_v35 = vcombine.low %v811_v22, %v815_v23 }
 0x193   :  { %4011 = vmatpush1.bf16.msra.mxu1 %v8177_v27  ;;  %3929 = vmatpush1.bf16.msra.mxu0 %v8431_v29  ;;  %v8471_v27 = vcombine.low %v1058_v9, %v1062_v11  ;;  %v8226_v29 = vcombine.high %v811_v22, %v815_v23 }
 0x194   :  { %4012 = vmatprep.subr.bf16.mxu1 %v8186_v30  ;;  %3930 = vmatprep.subr.bf16.mxu0 %v8440_v31  ;;  %v8480_v30 = vcombine.high %v1066_v24, %v1070_v25  ;;  %v819_v31 = vld [vmem:[#allocation8 + $0x308] sm:$0xff] }
 0x195   :  { %v10334_v45 = vpop.f32.mrb[4].mxu0  ;;  %v8233_v46 = vcombine.low %v819_v31, %v823_v32 }
 0x196   :  { %v660_v48 = vpop.f32.mrb[5].mxu0  ;;  %v10336_v52 = vpop.f32.mrb[4].mxu1 }
 0x197   :  { %4013 = vmatpush1.bf16.msra.mxu1 %v8185_v36  ;;  %v661_v50 = vadd.f32 %v660_v48, %v205_v10  ;;  %v662_v51 = vpop.f32.mrb[6].mxu0  ;;  %3931 = vmatpush1.bf16.msra.mxu0 %v8439_v37  ;;  %v10338_v56 = vpop.f32.mrb[5].mxu1  ;;  %v8479_v36 = vcombine.low %v1066_v24, %v1070_v25  ;;  %v8234_v10 = vcombine.high %v819_v31, %v823_v32  ;;  %v863_v31 = vld [vmem:[#allocation8 + $0x468] sm:$0xff] }
 0x198   :  { %4014 = vmatprep.subr.bf16.mxu1 %v8194_v38  ;;  %v663_v55 = vpop.f32.mrb[7].mxu0  ;;  %3932 = vmatprep.subr.bf16.mxu0 %v8448_v0  ;;  %v703_v61 = vpop.f32.mrb[6].mxu1  ;;  %v8488_v37 = vcombine.high %v1074_v33, %v1078_v34  ;;  %v827_v38 = vld [vmem:[#allocation8 + $0x348] sm:$0xff]  ;;  %v8487_v48 = vcombine.low %v1074_v33, %v1078_v34 }
 0x199   :  { %v711_v60 = vmax.f32 %v661_v50, 0.0  ;;  %v704_v1 = vpop.f32.mrb[7].mxu1  ;;  %v831_v0 = vld [vmem:[#allocation8 + $0x368] sm:$0xff]  ;;  %v8496_v50 = vcombine.high %v1082_v39, %v1086_v40  ;;  %v1094_v55 = vld [vmem:[#allocation8 + $0xba0] sm:$0xff] }
 0x19a   :  { %v835_v51 = vld [vmem:[#allocation8 + $0x388] sm:$0xff]  ;;  %v8241_v58 = vcombine.low %v827_v38, %v831_v0 }
 0x19b   :  { %4015 = vmatpush1.bf16.msra.mxu1 %v8193_v49  ;;  %v10340_v3 = vpack.c.bf16 %v711_v60, %v711_v60  ;;  %3933 = vmatpush1.bf16.msra.mxu0 %v8447_v53  ;;  %v8242_v49 = vcombine.high %v827_v38, %v831_v0  ;;  %v839_v53 = vld [vmem:[#allocation8 + $0x3a8] sm:$0xff]  ;;  %v8495_v60 = vcombine.low %v1082_v39, %v1086_v40  ;;  %v1122_v38 = vld [vmem:[#allocation8 + $0xc80] sm:$0xff] }
 0x19c   :  { %4016 = vmatprep.subr.bf16.mxu1 %v8202_v54  ;;  %3934 = vmatprep.subr.bf16.mxu0 %v8456_v57  ;;  %v1090_v54 = vld [vmem:[#allocation8 + $0xb80] sm:$0xff]  ;;  %v212_v57 = vsub.s32 7, %v10292_v13  ;;  %v8250_v61 = vcombine.high %v835_v51, %v839_v53  ;;  %v847_v1 = vld [vmem:[#allocation8 + $0x3e8] sm:$0xff]  ;;  %v8249_v7 = vcombine.low %v835_v51, %v839_v53 }
 0x19d   :  { %3950 = vmatprep.mubr.bf16.mxu0 %v10340_v3  ;;  %v8504_v62 = vcombine.high %v1090_v54, %v1094_v55  ;;  %v8503_v8 = vcombine.low %v1090_v54, %v1094_v55  ;;  %v8258_v9 = vcombine.high %v843_v63, %v847_v1  ;;  %v8257_v24 = vcombine.low %v843_v63, %v847_v1  ;;  %v1126_v0 = vld [vmem:[#allocation8 + $0xca0] sm:$0xff]  ;;  %v879_v51 = vld [vmem:[#allocation8 + $0x4e8] sm:$0xff] }
 0x19e   :  { %v1130_v53 = vld [vmem:[#allocation8 + $0xcc0] sm:$0xff] }
 0x19f   :  { %4017 = vmatpush1.bf16.msra.mxu1 %v8201_v2  ;;  %3935 = vmatpush1.bf16.msra.mxu0 %v8455_v4  ;;  %v1098_v2 = vld [vmem:[#allocation8 + $0xbc0] sm:$0xff] }
 0x1a0   :  { %4018 = vmatprep.subr.bf16.mxu1 %v8210_v5  ;;  %3936 = vmatprep.subr.bf16.mxu0 %v8464_v6  ;;  %v1102_v4 = vld [vmem:[#allocation8 + $0xbe0] sm:$0xff]  ;;  %v213_v5 = vrot.slane %v10294_v14, %v212_v57  ;;  %v659_v6 = vadd.f32 %v10334_v45, %v201_v59 }
 0x1a1   :  { %v8512_v11 = vcombine.high %v1098_v2, %v1102_v4  ;;  %v8511_v25 = vcombine.low %v1098_v2, %v1102_v4  ;;  %v1134_v54 = vld [vmem:[#allocation8 + $0xce0] sm:$0xff] }
 0x1a2   :  { %v702_v22 = vadd.f32 %v10338_v56, %v213_v5  ;;  %v710_v23 = vmax.f32 %v659_v6, 0.0  ;;  %v1138_v63 = vld [vmem:[#allocation8 + $0xd00] sm:$0xff]  ;;  %v8543_v4 = vcombine.low %v1130_v53, %v1134_v54 }
 0x1a3   :  { %4019 = vmatpush1.bf16.msra.mxu1 %v8209_v12  ;;  %3937 = vmatpush1.bf16.msra.mxu0 %v8463_v19  ;;  %v851_v12 = vld [vmem:[#allocation8 + $0x408] sm:$0xff]  ;;  %v1142_v1 = vld [vmem:[#allocation8 + $0xd20] sm:$0xff] }
 0x1a4   :  { %4020 = vmatprep.subr.bf16.mxu1 %v8218_v20  ;;  %3938 = vmatprep.subr.bf16.mxu0 %v8472_v21  ;;  %v855_v19 = vld [vmem:[#allocation8 + $0x428] sm:$0xff]  ;;  %v1106_v20 = vld [vmem:[#allocation8 + $0xc00] sm:$0xff]  ;;  %v713_v32 = vmax.f32 %v702_v22, 0.0  ;;  %v10354_v33 = vpack.c.bf16 %v710_v23, %v710_v23  ;;  %v8552_v6 = vcombine.high %v1138_v63, %v1142_v1 }
 0x1a5   :  { %v1110_v21 = vld [vmem:[#allocation8 + $0xc20] sm:$0xff]  ;;  %v8266_v45 = vcombine.high %v851_v12, %v855_v19  ;;  %v8265_v34 = vcombine.low %v851_v12, %v855_v19  ;;  %v8551_v19 = vcombine.low %v1138_v63, %v1142_v1  ;;  %v899_v22 = vld [vmem:[#allocation8 + $0x588] sm:$0xff] }
 0x1a6   :  { %v8519_v56 = vcombine.low %v1106_v20, %v1110_v21  ;;  %v10357_v39 = vpack.c.bf16 %v713_v32, %v713_v32  ;;  %v903_v23 = vld [vmem:[#allocation8 + $0x5a8] sm:$0xff]  ;;  %v1162_v32 = vld [vmem:[#allocation8 + $0xdc0] sm:$0xff] }
 0x1a7   :  { %4021 = vmatpush1.bf16.msra.mxu1 %v8217_v26  ;;  %3939 = vmatpush1.bf16.msra.mxu0 %v8471_v27  ;;  %v8520_v26 = vcombine.high %v1106_v20, %v1110_v21  ;;  %v1114_v27 = vld [vmem:[#allocation8 + $0xc40] sm:$0xff]  ;;  %v935_v63 = vld [vmem:[#allocation8 + $0x6a8] sm:$0xff] }
 0x1a8   :  { %4022 = vmatprep.subr.bf16.mxu1 %v8226_v29  ;;  %3940 = vmatprep.subr.bf16.mxu0 %v8480_v30  ;;  %v1118_v29 = vld [vmem:[#allocation8 + $0xc60] sm:$0xff]  ;;  %v859_v30 = vld [vmem:[#allocation8 + $0x448] sm:$0xff] }
 0x1a9   :  { %v8273_v40 = vcombine.low %v859_v30, %v863_v31  ;;  %v1186_v1 = vld [vmem:[#allocation8 + $0xe80] sm:$0xff] }
 0x1ab   :  { %4023 = vmatpush1.bf16.msra.mxu1 %v8225_v35  ;;  %3941 = vmatpush1.bf16.msra.mxu0 %v8479_v36  ;;  %v8528_v35 = vcombine.high %v1114_v27, %v1118_v29  ;;  %v8274_v36 = vcombine.high %v859_v30, %v863_v31  ;;  %v907_v30 = vld [vmem:[#allocation8 + $0x5c8] sm:$0xff] }
 0x1ac   :  { %4024 = vmatprep.subr.bf16.mxu1 %v8234_v10  ;;  %3942 = vmatprep.subr.bf16.mxu0 %v8488_v37  ;;  %v867_v10 = vld [vmem:[#allocation8 + $0x488] sm:$0xff] }
 0x1ad   :  { %v871_v37 = vld [vmem:[#allocation8 + $0x4a8] sm:$0xff] }
 0x1ae   :  { %v8281_v55 = vcombine.low %v867_v10, %v871_v37  ;;  %v911_v31 = vld [vmem:[#allocation8 + $0x5e8] sm:$0xff] }
 0x1af   :  { %4025 = vmatpush1.bf16.msra.mxu1 %v8233_v46  ;;  %3943 = vmatpush1.bf16.msra.mxu0 %v8487_v48  ;;  %v8527_v46 = vcombine.low %v1114_v27, %v1118_v29  ;;  %v8282_v48 = vcombine.high %v867_v10, %v871_v37  ;;  %v8314_v27 = vcombine.high %v899_v22, %v903_v23  ;;  %v915_v37 = vld [vmem:[#allocation8 + $0x608] sm:$0xff] }
 0x1b0   :  { %4026 = vmatprep.subr.bf16.mxu1 %v8242_v49  ;;  %3944 = vmatprep.subr.bf16.mxu0 %v8496_v50  ;;  %v8536_v49 = vcombine.high %v1122_v38, %v1126_v0  ;;  %v875_v50 = vld [vmem:[#allocation8 + $0x4c8] sm:$0xff] }
 0x1b1   :  { %v8290_v59 = vcombine.high %v875_v50, %v879_v51  ;;  %v8289_v2 = vcombine.low %v875_v50, %v879_v51  ;;  %v923_v51 = vld [vmem:[#allocation8 + $0x648] sm:$0xff] }
 0x1b3   :  { %4027 = vmatpush1.bf16.msra.mxu1 %v8241_v58  ;;  %3945 = vmatpush1.bf16.msra.mxu0 %v8495_v60  ;;  %v8535_v58 = vcombine.low %v1122_v38, %v1126_v0  ;;  %v8544_v60 = vcombine.high %v1130_v53, %v1134_v54  ;;  %v919_v38 = vld [vmem:[#allocation8 + $0x628] sm:$0xff]  ;;  %v1170_v0 = vld [vmem:[#allocation8 + $0xe00] sm:$0xff] }
 0x1b4   :  { %4028 = vmatprep.subr.bf16.mxu1 %v8250_v61  ;;  %3946 = vmatprep.subr.bf16.mxu0 %v8504_v62  ;;  %v883_v61 = vld [vmem:[#allocation8 + $0x508] sm:$0xff]  ;;  %v1178_v54 = vld [vmem:[#allocation8 + $0xe40] sm:$0xff] }
 0x1b5   :  { %v887_v62 = vld [vmem:[#allocation8 + $0x528] sm:$0xff] }
 0x1b6   :  { %v8298_v5 = vcombine.high %v883_v61, %v887_v62  ;;  %v8297_v12 = vcombine.low %v883_v61, %v887_v62  ;;  %v927_v53 = vld [vmem:[#allocation8 + $0x668] sm:$0xff] }
 0x1b7   :  { %4029 = vmatpush1.bf16.msra.mxu1 %v8249_v7  ;;  %3947 = vmatpush1.bf16.msra.mxu0 %v8503_v8  ;;  %v891_v7 = vld [vmem:[#allocation8 + $0x548] sm:$0xff] }
 0x1b8   :  { %4030 = vmatprep.subr.bf16.mxu1 %v8258_v9  ;;  %3948 = vmatprep.subr.bf16.mxu0 %v8512_v11  ;;  %v895_v8 = vld [vmem:[#allocation8 + $0x568] sm:$0xff]  ;;  %v1146_v9 = vld [vmem:[#allocation8 + $0xd40] sm:$0xff] }
 0x1b9   :  { %v1150_v11 = vld [vmem:[#allocation8 + $0xd60] sm:$0xff]  ;;  %v8306_v20 = vcombine.high %v891_v7, %v895_v8  ;;  %v931_v62 = vld [vmem:[#allocation8 + $0x688] sm:$0xff] }
 0x1ba   :  { %v8560_v21 = vcombine.high %v1146_v9, %v1150_v11 }
 0x1bb   :  { %4031 = vmatpush1.bf16.msra.mxu1 %v8257_v24  ;;  %3949 = vmatpush1.bf16.msra.mxu0 %v8511_v25  ;;  %v1154_v24 = vld [vmem:[#allocation8 + $0xd80] sm:$0xff] }
 0x1bc   :  { %4041 = vmatprep.subr.bf16.mxu1 %v8266_v45  ;;  %3959 = vmatprep.subr.bf16.mxu0 %v8520_v26  ;;  %v1158_v25 = vld [vmem:[#allocation8 + $0xda0] sm:$0xff]  ;;  %v8305_v45 = vcombine.low %v891_v7, %v895_v8  ;;  %v8559_v26 = vcombine.low %v1146_v9, %v1150_v11  ;;  %v939_v8 = vld [vmem:[#allocation8 + $0x6c8] sm:$0xff] }
 0x1bd   :  { %v8568_v29 = vcombine.high %v1154_v24, %v1158_v25  ;;  %v943_v9 = vld [vmem:[#allocation8 + $0x6e8] sm:$0xff]  ;;  %v1194_v11 = vld [vmem:[#allocation8 + $0xec0] sm:$0xff] }
 0x1be   :  { %4033 = vmatmul.mubr.bf16.vlgmr.msra.gmra.mrb[12].mxu1 %v10320_v43  ;;  %3951 = vmatmul.mubr.bf16.vlgmr.msra.gmra.mrb[8].mxu0 %v10354_v33 }
 0x1bf   :  { %4042 = vmatpush1.bf16.msra.mxu1 %v8265_v34  ;;  %3960 = vmatpush1.bf16.msra.mxu0 %v8519_v56  ;;  %v1166_v34 = vld [vmem:[#allocation8 + $0xde0] sm:$0xff]  ;;  %v8313_v56 = vcombine.low %v899_v22, %v903_v23  ;;  %v947_v23 = vld [vmem:[#allocation8 + $0x708] sm:$0xff] }
 0x1c0   :  { %4073 = vmatprep.mubr.bf16.mxu1 %v10322_v44  ;;  %3961 = vmatprep.subr.bf16.mxu0 %v8528_v35  ;;  %v8567_v35 = vcombine.low %v1154_v24, %v1158_v25  ;;  %v8576_v10 = vcombine.high %v1162_v32, %v1166_v34  ;;  %v951_v24 = vld [vmem:[#allocation8 + $0x728] sm:$0xff]  ;;  %v1202_v25 = vld [vmem:[#allocation8 + $0xf00] sm:$0xff] }
 0x1c1   :  { %4043 = vmatprep.subr.bf16.mxu1 %v8274_v36  ;;  %3991 = vmatprep.mubr.bf16.mxu0 %v10357_v39  ;;  %v8322_v36 = vcombine.high %v907_v30, %v911_v31 }
 0x1c3   :  { %4044 = vmatpush1.bf16.msra.mxu1 %v8273_v40  ;;  %3962 = vmatpush1.bf16.msra.mxu0 %v8527_v46  ;;  %v1174_v40 = vld [vmem:[#allocation8 + $0xe20] sm:$0xff]  ;;  %v8321_v46 = vcombine.low %v907_v30, %v911_v31  ;;  %v955_v31 = vld [vmem:[#allocation8 + $0x748] sm:$0xff] }
 0x1c4   :  { %4045 = vmatprep.subr.bf16.mxu1 %v8282_v48  ;;  %3963 = vmatprep.subr.bf16.mxu0 %v8536_v49  ;;  %v8575_v48 = vcombine.low %v1162_v32, %v1166_v34  ;;  %v8330_v49 = vcombine.high %v915_v37, %v919_v38  ;;  %v8584_v50 = vcombine.high %v1170_v0, %v1174_v40  ;;  %v959_v32 = vld [vmem:[#allocation8 + $0x768] sm:$0xff]  ;;  %v1210_v34 = vld [vmem:[#allocation8 + $0xf40] sm:$0xff] }
 0x1c7   :  { %4046 = vmatpush1.bf16.msra.mxu1 %v8281_v55  ;;  %3964 = vmatpush1.bf16.msra.mxu0 %v8535_v58  ;;  %v1182_v55 = vld [vmem:[#allocation8 + $0xe60] sm:$0xff]  ;;  %v8329_v58 = vcombine.low %v915_v37, %v919_v38  ;;  %v8370_v37 = vcombine.high %v955_v31, %v959_v32 }
 0x1c8   :  { %4047 = vmatprep.subr.bf16.mxu1 %v8290_v59  ;;  %3965 = vmatprep.subr.bf16.mxu0 %v8544_v60  ;;  %v8583_v59 = vcombine.low %v1170_v0, %v1174_v40  ;;  %v8338_v60 = vcombine.high %v923_v51, %v927_v53  ;;  %v8592_v61 = vcombine.high %v1178_v54, %v1182_v55  ;;  %v963_v0 = vld [vmem:[#allocation8 + $0x788] sm:$0xff] }
 0x1c9   :  { %v967_v40 = vld [vmem:[#allocation8 + $0x7a8] sm:$0xff] }
 0x1cb   :  { %4048 = vmatpush1.bf16.msra.mxu1 %v8289_v2  ;;  %3966 = vmatpush1.bf16.msra.mxu0 %v8543_v4  ;;  %v1190_v2 = vld [vmem:[#allocation8 + $0xea0] sm:$0xff]  ;;  %v8337_v4 = vcombine.low %v923_v51, %v927_v53  ;;  %v8378_v53 = vcombine.high %v963_v0, %v967_v40 }
 0x1cc   :  { %4049 = vmatprep.subr.bf16.mxu1 %v8298_v5  ;;  %3967 = vmatprep.subr.bf16.mxu0 %v8552_v6  ;;  %v8591_v5 = vcombine.low %v1178_v54, %v1182_v55  ;;  %v8346_v6 = vcombine.high %v931_v62, %v935_v63  ;;  %v8600_v7 = vcombine.high %v1186_v1, %v1190_v2  ;;  %v971_v55 = vld [vmem:[#allocation8 + $0x7c8] sm:$0xff] }
 0x1cf   :  { %4050 = vmatpush1.bf16.msra.mxu1 %v8297_v12  ;;  %3968 = vmatpush1.bf16.msra.mxu0 %v8551_v19  ;;  %v1198_v12 = vld [vmem:[#allocation8 + $0xee0] sm:$0xff]  ;;  %v8345_v19 = vcombine.low %v931_v62, %v935_v63  ;;  %v8377_v62 = vcombine.low %v963_v0, %v967_v40 }
 0x1d0   :  { %4051 = vmatprep.subr.bf16.mxu1 %v8306_v20  ;;  %3969 = vmatprep.subr.bf16.mxu0 %v8560_v21  ;;  %v8599_v20 = vcombine.low %v1186_v1, %v1190_v2  ;;  %v8354_v21 = vcombine.high %v939_v8, %v943_v9  ;;  %v8608_v22 = vcombine.high %v1194_v11, %v1198_v12  ;;  %v979_v2 = vld [vmem:[#allocation8 + $0x808] sm:$0xff] }
 0x1d3   :  { %4052 = vmatpush1.bf16.msra.mxu1 %v8305_v45  ;;  %3970 = vmatpush1.bf16.msra.mxu0 %v8559_v26  ;;  %v1206_v45 = vld [vmem:[#allocation8 + $0xf20] sm:$0xff]  ;;  %v8353_v26 = vcombine.low %v939_v8, %v943_v9 }
 0x1d4   :  { %4053 = vmatprep.subr.bf16.mxu1 %v8314_v27  ;;  %3971 = vmatprep.subr.bf16.mxu0 %v8568_v29  ;;  %v8607_v27 = vcombine.low %v1194_v11, %v1198_v12  ;;  %v8362_v29 = vcombine.high %v947_v23, %v951_v24  ;;  %v8616_v30 = vcombine.high %v1202_v25, %v1206_v45  ;;  %v987_v12 = vld [vmem:[#allocation8 + $0x848] sm:$0xff] }
 0x1d7   :  { %4054 = vmatpush1.bf16.msra.mxu1 %v8313_v56  ;;  %3972 = vmatpush1.bf16.msra.mxu0 %v8567_v35  ;;  %v1214_v56 = vld [vmem:[#allocation8 + $0xf60] sm:$0xff]  ;;  %v8361_v35 = vcombine.low %v947_v23, %v951_v24  ;;  %v736_v23 = vld [vmem:[#allocation8 + $0x70] sm:$0xff] }
 0x1d8   :  { %4055 = vmatprep.subr.bf16.mxu1 %v8322_v36  ;;  %3973 = vmatprep.subr.bf16.mxu0 %v8576_v10  ;;  %v10363_v36 = vsub.s32 6, %v10292_v13  ;;  %v8615_v10 = vcombine.low %v1202_v25, %v1206_v45  ;;  %v8624_v38 = vcombine.high %v1210_v34, %v1214_v56  ;;  %v8623_v51 = vcombine.low %v1210_v34, %v1214_v56  ;;  %v995_v45 = vld [vmem:[#allocation8 + $0x888] sm:$0xff]  ;;  %v9657_v13 = vld [vmem:[#allocation11 + $0x10] ss:$28 sps:$4 sm:$0xff]  }
 0x1db   :  { %4056 = vmatpush1.bf16.msra.mxu1 %v8321_v46  ;;  %3974 = vmatpush1.bf16.msra.mxu0 %v8575_v48  ;;  %v1218_v46 = vld [vmem:[#allocation8 + $0xf80] sm:$0xff] }
 0x1dc   :  { %4057 = vmatprep.subr.bf16.mxu1 %v8330_v49  ;;  %3975 = vmatprep.subr.bf16.mxu0 %v8584_v50  ;;  %v1222_v48 = vld [vmem:[#allocation8 + $0xfa0] sm:$0xff]  ;;  %v8369_v49 = vcombine.low %v955_v31, %v959_v32  ;;  %v209_v50 = vrot.slane %v10294_v14, %v10363_v36 }
 0x1dd   :  { %v8632_v54 = vcombine.high %v1218_v46, %v1222_v48  ;;  %v8631_v63 = vcombine.low %v1218_v46, %v1222_v48 }
 0x1df   :  { %4058 = vmatpush1.bf16.msra.mxu1 %v8329_v58  ;;  %3976 = vmatpush1.bf16.msra.mxu0 %v8583_v59  ;;  %v975_v58 = vld [vmem:[#allocation8 + $0x7e8] sm:$0xff]  ;;  %v1226_v59 = vld [vmem:[#allocation8 + $0xfc0] sm:$0xff] }
 0x1e0   :  { %4059 = vmatprep.subr.bf16.mxu1 %v8338_v60  ;;  %3977 = vmatprep.subr.bf16.mxu0 %v8592_v61  ;;  %v1230_v60 = vld [vmem:[#allocation8 + $0xfe0] sm:$0xff]  ;;  %v700_v61 = vadd.f32 %v10336_v52, %v209_v50  ;;  %v8386_v1 = vcombine.high %v971_v55, %v975_v58  ;;  %v8385_v8 = vcombine.low %v971_v55, %v975_v58  ;;  %v1015_v50 = vld [vmem:[#allocation8 + $0x928] sm:$0xff] }
 0x1e1   :  { %v8640_v14 = vcombine.high %v1226_v59, %v1230_v60  ;;  %v8639_v9 = vcombine.low %v1226_v59, %v1230_v60  ;;  %v1019_v60 = vld [vmem:[#allocation8 + $0x948] sm:$0xff] }
 0x1e3   :  { %4060 = vmatpush1.bf16.msra.mxu1 %v8337_v4  ;;  %3978 = vmatpush1.bf16.msra.mxu0 %v8591_v5  ;;  %v983_v4 = vld [vmem:[#allocation8 + $0x828] sm:$0xff]  ;;  %v724_v5 = vld [vmem:[#allocation8 + $0x10] sm:$0xff] }
 0x1e4   :  { %4061 = vmatprep.subr.bf16.mxu1 %v8346_v6  ;;  %3979 = vmatprep.subr.bf16.mxu0 %v8600_v7  ;;  %v728_v6 = vld [vmem:[#allocation8 + $0x30] sm:$0xff]  ;;  %v712_v7 = vmax.f32 %v700_v61, 0.0  ;;  %v8394_v11 = vcombine.high %v979_v2, %v983_v4  ;;  %v1023_v61 = vld [vmem:[#allocation8 + $0x968] sm:$0xff] }
 0x1e5   :  { %v8140_v52 = vcombine.high %v724_v5, %v728_v6  ;;  %v8139_v24 = vcombine.low %v724_v5, %v728_v6  ;;  %v1027_v5 = vld [vmem:[#allocation8 + $0x988] sm:$0xff] }
 0x1e6   :  { %v1031_v6 = vld [vmem:[#allocation8 + $0x9a8] sm:$0xff] }
 0x1e7   :  { %4062 = vmatpush1.bf16.msra.mxu1 %v8345_v19  ;;  %3980 = vmatpush1.bf16.msra.mxu0 %v8599_v20  ;;  %v991_v19 = vld [vmem:[#allocation8 + $0x868] sm:$0xff]  ;;  %v10368_v20 = vpack.c.bf16 %v712_v7, %v712_v7  ;;  %v772_v7 = vld [vmem:[#allocation8 + $0x190] sm:$0xff] }
 0x1e8   :  { %4063 = vmatprep.subr.bf16.mxu1 %v8354_v21  ;;  %3981 = vmatprep.subr.bf16.mxu0 %v8608_v22  ;;  %v8393_v21 = vcombine.low %v979_v2, %v983_v4  ;;  %v732_v22 = vld [vmem:[#allocation8 + $0x50] sm:$0xff]  ;;  %v8402_v25 = vcombine.high %v987_v12, %v991_v19  ;;  %v8401_v31 = vcombine.low %v987_v12, %v991_v19  ;;  %v1035_v19 = vld [vmem:[#allocation8 + $0x9c8] sm:$0xff] }
 0x1e9   :  { %v8147_v32 = vcombine.low %v732_v22, %v736_v23  ;;  %v8434_v2 = vcombine.high %v1019_v60, %v1023_v61 }
 0x1eb   :  { %4064 = vmatpush1.bf16.msra.mxu1 %v8353_v26  ;;  %3982 = vmatpush1.bf16.msra.mxu0 %v8607_v27  ;;  %v999_v26 = vld [vmem:[#allocation8 + $0x8a8] sm:$0xff]  ;;  %v8148_v27 = vcombine.high %v732_v22, %v736_v23  ;;  %v780_v22 = vld [vmem:[#allocation8 + $0x1d0] sm:$0xff] }
 0x1ec   :  { %4065 = vmatprep.subr.bf16.mxu1 %v8362_v29  ;;  %3983 = vmatprep.subr.bf16.mxu0 %v8616_v30  ;;  %v740_v29 = vld [vmem:[#allocation8 + $0x90] sm:$0xff]  ;;  %v8410_v34 = vcombine.high %v995_v45, %v999_v26  ;;  %v8409_v0 = vcombine.low %v995_v45, %v999_v26 }
 0x1ed   :  { %v744_v30 = vld [vmem:[#allocation8 + $0xb0] sm:$0xff] }
 0x1ee   :  { %v8156_v56 = vcombine.high %v740_v29, %v744_v30  ;;  %v8155_v40 = vcombine.low %v740_v29, %v744_v30  ;;  %v784_v23 = vld [vmem:[#allocation8 + $0x1f0] sm:$0xff]  ;;  %v1047_v29 = vld [vmem:[#allocation8 + $0xa28] sm:$0xff] }
 0x1ef   :  { %4066 = vmatpush1.bf16.msra.mxu1 %v8361_v35  ;;  %3984 = vmatpush1.bf16.msra.mxu0 %v8615_v10  ;;  %v1003_v35 = vld [vmem:[#allocation8 + $0x8c8] sm:$0xff]  ;;  %v8196_v26 = vcombine.high %v780_v22, %v784_v23  ;;  %v788_v30 = vld [vmem:[#allocation8 + $0x210] sm:$0xff] }
 0x1f0   :  { %4067 = vmatprep.subr.bf16.mxu1 %v8370_v37  ;;  %3985 = vmatprep.subr.bf16.mxu0 %v8624_v38  ;;  %v1007_v10 = vld [vmem:[#allocation8 + $0x8e8] sm:$0xff]  ;;  %v748_v37 = vld [vmem:[#allocation8 + $0xd0] sm:$0xff] }
 0x1f1   :  { %v752_v38 = vld [vmem:[#allocation8 + $0xf0] sm:$0xff]  ;;  %v8418_v46 = vcombine.high %v1003_v35, %v1007_v10 }
 0x1f2   :  { %v8164_v48 = vcombine.high %v748_v37, %v752_v38  ;;  %v8163_v55 = vcombine.low %v748_v37, %v752_v38  ;;  %v1055_v37 = vld [vmem:[#allocation8 + $0xa68] sm:$0xff]  ;;  %v796_v38 = vld [vmem:[#allocation8 + $0x250] sm:$0xff] }
 0x1f3   :  { %4068 = vmatpush1.bf16.msra.mxu1 %v8369_v49  ;;  %3986 = vmatpush1.bf16.msra.mxu0 %v8623_v51  ;;  %v1011_v49 = vld [vmem:[#allocation8 + $0x908] sm:$0xff]  ;;  %v756_v51 = vld [vmem:[#allocation8 + $0x110] sm:$0xff] }
 0x1f4   :  { %4069 = vmatprep.subr.bf16.mxu1 %v8378_v53  ;;  %3987 = vmatprep.subr.bf16.mxu0 %v8632_v54  ;;  %v760_v53 = vld [vmem:[#allocation8 + $0x130] sm:$0xff]  ;;  %v8417_v54 = vcombine.low %v1003_v35, %v1007_v10  ;;  %v8426_v58 = vcombine.high %v1011_v49, %v1015_v50  ;;  %v1051_v10 = vld [vmem:[#allocation8 + $0xa48] sm:$0xff] }
 0x1f5   :  { %v8172_v59 = vcombine.high %v756_v51, %v760_v53 }
 0x1f7   :  { %4070 = vmatpush1.bf16.msra.mxu1 %v8377_v62  ;;  %3988 = vmatpush1.bf16.msra.mxu0 %v8631_v63  ;;  %v764_v62 = vld [vmem:[#allocation8 + $0x150] sm:$0xff] }
 0x1f8   :  { %4071 = vmatprep.subr.bf16.mxu1 %v8386_v1  ;;  %3989 = vmatprep.subr.bf16.mxu0 %v8640_v14  ;;  %v768_v63 = vld [vmem:[#allocation8 + $0x170] sm:$0xff]  ;;  %v8425_v1 = vcombine.low %v1011_v49, %v1015_v50  ;;  %v8171_v14 = vcombine.low %v756_v51, %v760_v53  ;;  %v1059_v50 = vld [vmem:[#allocation8 + $0xa88] sm:$0xff] }
 0x1f9   :  { %v8180_v4 = vcombine.high %v764_v62, %v768_v63  ;;  %v1063_v51 = vld [vmem:[#allocation8 + $0xaa8] sm:$0xff]  ;;  %v804_v53 = vld [vmem:[#allocation8 + $0x290] sm:$0xff] }
 0x1fb   :  { %4072 = vmatpush1.bf16.msra.mxu1 %v8385_v8  ;;  %3990 = vmatpush1.bf16.msra.mxu0 %v8639_v9  ;;  %v776_v8 = vld [vmem:[#allocation8 + $0x1b0] sm:$0xff]  ;;  %v8433_v9 = vcombine.low %v1019_v60, %v1023_v61  ;;  %v1067_v61 = vld [vmem:[#allocation8 + $0xac8] sm:$0xff] }
 0x1fc   :  { %4082 = vmatprep.subr.bf16.mxu1 %v8394_v11  ;;  %4164 = vmatprep.subr.bf16.mxu0 %v8140_v52  ;;  %v8179_v11 = vcombine.low %v764_v62, %v768_v63  ;;  %v8442_v52 = vcombine.high %v1027_v5, %v1031_v6  ;;  %v8188_v12 = vcombine.high %v772_v7, %v776_v8  ;;  %v1071_v62 = vld [vmem:[#allocation8 + $0xae8] sm:$0xff]  ;;  %v812_v63 = vld [vmem:[#allocation8 + $0x2d0] sm:$0xff] }
 0x1fe   :  { %4074 = vmatmul.mubr.bf16.vlgmr.msra.gmra.mrb[12].mxu1 %v10316_v41  ;;  %3992 = vmatmul.mubr.bf16.vlgmr.msra.gmra.mrb[8].mxu0 %v10368_v20 }
 0x1ff   :  { %4083 = vmatpush1.bf16.msra.mxu1 %v8393_v21  ;;  %4114 = vmatprep.mubr.bf16.mxu1 %v10340_v3  ;;  %v1039_v21 = vld [vmem:[#allocation8 + $0x9e8] sm:$0xff] }
 0x200   :  { %4165 = vmatpush1.bf16.msra.mxu0 %v8139_v24  ;;  %4196 = vmatprep.mubr.bf16.mxu0 %v10318_v42  ;;  %v8441_v24 = vcombine.low %v1027_v5, %v1031_v6  ;;  %v8450_v45 = vcombine.high %v1035_v19, %v1039_v21  ;;  %v1075_v6 = vld [vmem:[#allocation8 + $0xb08] sm:$0xff] }
 0x201   :  { %4084 = vmatprep.subr.bf16.mxu1 %v8402_v25  ;;  %4166 = vmatprep.subr.bf16.mxu0 %v8148_v27  ;;  %v8187_v25 = vcombine.low %v772_v7, %v776_v8  ;;  %v1043_v27 = vld [vmem:[#allocation8 + $0xa08] sm:$0xff]  ;;  %v820_v8 = vld [vmem:[#allocation8 + $0x310] sm:$0xff] }
 0x202   :  { %v1079_v7 = vld [vmem:[#allocation8 + $0xb28] sm:$0xff] }
 0x203   :  { %4085 = vmatpush1.bf16.msra.mxu1 %v8401_v31  ;;  %v792_v31 = vld [vmem:[#allocation8 + $0x230] sm:$0xff] }
 0x204   :  { %4167 = vmatpush1.bf16.msra.mxu0 %v8147_v32  ;;  %4086 = vmatprep.subr.bf16.mxu1 %v8410_v34  ;;  %v8449_v32 = vcombine.low %v1035_v19, %v1039_v21  ;;  %v8195_v34 = vcombine.low %v780_v22, %v784_v23  ;;  %v8204_v35 = vcombine.high %v788_v30, %v792_v31  ;;  %v1083_v21 = vld [vmem:[#allocation8 + $0xb48] sm:$0xff]  ;;  %v828_v23 = vld [vmem:[#allocation8 + $0x350] sm:$0xff] }
 0x205   :  { %4168 = vmatprep.subr.bf16.mxu0 %v8156_v56  ;;  %v8458_v56 = vcombine.high %v1043_v27, %v1047_v29  ;;  %v1087_v22 = vld [vmem:[#allocation8 + $0xb68] sm:$0xff] }
 0x207   :  { %4087 = vmatpush1.bf16.msra.mxu1 %v8409_v0  ;;  %v800_v0 = vld [vmem:[#allocation8 + $0x270] sm:$0xff] }
 0x208   :  { %4169 = vmatpush1.bf16.msra.mxu0 %v8155_v40  ;;  %4088 = vmatprep.subr.bf16.mxu1 %v8418_v46  ;;  %v8457_v40 = vcombine.low %v1043_v27, %v1047_v29  ;;  %v8203_v46 = vcombine.low %v788_v30, %v792_v31  ;;  %v8212_v49 = vcombine.high %v796_v38, %v800_v0  ;;  %v1091_v29 = vld [vmem:[#allocation8 + $0xb88] sm:$0xff]  ;;  %v836_v31 = vld [vmem:[#allocation8 + $0x390] sm:$0xff] }
 0x209   :  { %4170 = vmatprep.subr.bf16.mxu0 %v8164_v48  ;;  %v8466_v48 = vcombine.high %v1051_v10, %v1055_v37  ;;  %v1095_v30 = vld [vmem:[#allocation8 + $0xba8] sm:$0xff] }
 0x20b   :  { %4089 = vmatpush1.bf16.msra.mxu1 %v8417_v54  ;;  %v808_v54 = vld [vmem:[#allocation8 + $0x2b0] sm:$0xff] }
 0x20c   :  { %4171 = vmatpush1.bf16.msra.mxu0 %v8163_v55  ;;  %4090 = vmatprep.subr.bf16.mxu1 %v8426_v58  ;;  %v8465_v55 = vcombine.low %v1051_v10, %v1055_v37  ;;  %v8211_v58 = vcombine.low %v796_v38, %v800_v0  ;;  %v8220_v60 = vcombine.high %v804_v53, %v808_v54  ;;  %v1099_v37 = vld [vmem:[#allocation8 + $0xbc8] sm:$0xff]  ;;  %v844_v0 = vld [vmem:[#allocation8 + $0x3d0] sm:$0xff] }
 0x20d   :  { %4172 = vmatprep.subr.bf16.mxu0 %v8172_v59  ;;  %v8474_v59 = vcombine.high %v1059_v50, %v1063_v51  ;;  %v1103_v38 = vld [vmem:[#allocation8 + $0xbe8] sm:$0xff] }
 0x20f   :  { %4091 = vmatpush1.bf16.msra.mxu1 %v8425_v1  ;;  %v816_v1 = vld [vmem:[#allocation8 + $0x2f0] sm:$0xff] }
 0x210   :  { %4173 = vmatpush1.bf16.msra.mxu0 %v8171_v14  ;;  %4092 = vmatprep.subr.bf16.mxu1 %v8434_v2  ;;  %v8473_v14 = vcombine.low %v1059_v50, %v1063_v51  ;;  %v8219_v2 = vcombine.low %v804_v53, %v808_v54  ;;  %v8228_v5 = vcombine.high %v812_v63, %v816_v1  ;;  %v1107_v51 = vld [vmem:[#allocation8 + $0xc08] sm:$0xff]  ;;  %v852_v54 = vld [vmem:[#allocation8 + $0x410] sm:$0xff] }
 0x211   :  { %4174 = vmatprep.subr.bf16.mxu0 %v8180_v4  ;;  %v8482_v4 = vcombine.high %v1067_v61, %v1071_v62  ;;  %v1111_v53 = vld [vmem:[#allocation8 + $0xc28] sm:$0xff] }
 0x213   :  { %4093 = vmatpush1.bf16.msra.mxu1 %v8433_v9  ;;  %v824_v9 = vld [vmem:[#allocation8 + $0x330] sm:$0xff] }
 0x214   :  { %4175 = vmatpush1.bf16.msra.mxu0 %v8179_v11  ;;  %4094 = vmatprep.subr.bf16.mxu1 %v8442_v52  ;;  %v8481_v11 = vcombine.low %v1067_v61, %v1071_v62  ;;  %v8227_v52 = vcombine.low %v812_v63, %v816_v1  ;;  %v8236_v19 = vcombine.high %v820_v8, %v824_v9  ;;  %v1115_v62 = vld [vmem:[#allocation8 + $0xc48] sm:$0xff] }
 0x215   :  { %4176 = vmatprep.subr.bf16.mxu0 %v8188_v12  ;;  %v8490_v12 = vcombine.high %v1075_v6, %v1079_v7  ;;  %v1119_v63 = vld [vmem:[#allocation8 + $0xc68] sm:$0xff]  ;;  %v8521_v1 = vcombine.low %v1107_v51, %v1111_v53 }
 0x217   :  { %4095 = vmatpush1.bf16.msra.mxu1 %v8441_v24  ;;  %v832_v24 = vld [vmem:[#allocation8 + $0x370] sm:$0xff] }
 0x218   :  { %4177 = vmatpush1.bf16.msra.mxu0 %v8187_v25  ;;  %4096 = vmatprep.subr.bf16.mxu1 %v8450_v45  ;;  %v8489_v25 = vcombine.low %v1075_v6, %v1079_v7  ;;  %v8235_v45 = vcombine.low %v820_v8, %v824_v9  ;;  %v8244_v27 = vcombine.high %v828_v23, %v832_v24  ;;  %v1123_v6 = vld [vmem:[#allocation8 + $0xc88] sm:$0xff]  ;;  %v868_v9 = vld [vmem:[#allocation8 + $0x490] sm:$0xff] }
 0x219   :  { %4178 = vmatprep.subr.bf16.mxu0 %v8196_v26  ;;  %v8498_v26 = vcombine.high %v1083_v21, %v1087_v22  ;;  %v1127_v7 = vld [vmem:[#allocation8 + $0xca8] sm:$0xff] }
 0x21b   :  { %4097 = vmatpush1.bf16.msra.mxu1 %v8449_v32  ;;  %v840_v32 = vld [vmem:[#allocation8 + $0x3b0] sm:$0xff] }
 0x21c   :  { %4179 = vmatpush1.bf16.msra.mxu0 %v8195_v34  ;;  %4098 = vmatprep.subr.bf16.mxu1 %v8458_v56  ;;  %v8497_v34 = vcombine.low %v1083_v21, %v1087_v22  ;;  %v8243_v56 = vcombine.low %v828_v23, %v832_v24  ;;  %v8252_v10 = vcombine.high %v836_v31, %v840_v32  ;;  %v1131_v22 = vld [vmem:[#allocation8 + $0xcc8] sm:$0xff]  ;;  %v876_v24 = vld [vmem:[#allocation8 + $0x4d0] sm:$0xff] }
 0x21d   :  { %4180 = vmatprep.subr.bf16.mxu0 %v8204_v35  ;;  %v8506_v35 = vcombine.high %v1091_v29, %v1095_v30  ;;  %v1135_v23 = vld [vmem:[#allocation8 + $0xce8] sm:$0xff] }
 0x21f   :  { %4099 = vmatpush1.bf16.msra.mxu1 %v8457_v40  ;;  %v848_v40 = vld [vmem:[#allocation8 + $0x3f0] sm:$0xff] }
 0x220   :  { %4181 = vmatpush1.bf16.msra.mxu0 %v8203_v46  ;;  %4100 = vmatprep.subr.bf16.mxu1 %v8466_v48  ;;  %v8505_v46 = vcombine.low %v1091_v29, %v1095_v30  ;;  %v8251_v48 = vcombine.low %v836_v31, %v840_v32  ;;  %v8260_v50 = vcombine.high %v844_v0, %v848_v40  ;;  %v1139_v30 = vld [vmem:[#allocation8 + $0xd08] sm:$0xff]  ;;  %v884_v32 = vld [vmem:[#allocation8 + $0x510] sm:$0xff] }
 0x221   :  { %4182 = vmatprep.subr.bf16.mxu0 %v8212_v49  ;;  %v8514_v49 = vcombine.high %v1099_v37, %v1103_v38  ;;  %v1143_v31 = vld [vmem:[#allocation8 + $0xd28] sm:$0xff] }
 0x223   :  { %4101 = vmatpush1.bf16.msra.mxu1 %v8465_v55  ;;  %v856_v55 = vld [vmem:[#allocation8 + $0x430] sm:$0xff] }
 0x224   :  { %4183 = vmatpush1.bf16.msra.mxu0 %v8211_v58  ;;  %4102 = vmatprep.subr.bf16.mxu1 %v8474_v59  ;;  %v8513_v58 = vcombine.low %v1099_v37, %v1103_v38  ;;  %v8259_v59 = vcombine.low %v844_v0, %v848_v40  ;;  %v8268_v61 = vcombine.high %v852_v54, %v856_v55  ;;  %v1147_v38 = vld [vmem:[#allocation8 + $0xd48] sm:$0xff]  ;;  %v892_v40 = vld [vmem:[#allocation8 + $0x550] sm:$0xff] }
 0x225   :  { %4184 = vmatprep.subr.bf16.mxu0 %v8220_v60  ;;  %v8522_v60 = vcombine.high %v1107_v51, %v1111_v53  ;;  %v1151_v0 = vld [vmem:[#allocation8 + $0xd68] sm:$0xff] }
 0x226   :  { %v1155_v53 = vld [vmem:[#allocation8 + $0xd88] sm:$0xff] }
 0x227   :  { %4103 = vmatpush1.bf16.msra.mxu1 %v8473_v14  ;;  %v860_v14 = vld [vmem:[#allocation8 + $0x450] sm:$0xff] }
 0x228   :  { %4185 = vmatpush1.bf16.msra.mxu0 %v8219_v2  ;;  %4104 = vmatprep.subr.bf16.mxu1 %v8482_v4  ;;  %v864_v2 = vld [vmem:[#allocation8 + $0x470] sm:$0xff]  ;;  %v8267_v4 = vcombine.low %v852_v54, %v856_v55  ;;  %v1159_v54 = vld [vmem:[#allocation8 + $0xda8] sm:$0xff] }
 0x229   :  { %4186 = vmatprep.subr.bf16.mxu0 %v8228_v5  ;;  %v8530_v5 = vcombine.high %v1115_v62, %v1119_v63  ;;  %v8276_v8 = vcombine.high %v860_v14, %v864_v2  ;;  %v900_v55 = vld [vmem:[#allocation8 + $0x590] sm:$0xff] }
 0x22b   :  { %4105 = vmatpush1.bf16.msra.mxu1 %v8481_v11  ;;  %v872_v11 = vld [vmem:[#allocation8 + $0x4b0] sm:$0xff] }
 0x22c   :  { %4187 = vmatpush1.bf16.msra.mxu0 %v8227_v52  ;;  %4106 = vmatprep.subr.bf16.mxu1 %v8490_v12  ;;  %v8529_v52 = vcombine.low %v1115_v62, %v1119_v63  ;;  %v8275_v12 = vcombine.low %v860_v14, %v864_v2  ;;  %v8284_v21 = vcombine.high %v868_v9, %v872_v11  ;;  %v1167_v14 = vld [vmem:[#allocation8 + $0xde8] sm:$0xff] }
 0x22d   :  { %4188 = vmatprep.subr.bf16.mxu0 %v8236_v19  ;;  %v8538_v19 = vcombine.high %v1123_v6, %v1127_v7 }
 0x22f   :  { %4107 = vmatpush1.bf16.msra.mxu1 %v8489_v25  ;;  %v880_v25 = vld [vmem:[#allocation8 + $0x4f0] sm:$0xff] }
 0x230   :  { %4189 = vmatpush1.bf16.msra.mxu0 %v8235_v45  ;;  %4108 = vmatprep.subr.bf16.mxu1 %v8498_v26  ;;  %v8537_v45 = vcombine.low %v1123_v6, %v1127_v7  ;;  %v8283_v26 = vcombine.low %v868_v9, %v872_v11  ;;  %v8292_v29 = vcombine.high %v876_v24, %v880_v25 }
 0x231   :  { %4190 = vmatprep.subr.bf16.mxu0 %v8244_v27  ;;  %v8546_v27 = vcombine.high %v1131_v22, %v1135_v23  ;;  %v8569_v7 = vcombine.low %v1155_v53, %v1159_v54 }
 0x233   :  { %4109 = vmatpush1.bf16.msra.mxu1 %v8497_v34  ;;  %v888_v34 = vld [vmem:[#allocation8 + $0x530] sm:$0xff] }
 0x234   :  { %4191 = vmatpush1.bf16.msra.mxu0 %v8243_v56  ;;  %4110 = vmatprep.subr.bf16.mxu1 %v8506_v35  ;;  %v8545_v56 = vcombine.low %v1131_v22, %v1135_v23  ;;  %v8291_v35 = vcombine.low %v876_v24, %v880_v25  ;;  %v8300_v37 = vcombine.high %v884_v32, %v888_v34  ;;  %v920_v22 = vld [vmem:[#allocation8 + $0x630] sm:$0xff] }
 0x235   :  { %4192 = vmatprep.subr.bf16.mxu0 %v8252_v10  ;;  %v8554_v10 = vcombine.high %v1139_v30, %v1143_v31 }
 0x237   :  { %4111 = vmatpush1.bf16.msra.mxu1 %v8505_v46  ;;  %v896_v46 = vld [vmem:[#allocation8 + $0x570] sm:$0xff] }
 0x238   :  { %4193 = vmatpush1.bf16.msra.mxu0 %v8251_v48  ;;  %4112 = vmatprep.subr.bf16.mxu1 %v8514_v49  ;;  %v8553_v48 = vcombine.low %v1139_v30, %v1143_v31  ;;  %v8299_v49 = vcombine.low %v884_v32, %v888_v34  ;;  %v8308_v51 = vcombine.high %v892_v40, %v896_v46  ;;  %v928_v30 = vld [vmem:[#allocation8 + $0x670] sm:$0xff] }
 0x239   :  { %4194 = vmatprep.subr.bf16.mxu0 %v8260_v50  ;;  %v8562_v50 = vcombine.high %v1147_v38, %v1151_v0 }
 0x23b   :  { %4113 = vmatpush1.bf16.msra.mxu1 %v8513_v58  ;;  %v904_v58 = vld [vmem:[#allocation8 + $0x5b0] sm:$0xff] }
 0x23c   :  { %4195 = vmatpush1.bf16.msra.mxu0 %v8259_v59  ;;  %4123 = vmatprep.subr.bf16.mxu1 %v8522_v60  ;;  %v8561_v59 = vcombine.low %v1147_v38, %v1151_v0  ;;  %v8307_v60 = vcombine.low %v892_v40, %v896_v46  ;;  %v8316_v63 = vcombine.high %v900_v55, %v904_v58  ;;  %v936_v38 = vld [vmem:[#allocation8 + $0x6b0] sm:$0xff] }
 0x23d   :  { %4205 = vmatprep.subr.bf16.mxu0 %v8268_v61  ;;  %v8570_v61 = vcombine.high %v1155_v53, %v1159_v54  ;;  %v8315_v9 = vcombine.low %v900_v55, %v904_v58  ;;  %v944_v53 = vld [vmem:[#allocation8 + $0x6f0] sm:$0xff] }
 0x23e   :  { %4115 = vmatmul.mubr.bf16.vlgmr.msra.gmra.mrb[12].mxu1 %v10354_v33 }
 0x23f   :  { %4197 = vmatmul.mubr.bf16.vlgmr.msra.gmra.mrb[12].mxu0 %v10320_v43  ;;  %4124 = vmatpush1.bf16.msra.mxu1 %v8521_v1  ;;  %v1163_v1 = vld [vmem:[#allocation8 + $0xdc8] sm:$0xff] }
 0x240   :  { %4155 = vmatprep.mubr.bf16.mxu1 %v10357_v39  ;;  %4206 = vmatpush1.bf16.msra.mxu0 %v8267_v4  ;;  %v908_v4 = vld [vmem:[#allocation8 + $0x5d0] sm:$0xff]  ;;  %v8578_v11 = vcombine.high %v1163_v1, %v1167_v14  ;;  %v8577_v23 = vcombine.low %v1163_v1, %v1167_v14 }
 0x241   :  { %4237 = vmatprep.mubr.bf16.mxu0 %v10322_v44  ;;  %4125 = vmatprep.subr.bf16.mxu1 %v8530_v5  ;;  %v912_v5 = vld [vmem:[#allocation8 + $0x5f0] sm:$0xff] }
 0x242   :  { %4207 = vmatprep.subr.bf16.mxu0 %v8276_v8  ;;  %v8323_v24 = vcombine.low %v908_v4, %v912_v5  ;;  %v952_v1 = vld [vmem:[#allocation8 + $0x730] sm:$0xff] }
 0x243   :  { %4126 = vmatpush1.bf16.msra.mxu1 %v8529_v52  ;;  %v8324_v52 = vcombine.high %v908_v4, %v912_v5 }
 0x244   :  { %4208 = vmatpush1.bf16.msra.mxu0 %v8275_v12  ;;  %4127 = vmatprep.subr.bf16.mxu1 %v8538_v19  ;;  %v1171_v12 = vld [vmem:[#allocation8 + $0xe08] sm:$0xff] }
 0x245   :  { %4209 = vmatprep.subr.bf16.mxu0 %v8284_v21  ;;  %v1175_v19 = vld [vmem:[#allocation8 + $0xe28] sm:$0xff]  ;;  %v916_v21 = vld [vmem:[#allocation8 + $0x610] sm:$0xff] }
 0x246   :  { %v8586_v25 = vcombine.high %v1171_v12, %v1175_v19  ;;  %v8585_v31 = vcombine.low %v1171_v12, %v1175_v19  ;;  %v8331_v32 = vcombine.low %v916_v21, %v920_v22 }
 0x247   :  { %4128 = vmatpush1.bf16.msra.mxu1 %v8537_v45  ;;  %v8332_v45 = vcombine.high %v916_v21, %v920_v22  ;;  %v1219_v22 = vld [vmem:[#allocation8 + $0xf88] sm:$0xff] }
 0x248   :  { %4210 = vmatpush1.bf16.msra.mxu0 %v8283_v26  ;;  %4129 = vmatprep.subr.bf16.mxu1 %v8546_v27  ;;  %v1179_v26 = vld [vmem:[#allocation8 + $0xe48] sm:$0xff] }
 0x249   :  { %4211 = vmatprep.subr.bf16.mxu0 %v8292_v29  ;;  %v1183_v27 = vld [vmem:[#allocation8 + $0xe68] sm:$0xff]  ;;  %v924_v29 = vld [vmem:[#allocation8 + $0x650] sm:$0xff] }
 0x24a   :  { %v8594_v34 = vcombine.high %v1179_v26, %v1183_v27  ;;  %v8593_v0 = vcombine.low %v1179_v26, %v1183_v27  ;;  %v8339_v40 = vcombine.low %v924_v29, %v928_v30 }
 0x24b   :  { %4130 = vmatpush1.bf16.msra.mxu1 %v8545_v56  ;;  %v8340_v56 = vcombine.high %v924_v29, %v928_v30  ;;  %v1227_v30 = vld [vmem:[#allocation8 + $0xfc8] sm:$0xff] }
 0x24c   :  { %4212 = vmatpush1.bf16.msra.mxu0 %v8291_v35  ;;  %4131 = vmatprep.subr.bf16.mxu1 %v8554_v10  ;;  %v1187_v35 = vld [vmem:[#allocation8 + $0xe88] sm:$0xff] }
 0x24d   :  { %4213 = vmatprep.subr.bf16.mxu0 %v8300_v37  ;;  %v1191_v10 = vld [vmem:[#allocation8 + $0xea8] sm:$0xff]  ;;  %v932_v37 = vld [vmem:[#allocation8 + $0x690] sm:$0xff] }
 0x24e   :  { %v8602_v46 = vcombine.high %v1187_v35, %v1191_v10  ;;  %v8601_v54 = vcombine.low %v1187_v35, %v1191_v10  ;;  %v8347_v55 = vcombine.low %v932_v37, %v936_v38 }
 0x24f   :  { %4132 = vmatpush1.bf16.msra.mxu1 %v8553_v48  ;;  %v8348_v48 = vcombine.high %v932_v37, %v936_v38  ;;  %v725_v38 = vld [vmem:[#allocation8 + $0x18] sm:$0xff] }
 0x250   :  { %4214 = vmatpush1.bf16.msra.mxu0 %v8299_v49  ;;  %4133 = vmatprep.subr.bf16.mxu1 %v8562_v50  ;;  %v1195_v49 = vld [vmem:[#allocation8 + $0xec8] sm:$0xff] }
 0x251   :  { %v10378_v62 = vpop.f32.mrb[8].mxu1  ;;  %4215 = vmatprep.subr.bf16.mxu0 %v8308_v51  ;;  %v1199_v50 = vld [vmem:[#allocation8 + $0xee8] sm:$0xff]  ;;  %v940_v51 = vld [vmem:[#allocation8 + $0x6d0] sm:$0xff] }
 0x252   :  { %v10380_v2 = vpop.f32.mrb[9].mxu1  ;;  %v8610_v58 = vcombine.high %v1195_v49, %v1199_v50  ;;  %v8609_v14 = vcombine.low %v1195_v49, %v1199_v50  ;;  %v8355_v4 = vcombine.low %v940_v51, %v944_v53 }
 0x253   :  { %4134 = vmatpush1.bf16.msra.mxu1 %v8561_v59  ;;  %v3874_v6 = vpop.f32.mrb[10].mxu1  ;;  %v8356_v59 = vcombine.high %v940_v51, %v944_v53  ;;  %v988_v53 = vld [vmem:[#allocation8 + $0x850] sm:$0xff] }
 0x254   :  { %4216 = vmatpush1.bf16.msra.mxu0 %v8307_v60  ;;  %v3875_v8 = vpop.f32.mrb[11].mxu1  ;;  %4135 = vmatprep.subr.bf16.mxu1 %v8570_v61  ;;  %v1203_v60 = vld [vmem:[#allocation8 + $0xf08] sm:$0xff] }
 0x255   :  { %4217 = vmatprep.subr.bf16.mxu0 %v8316_v63  ;;  %v1207_v61 = vld [vmem:[#allocation8 + $0xf28] sm:$0xff]  ;;  %v948_v63 = vld [vmem:[#allocation8 + $0x710] sm:$0xff] }
 0x256   :  { %v8618_v5 = vcombine.high %v1203_v60, %v1207_v61  ;;  %v8364_v6 = vcombine.high %v948_v63, %v952_v1  ;;  %v1215_v8 = vld [vmem:[#allocation8 + $0xf68] sm:$0xff]  ;;  %v8363_v12 = vcombine.low %v948_v63, %v952_v1  ;;  %v741_v63 = vld [vmem:[#allocation8 + $0x98] sm:$0xff] }
 0x257   :  { %4136 = vmatpush1.bf16.msra.mxu1 %v8569_v7  ;;  %v1211_v7 = vld [vmem:[#allocation8 + $0xf48] sm:$0xff]  ;;  %v745_v1 = vld [vmem:[#allocation8 + $0xb8] sm:$0xff] }
 0x258   :  { %4218 = vmatpush1.bf16.msra.mxu0 %v8315_v9  ;;  %4137 = vmatprep.subr.bf16.mxu1 %v8578_v11  ;;  %v956_v9 = vld [vmem:[#allocation8 + $0x750] sm:$0xff]  ;;  %v8626_v19 = vcombine.high %v1211_v7, %v1215_v8 }
 0x259   :  { %4219 = vmatprep.subr.bf16.mxu0 %v8324_v52  ;;  %v960_v11 = vld [vmem:[#allocation8 + $0x770] sm:$0xff]  ;;  %v8617_v52 = vcombine.low %v1203_v60, %v1207_v61 }
 0x25a   :  { %v8372_v21 = vcombine.high %v956_v9, %v960_v11  ;;  %v8371_v26 = vcombine.low %v956_v9, %v960_v11  ;;  %v749_v11 = vld [vmem:[#allocation8 + $0xd8] sm:$0xff] }
 0x25b   :  { %4138 = vmatpush1.bf16.msra.mxu1 %v8577_v23  ;;  %v1223_v23 = vld [vmem:[#allocation8 + $0xfa8] sm:$0xff] }
 0x25c   :  { %4220 = vmatpush1.bf16.msra.mxu0 %v8323_v24  ;;  %4139 = vmatprep.subr.bf16.mxu1 %v8586_v25  ;;  %v964_v24 = vld [vmem:[#allocation8 + $0x790] sm:$0xff]  ;;  %v8634_v27 = vcombine.high %v1219_v22, %v1223_v23 }
 0x25d   :  { %4221 = vmatprep.subr.bf16.mxu0 %v8332_v45  ;;  %v968_v25 = vld [vmem:[#allocation8 + $0x7b0] sm:$0xff]  ;;  %v8625_v45 = vcombine.low %v1211_v7, %v1215_v8  ;;  %v8158_v8 = vcombine.high %v741_v63, %v745_v1 }
 0x25e   :  { %v8380_v29 = vcombine.high %v964_v24, %v968_v25  ;;  %v8379_v35 = vcombine.low %v964_v24, %v968_v25  ;;  %v757_v25 = vld [vmem:[#allocation8 + $0x118] sm:$0xff] }
 0x25f   :  { %4140 = vmatpush1.bf16.msra.mxu1 %v8585_v31  ;;  %v1231_v31 = vld [vmem:[#allocation8 + $0xfe8] sm:$0xff] }
 0x260   :  { %4222 = vmatpush1.bf16.msra.mxu0 %v8331_v32  ;;  %4141 = vmatprep.subr.bf16.mxu1 %v8594_v34  ;;  %v972_v32 = vld [vmem:[#allocation8 + $0x7d0] sm:$0xff]  ;;  %v8642_v10 = vcombine.high %v1227_v30, %v1231_v31 }
 0x261   :  { %4223 = vmatprep.subr.bf16.mxu0 %v8340_v56  ;;  %v976_v34 = vld [vmem:[#allocation8 + $0x7f0] sm:$0xff]  ;;  %v8633_v56 = vcombine.low %v1219_v22, %v1223_v23 }
 0x262   :  { %v8388_v37 = vcombine.high %v972_v32, %v976_v34  ;;  %v8387_v49 = vcombine.low %v972_v32, %v976_v34  ;;  %v765_v32 = vld [vmem:[#allocation8 + $0x158] sm:$0xff] }
 0x263   :  { %4142 = vmatpush1.bf16.msra.mxu1 %v8593_v0  ;;  %v729_v0 = vld [vmem:[#allocation8 + $0x38] sm:$0xff] }
 0x264   :  { %4224 = vmatpush1.bf16.msra.mxu0 %v8339_v40  ;;  %4143 = vmatprep.subr.bf16.mxu1 %v8602_v46  ;;  %v980_v40 = vld [vmem:[#allocation8 + $0x810] sm:$0xff]  ;;  %v8142_v50 = vcombine.high %v725_v38, %v729_v0  ;;  %v769_v34 = vld [vmem:[#allocation8 + $0x178] sm:$0xff] }
 0x265   :  { %4225 = vmatprep.subr.bf16.mxu0 %v8348_v48  ;;  %v984_v46 = vld [vmem:[#allocation8 + $0x830] sm:$0xff]  ;;  %v8641_v48 = vcombine.low %v1227_v30, %v1231_v31 }
 0x266   :  { %v8396_v51 = vcombine.high %v980_v40, %v984_v46  ;;  %v8395_v60 = vcombine.low %v980_v40, %v984_v46  ;;  %v773_v40 = vld [vmem:[#allocation8 + $0x198] sm:$0xff] }
 0x267   :  { %4144 = vmatpush1.bf16.msra.mxu1 %v8601_v54  ;;  %v992_v54 = vld [vmem:[#allocation8 + $0x870] sm:$0xff]  ;;  %v777_v46 = vld [vmem:[#allocation8 + $0x1b8] sm:$0xff] }
 0x268   :  { %4226 = vmatpush1.bf16.msra.mxu0 %v8347_v55  ;;  %4145 = vmatprep.subr.bf16.mxu1 %v8610_v58  ;;  %v8141_v55 = vcombine.low %v725_v38, %v729_v0  ;;  %v733_v58 = vld [vmem:[#allocation8 + $0x58] sm:$0xff]  ;;  %v8404_v61 = vcombine.high %v988_v53, %v992_v54  ;;  %v8403_v7 = vcombine.low %v988_v53, %v992_v54 }
 0x269   :  { %4227 = vmatprep.subr.bf16.mxu0 %v8356_v59  ;;  %v737_v59 = vld [vmem:[#allocation8 + $0x78] sm:$0xff]  ;;  %v8182_v38 = vcombine.high %v765_v32, %v769_v34  ;;  %v8190_v53 = vcombine.high %v773_v40, %v777_v46 }
 0x26b   :  { %4146 = vmatpush1.bf16.msra.mxu1 %v8609_v14  ;;  %v8150_v14 = vcombine.high %v733_v58, %v737_v59 }
 0x26c   :  { %4228 = vmatpush1.bf16.msra.mxu0 %v8355_v4  ;;  %4147 = vmatprep.subr.bf16.mxu1 %v8618_v5  ;;  %v996_v4 = vld [vmem:[#allocation8 + $0x890] sm:$0xff] }
 0x26d   :  { %4229 = vmatprep.subr.bf16.mxu0 %v8364_v6  ;;  %v1000_v5 = vld [vmem:[#allocation8 + $0x8b0] sm:$0xff]  ;;  %v8149_v6 = vcombine.low %v733_v58, %v737_v59  ;;  %v785_v58 = vld [vmem:[#allocation8 + $0x1f8] sm:$0xff] }
 0x26e   :  { %v8412_v9 = vcombine.high %v996_v4, %v1000_v5  ;;  %v8411_v22 = vcombine.low %v996_v4, %v1000_v5  ;;  %v1036_v59 = vld [vmem:[#allocation8 + $0x9d0] sm:$0xff]  ;;  %v789_v4 = vld [vmem:[#allocation8 + $0x218] sm:$0xff] }
 0x26f   :  { %4148 = vmatpush1.bf16.msra.mxu1 %v8617_v52  ;;  %v753_v52 = vld [vmem:[#allocation8 + $0xf8] sm:$0xff] }
 0x270   :  { %4230 = vmatpush1.bf16.msra.mxu0 %v8363_v12  ;;  %4149 = vmatprep.subr.bf16.mxu1 %v8626_v19  ;;  %v1004_v12 = vld [vmem:[#allocation8 + $0x8d0] sm:$0xff]  ;;  %v8166_v23 = vcombine.high %v749_v11, %v753_v52  ;;  %v793_v5 = vld [vmem:[#allocation8 + $0x238] sm:$0xff] }
 0x271   :  { %4231 = vmatprep.subr.bf16.mxu0 %v8372_v21  ;;  %v1008_v19 = vld [vmem:[#allocation8 + $0x8f0] sm:$0xff]  ;;  %v8157_v21 = vcombine.low %v741_v63, %v745_v1 }
 0x272   :  { %v8420_v24 = vcombine.high %v1004_v12, %v1008_v19 }
 0x273   :  { %4150 = vmatpush1.bf16.msra.mxu1 %v8625_v45  ;;  %v761_v45 = vld [vmem:[#allocation8 + $0x138] sm:$0xff] }
 0x274   :  { %4232 = vmatpush1.bf16.msra.mxu0 %v8371_v26  ;;  %4151 = vmatprep.subr.bf16.mxu1 %v8634_v27  ;;  %v1012_v26 = vld [vmem:[#allocation8 + $0x910] sm:$0xff]  ;;  %v8174_v30 = vcombine.high %v757_v25, %v761_v45 }
 0x275   :  { %4233 = vmatprep.subr.bf16.mxu0 %v8380_v29  ;;  %v1016_v27 = vld [vmem:[#allocation8 + $0x930] sm:$0xff]  ;;  %v8419_v29 = vcombine.low %v1004_v12, %v1008_v19  ;;  %v797_v12 = vld [vmem:[#allocation8 + $0x258] sm:$0xff] }
 0x276   :  { %v8428_v31 = vcombine.high %v1012_v26, %v1016_v27  ;;  %v801_v19 = vld [vmem:[#allocation8 + $0x278] sm:$0xff] }
 0x277   :  { %4152 = vmatpush1.bf16.msra.mxu1 %v8633_v56  ;;  %v1020_v56 = vld [vmem:[#allocation8 + $0x950] sm:$0xff] }
 0x278   :  { %4234 = vmatpush1.bf16.msra.mxu0 %v8379_v35  ;;  %4153 = vmatprep.subr.bf16.mxu1 %v8642_v10  ;;  %v1024_v35 = vld [vmem:[#allocation8 + $0x970] sm:$0xff]  ;;  %v8173_v10 = vcombine.low %v757_v25, %v761_v45  ;;  %v8214_v25 = vcombine.high %v797_v12, %v801_v19 }
 0x279   :  { %4235 = vmatprep.subr.bf16.mxu0 %v8388_v37  ;;  %v8427_v37 = vcombine.low %v1012_v26, %v1016_v27  ;;  %v8436_v0 = vcombine.high %v1020_v56, %v1024_v35  ;;  %v805_v26 = vld [vmem:[#allocation8 + $0x298] sm:$0xff] }
 0x27a   :  { %v809_v27 = vld [vmem:[#allocation8 + $0x2b8] sm:$0xff] }
 0x27b   :  { %4154 = vmatpush1.bf16.msra.mxu1 %v8641_v48  ;;  %v1028_v48 = vld [vmem:[#allocation8 + $0x990] sm:$0xff] }
 0x27c   :  { %4236 = vmatpush1.bf16.msra.mxu0 %v8387_v49  ;;  %4328 = vmatprep.subr.bf16.mxu1 %v8142_v50  ;;  %v1032_v49 = vld [vmem:[#allocation8 + $0x9b0] sm:$0xff]  ;;  %v8181_v50 = vcombine.low %v765_v32, %v769_v34  ;;  %v8222_v32 = vcombine.high %v805_v26, %v809_v27 }
 0x27d   :  { %4246 = vmatprep.subr.bf16.mxu0 %v8396_v51  ;;  %v8435_v51 = vcombine.low %v1020_v56, %v1024_v35  ;;  %v8444_v54 = vcombine.high %v1028_v48, %v1032_v49  ;;  %v8443_v63 = vcombine.low %v1028_v48, %v1032_v49  ;;  %v813_v56 = vld [vmem:[#allocation8 + $0x2d8] sm:$0xff] }
 0x27e   :  { %4156 = vmatmul.mubr.bf16.vlgmr.msra.gmra.mrb[12].mxu1 %v10368_v20  ;;  %v817_v35 = vld [vmem:[#allocation8 + $0x2f8] sm:$0xff] }
 0x27f   :  { %4238 = vmatmul.mubr.bf16.vlgmr.msra.gmra.mrb[12].mxu0 %v10316_v41  ;;  %4329 = vmatpush1.bf16.msra.mxu1 %v8141_v55  ;;  %v781_v55 = vld [vmem:[#allocation8 + $0x1d8] sm:$0xff] }
 0x280   :  { %4247 = vmatpush1.bf16.msra.mxu0 %v8395_v60  ;;  %4278 = vmatprep.mubr.bf16.mxu0 %v10340_v3  ;;  %v1040_v60 = vld [vmem:[#allocation8 + $0x9f0] sm:$0xff]  ;;  %v8198_v1 = vcombine.high %v781_v55, %v785_v58  ;;  %v821_v48 = vld [vmem:[#allocation8 + $0x318] sm:$0xff] }
 0x281   :  { %4360 = vmatprep.mubr.bf16.mxu1 %v10318_v42  ;;  %4248 = vmatprep.subr.bf16.mxu0 %v8404_v61  ;;  %v8165_v42 = vcombine.low %v749_v11, %v753_v52  ;;  %v8189_v61 = vcombine.low %v773_v40, %v777_v46  ;;  %v8206_v11 = vcombine.high %v789_v4, %v793_v5  ;;  %v825_v49 = vld [vmem:[#allocation8 + $0x338] sm:$0xff] }
 0x282   :  { %4330 = vmatprep.subr.bf16.mxu1 %v8150_v14  ;;  %v8452_v14 = vcombine.high %v1036_v59, %v1040_v60  ;;  %v8230_v40 = vcombine.high %v813_v56, %v817_v35 }
 0x283   :  { %4331 = vmatpush1.bf16.msra.mxu1 %v8149_v6  ;;  %v1044_v6 = vld [vmem:[#allocation8 + $0xa10] sm:$0xff] }
 0x284   :  { %4249 = vmatpush1.bf16.msra.mxu0 %v8403_v7  ;;  %4332 = vmatprep.subr.bf16.mxu1 %v8158_v8  ;;  %v1048_v7 = vld [vmem:[#allocation8 + $0xa30] sm:$0xff]  ;;  %v8197_v8 = vcombine.low %v781_v55, %v785_v58  ;;  %v8238_v55 = vcombine.high %v821_v48, %v825_v49 }
 0x285   :  { %4250 = vmatprep.subr.bf16.mxu0 %v8412_v9  ;;  %v8451_v9 = vcombine.low %v1036_v59, %v1040_v60  ;;  %v8460_v52 = vcombine.high %v1044_v6, %v1048_v7  ;;  %v829_v59 = vld [vmem:[#allocation8 + $0x358] sm:$0xff] }
 0x286   :  { %v833_v60 = vld [vmem:[#allocation8 + $0x378] sm:$0xff] }
 0x287   :  { %4333 = vmatpush1.bf16.msra.mxu1 %v8157_v21  ;;  %v1052_v21 = vld [vmem:[#allocation8 + $0xa50] sm:$0xff] }
 0x288   :  { %4251 = vmatpush1.bf16.msra.mxu0 %v8411_v22  ;;  %4334 = vmatprep.subr.bf16.mxu1 %v8166_v23  ;;  %v1056_v22 = vld [vmem:[#allocation8 + $0xa70] sm:$0xff]  ;;  %v8205_v23 = vcombine.low %v789_v4, %v793_v5  ;;  %v8246_v4 = vcombine.high %v829_v59, %v833_v60 }
 0x289   :  { %4252 = vmatprep.subr.bf16.mxu0 %v8420_v24  ;;  %v8459_v24 = vcombine.low %v1044_v6, %v1048_v7  ;;  %v8468_v45 = vcombine.high %v1052_v21, %v1056_v22  ;;  %v837_v6 = vld [vmem:[#allocation8 + $0x398] sm:$0xff] }
 0x28a   :  { %v841_v7 = vld [vmem:[#allocation8 + $0x3b8] sm:$0xff] }
 0x28b   :  { %4335 = vmatpush1.bf16.msra.mxu1 %v8165_v42  ;;  %v1060_v42 = vld [vmem:[#allocation8 + $0xa90] sm:$0xff] }
 0x28c   :  { %4253 = vmatpush1.bf16.msra.mxu0 %v8419_v29  ;;  %4336 = vmatprep.subr.bf16.mxu1 %v8174_v30  ;;  %v1064_v29 = vld [vmem:[#allocation8 + $0xab0] sm:$0xff]  ;;  %v8213_v30 = vcombine.low %v797_v12, %v801_v19  ;;  %v8254_v12 = vcombine.high %v837_v6, %v841_v7 }
 0x28d   :  { %4254 = vmatprep.subr.bf16.mxu0 %v8428_v31  ;;  %v8467_v31 = vcombine.low %v1052_v21, %v1056_v22  ;;  %v8476_v34 = vcombine.high %v1060_v42, %v1064_v29  ;;  %v845_v21 = vld [vmem:[#allocation8 + $0x3d8] sm:$0xff] }
 0x28e   :  { %v849_v22 = vld [vmem:[#allocation8 + $0x3f8] sm:$0xff] }
 0x28f   :  { %4337 = vmatpush1.bf16.msra.mxu1 %v8173_v10  ;;  %v1068_v10 = vld [vmem:[#allocation8 + $0xad0] sm:$0xff] }
 0x290   :  { %4255 = vmatpush1.bf16.msra.mxu0 %v8427_v37  ;;  %4338 = vmatprep.subr.bf16.mxu1 %v8182_v38  ;;  %v1072_v37 = vld [vmem:[#allocation8 + $0xaf0] sm:$0xff]  ;;  %v8221_v38 = vcombine.low %v805_v26, %v809_v27  ;;  %v8262_v26 = vcombine.high %v845_v21, %v849_v22 }
 0x291   :  { %4256 = vmatprep.subr.bf16.mxu0 %v8436_v0  ;;  %v8475_v0 = vcombine.low %v1060_v42, %v1064_v29  ;;  %v8484_v46 = vcombine.high %v1068_v10, %v1072_v37  ;;  %v853_v42 = vld [vmem:[#allocation8 + $0x418] sm:$0xff] }
 0x292   :  { %v857_v29 = vld [vmem:[#allocation8 + $0x438] sm:$0xff] }
 0x293   :  { %4339 = vmatpush1.bf16.msra.mxu1 %v8181_v50  ;;  %v1076_v50 = vld [vmem:[#allocation8 + $0xb10] sm:$0xff] }
 0x294   :  { %4257 = vmatpush1.bf16.msra.mxu0 %v8435_v51  ;;  %4340 = vmatprep.subr.bf16.mxu1 %v8190_v53  ;;  %v1080_v51 = vld [vmem:[#allocation8 + $0xb30] sm:$0xff]  ;;  %v8229_v53 = vcombine.low %v813_v56, %v817_v35  ;;  %v8270_v56 = vcombine.high %v853_v42, %v857_v29 }
 0x295   :  { %4258 = vmatprep.subr.bf16.mxu0 %v8444_v54  ;;  %v8483_v54 = vcombine.low %v1068_v10, %v1072_v37  ;;  %v8492_v58 = vcombine.high %v1076_v50, %v1080_v51  ;;  %v1116_v10 = vld [vmem:[#allocation8 + $0xc50] sm:$0xff] }
 0x296   :  { %v1120_v37 = vld [vmem:[#allocation8 + $0xc70] sm:$0xff] }
 0x297   :  { %4341 = vmatpush1.bf16.msra.mxu1 %v8189_v61  ;;  %v1084_v61 = vld [vmem:[#allocation8 + $0xb50] sm:$0xff] }
 0x298   :  { %4259 = vmatpush1.bf16.msra.mxu0 %v8443_v63  ;;  %4342 = vmatprep.subr.bf16.mxu1 %v8198_v1  ;;  %v1088_v63 = vld [vmem:[#allocation8 + $0xb70] sm:$0xff]  ;;  %v8237_v1 = vcombine.low %v821_v48, %v825_v49  ;;  %v8532_v48 = vcombine.high %v1116_v10, %v1120_v37  ;;  %v869_v49 = vld [vmem:[#allocation8 + $0x498] sm:$0xff] }
 0x299   :  { %4260 = vmatprep.subr.bf16.mxu0 %v8452_v14  ;;  %v8491_v14 = vcombine.low %v1076_v50, %v1080_v51  ;;  %v8500_v5 = vcombine.high %v1084_v61, %v1088_v63  ;;  %v873_v50 = vld [vmem:[#allocation8 + $0x4b8] sm:$0xff] }
 0x29b   :  { %4343 = vmatpush1.bf16.msra.mxu1 %v8197_v8  ;;  %v1092_v8 = vld [vmem:[#allocation8 + $0xb90] sm:$0xff] }
 0x29c   :  { %4261 = vmatpush1.bf16.msra.mxu0 %v8451_v9  ;;  %4344 = vmatprep.subr.bf16.mxu1 %v8206_v11  ;;  %v1096_v9 = vld [vmem:[#allocation8 + $0xbb0] sm:$0xff]  ;;  %v8245_v11 = vcombine.low %v829_v59, %v833_v60  ;;  %v8286_v59 = vcombine.high %v869_v49, %v873_v50 }
 0x29d   :  { %4262 = vmatprep.subr.bf16.mxu0 %v8460_v52  ;;  %v8499_v52 = vcombine.low %v1084_v61, %v1088_v63  ;;  %v8508_v19 = vcombine.high %v1092_v8, %v1096_v9  ;;  %v877_v61 = vld [vmem:[#allocation8 + $0x4d8] sm:$0xff] }
 0x29e   :  { %v881_v63 = vld [vmem:[#allocation8 + $0x4f8] sm:$0xff] }
 0x29f   :  { %4345 = vmatpush1.bf16.msra.mxu1 %v8205_v23  ;;  %v1100_v23 = vld [vmem:[#allocation8 + $0xbd0] sm:$0xff] }
 0x2a0   :  { %4263 = vmatpush1.bf16.msra.mxu0 %v8459_v24  ;;  %4346 = vmatprep.subr.bf16.mxu1 %v8214_v25  ;;  %v1104_v24 = vld [vmem:[#allocation8 + $0xbf0] sm:$0xff]  ;;  %v8253_v25 = vcombine.low %v837_v6, %v841_v7  ;;  %v885_v7 = vld [vmem:[#allocation8 + $0x518] sm:$0xff] }
 0x2a1   :  { %4264 = vmatprep.subr.bf16.mxu0 %v8468_v45  ;;  %v8507_v45 = vcombine.low %v1092_v8, %v1096_v9  ;;  %v8516_v27 = vcombine.high %v1100_v23, %v1104_v24  ;;  %v889_v8 = vld [vmem:[#allocation8 + $0x538] sm:$0xff]  ;;  %v1140_v9 = vld [vmem:[#allocation8 + $0xd10] sm:$0xff] }
 0x2a3   :  { %4347 = vmatpush1.bf16.msra.mxu1 %v8213_v30  ;;  %v1108_v30 = vld [vmem:[#allocation8 + $0xc10] sm:$0xff] }
 0x2a4   :  { %4265 = vmatpush1.bf16.msra.mxu0 %v8467_v31  ;;  %4348 = vmatprep.subr.bf16.mxu1 %v8222_v32  ;;  %v1112_v31 = vld [vmem:[#allocation8 + $0xc30] sm:$0xff]  ;;  %v8261_v32 = vcombine.low %v845_v21, %v849_v22  ;;  %v893_v21 = vld [vmem:[#allocation8 + $0x558] sm:$0xff] }
 0x2a5   :  { %4266 = vmatprep.subr.bf16.mxu0 %v8476_v34  ;;  %v8515_v34 = vcombine.low %v1100_v23, %v1104_v24  ;;  %v8524_v35 = vcombine.high %v1108_v30, %v1112_v31  ;;  %v897_v22 = vld [vmem:[#allocation8 + $0x578] sm:$0xff]  ;;  %v10390_v23 = vld [vmem:[#allocation10] sm:$0xff]  ;;  %v1148_v24 = vld [vmem:[#allocation8 + $0xd50] sm:$0xff] }
 0x2a7   :  { %4349 = vmatpush1.bf16.msra.mxu1 %v8221_v38  ;;  %v8269_v38 = vcombine.low %v853_v42, %v857_v29  ;;  %v1239_v42 = vrot.slane %v10390_v23, %v10297_v15 }
 0x2a8   :  { %4267 = vmatpush1.bf16.msra.mxu0 %v8475_v0  ;;  %4350 = vmatprep.subr.bf16.mxu1 %v8230_v40  ;;  %v861_v0 = vld [vmem:[#allocation8 + $0x458] sm:$0xff] }
 0x2a9   :  { %4268 = vmatprep.subr.bf16.mxu0 %v8484_v46  ;;  %v865_v40 = vld [vmem:[#allocation8 + $0x478] sm:$0xff]  ;;  %v8523_v46 = vcombine.low %v1108_v30, %v1112_v31 }
 0x2aa   :  { %v8278_v51 = vcombine.high %v861_v0, %v865_v40  ;;  %v901_v30 = vld [vmem:[#allocation8 + $0x598] sm:$0xff] }
 0x2ab   :  { %4351 = vmatpush1.bf16.msra.mxu1 %v8229_v53  ;;  %v1124_v53 = vld [vmem:[#allocation8 + $0xc90] sm:$0xff]  ;;  %v905_v31 = vld [vmem:[#allocation8 + $0x5b8] sm:$0xff] }
 0x2ac   :  { %4269 = vmatpush1.bf16.msra.mxu0 %v8483_v54  ;;  %4352 = vmatprep.subr.bf16.mxu1 %v8238_v55  ;;  %v1128_v54 = vld [vmem:[#allocation8 + $0xcb0] sm:$0xff]  ;;  %v8277_v55 = vcombine.low %v861_v0, %v865_v40  ;;  %v909_v40 = vld [vmem:[#allocation8 + $0x5d8] sm:$0xff] }
 0x2ad   :  { %4270 = vmatprep.subr.bf16.mxu0 %v8492_v58  ;;  %v8531_v58 = vcombine.low %v1116_v10, %v1120_v37  ;;  %v8540_v60 = vcombine.high %v1124_v53, %v1128_v54  ;;  %v8318_v37 = vcombine.high %v901_v30, %v905_v31 }
 0x2af   :  { %4353 = vmatpush1.bf16.msra.mxu1 %v8237_v1  ;;  %v1136_v1 = vld [vmem:[#allocation8 + $0xcf0] sm:$0xff] }
 0x2b0   :  { %4271 = vmatpush1.bf16.msra.mxu0 %v8491_v14  ;;  %4354 = vmatprep.subr.bf16.mxu1 %v8246_v4  ;;  %v8285_v14 = vcombine.low %v869_v49, %v873_v50  ;;  %v8539_v4 = vcombine.low %v1124_v53, %v1128_v54  ;;  %v1164_v50 = vld [vmem:[#allocation8 + $0xdd0] sm:$0xff] }
 0x2b1   :  { %4272 = vmatprep.subr.bf16.mxu0 %v8500_v5  ;;  %v8294_v5 = vcombine.high %v877_v61, %v881_v63 }
 0x2b3   :  { %4355 = vmatpush1.bf16.msra.mxu1 %v8245_v11  ;;  %v1144_v11 = vld [vmem:[#allocation8 + $0xd30] sm:$0xff] }
 0x2b4   :  { %4273 = vmatpush1.bf16.msra.mxu0 %v8499_v52  ;;  %4356 = vmatprep.subr.bf16.mxu1 %v8254_v12  ;;  %v8302_v12 = vcombine.high %v885_v7, %v889_v8 }
 0x2b5   :  { %4274 = vmatprep.subr.bf16.mxu0 %v8508_v19  ;;  %v8556_v19 = vcombine.high %v1140_v9, %v1144_v11 }
 0x2b7   :  { %4357 = vmatpush1.bf16.msra.mxu1 %v8253_v25  ;;  %v1152_v25 = vld [vmem:[#allocation8 + $0xd70] sm:$0xff] }
 0x2b8   :  { %4275 = vmatpush1.bf16.msra.mxu0 %v8507_v45  ;;  %4358 = vmatprep.subr.bf16.mxu1 %v8262_v26  ;;  %v8301_v45 = vcombine.low %v885_v7, %v889_v8  ;;  %v8555_v26 = vcombine.low %v1140_v9, %v1144_v11  ;;  %v8564_v29 = vcombine.high %v1148_v24, %v1152_v25  ;;  %v925_v8 = vld [vmem:[#allocation8 + $0x658] sm:$0xff]  ;;  %v1180_v11 = vld [vmem:[#allocation8 + $0xe50] sm:$0xff] }
 0x2b9   :  { %4276 = vmatprep.subr.bf16.mxu0 %v8516_v27  ;;  %v8310_v27 = vcombine.high %v893_v21, %v897_v22  ;;  %v8563_v10 = vcombine.low %v1148_v24, %v1152_v25  ;;  %v929_v9 = vld [vmem:[#allocation8 + $0x678] sm:$0xff]  ;;  %v1188_v25 = vld [vmem:[#allocation8 + $0xe90] sm:$0xff] }
 0x2ba   :  { %v937_v24 = vld [vmem:[#allocation8 + $0x6b8] sm:$0xff] }
 0x2bb   :  { %4359 = vmatpush1.bf16.msra.mxu1 %v8261_v32  ;;  %v1243_v32 = vrot.slane %v10390_v23, %v10303_v17 }
 0x2bc   :  { %4277 = vmatpush1.bf16.msra.mxu0 %v8515_v34  ;;  %4369 = vmatprep.subr.bf16.mxu1 %v8270_v56  ;;  %v1156_v34 = vld [vmem:[#allocation8 + $0xd90] sm:$0xff] }
 0x2bd   :  { %4287 = vmatprep.subr.bf16.mxu0 %v8524_v35  ;;  %v1160_v56 = vld [vmem:[#allocation8 + $0xdb0] sm:$0xff]  ;;  %v8309_v35 = vcombine.low %v893_v21, %v897_v22  ;;  %v933_v22 = vld [vmem:[#allocation8 + $0x698] sm:$0xff] }
 0x2be   :  { %4361 = vmatmul.mubr.bf16.vlgmr.msra.gmra.mrb[16].mxu1 %v10320_v43  ;;  %v1132_v43 = vld [vmem:[#allocation8 + $0xcd0] sm:$0xff]  ;;  %v8572_v0 = vcombine.high %v1156_v34, %v1160_v56 }
 0x2bf   :  { %4279 = vmatmul.mubr.bf16.vlgmr.msra.gmra.mrb[12].mxu0 %v10354_v33  ;;  %4370 = vmatpush1.bf16.msra.mxu1 %v8269_v38  ;;  %v8548_v6 = vcombine.high %v1132_v43, %v1136_v1  ;;  %v8547_v52 = vcombine.low %v1132_v43, %v1136_v1  ;;  %v3871_v38 = vadd.f32 %v10378_v62, %v1239_v42  ;;  %v917_v43 = vld [vmem:[#allocation8 + $0x618] sm:$0xff]  ;;  %v1172_v1 = vld [vmem:[#allocation8 + $0xe10] sm:$0xff] }
 0x2c0   :  { %4288 = vmatpush1.bf16.msra.mxu0 %v8523_v46  ;;  %4319 = vmatprep.mubr.bf16.mxu0 %v10357_v39  ;;  %v913_v46 = vld [vmem:[#allocation8 + $0x5f8] sm:$0xff]  ;;  %v8350_v42 = vcombine.high %v933_v22, %v937_v24 }
 0x2c1   :  { %4401 = vmatprep.mubr.bf16.mxu1 %v10322_v44  ;;  %4289 = vmatprep.subr.bf16.mxu0 %v8532_v48  ;;  %v8293_v44 = vcombine.low %v877_v61, %v881_v63  ;;  %v3873_v48 = vadd.f32 %v10380_v2, %v1243_v32  ;;  %v8326_v62 = vcombine.high %v909_v40, %v913_v46  ;;  %v921_v2 = vld [vmem:[#allocation8 + $0x638] sm:$0xff]  ;;  %v1196_v32 = vld [vmem:[#allocation8 + $0xed0] sm:$0xff] }
 0x2c2   :  { %4371 = vmatprep.subr.bf16.mxu1 %v8278_v51  ;;  %v1168_v51 = vld [vmem:[#allocation8 + $0xdf0] sm:$0xff] }
 0x2c3   :  { %4372 = vmatpush1.bf16.msra.mxu1 %v8277_v55  ;;  %v8317_v55 = vcombine.low %v901_v30, %v905_v31  ;;  %v8580_v63 = vcombine.high %v1164_v50, %v1168_v51  ;;  %v941_v30 = vld [vmem:[#allocation8 + $0x6d8] sm:$0xff] }
 0x2c4   :  { %4290 = vmatpush1.bf16.msra.mxu0 %v8531_v58  ;;  %4373 = vmatprep.subr.bf16.mxu1 %v8286_v59  ;;  %v945_v31 = vld [vmem:[#allocation8 + $0x6f8] sm:$0xff] }
 0x2c5   :  { %4291 = vmatprep.subr.bf16.mxu0 %v8540_v60  ;;  %v8571_v60 = vcombine.low %v1156_v34, %v1160_v56  ;;  %v1200_v34 = vld [vmem:[#allocation8 + $0xef0] sm:$0xff]  ;;  %v8349_v56 = vcombine.low %v933_v22, %v937_v24  ;;  %v981_v24 = vld [vmem:[#allocation8 + $0x818] sm:$0xff] }
 0x2c7   :  { %4374 = vmatpush1.bf16.msra.mxu1 %v8285_v14  ;;  %v1176_v14 = vld [vmem:[#allocation8 + $0xe30] sm:$0xff] }
 0x2c8   :  { %4292 = vmatpush1.bf16.msra.mxu0 %v8539_v4  ;;  %4375 = vmatprep.subr.bf16.mxu1 %v8294_v5  ;;  %v8325_v4 = vcombine.low %v909_v40, %v913_v46  ;;  %v8579_v5 = vcombine.low %v1164_v50, %v1168_v51  ;;  %v8588_v7 = vcombine.high %v1172_v1, %v1176_v14  ;;  %v1204_v40 = vld [vmem:[#allocation8 + $0xf10] sm:$0xff] }
 0x2c9   :  { %4293 = vmatprep.subr.bf16.mxu0 %v8548_v6  ;;  %v8334_v6 = vcombine.high %v917_v43, %v921_v2  ;;  %v1208_v46 = vld [vmem:[#allocation8 + $0xf30] sm:$0xff] }
 0x2ca   :  { %v8620_v51 = vcombine.high %v1204_v40, %v1208_v46 }
 0x2cb   :  { %4376 = vmatpush1.bf16.msra.mxu1 %v8293_v44  ;;  %v1184_v44 = vld [vmem:[#allocation8 + $0xe70] sm:$0xff] }
 0x2cc   :  { %4294 = vmatpush1.bf16.msra.mxu0 %v8547_v52  ;;  %4377 = vmatprep.subr.bf16.mxu1 %v8302_v12  ;;  %v8333_v52 = vcombine.low %v917_v43, %v921_v2  ;;  %v8587_v12 = vcombine.low %v1172_v1, %v1176_v14  ;;  %v8596_v21 = vcombine.high %v1180_v11, %v1184_v44  ;;  %v965_v2 = vld [vmem:[#allocation8 + $0x798] sm:$0xff]  ;;  %v1220_v14 = vld [vmem:[#allocation8 + $0xf90] sm:$0xff] }
 0x2cd   :  { %4295 = vmatprep.subr.bf16.mxu0 %v8556_v19  ;;  %v8342_v19 = vcombine.high %v925_v8, %v929_v9  ;;  %v969_v1 = vld [vmem:[#allocation8 + $0x7b8] sm:$0xff] }
 0x2cf   :  { %4378 = vmatpush1.bf16.msra.mxu1 %v8301_v45  ;;  %v1192_v45 = vld [vmem:[#allocation8 + $0xeb0] sm:$0xff] }
 0x2d0   :  { %4296 = vmatpush1.bf16.msra.mxu0 %v8555_v26  ;;  %4379 = vmatprep.subr.bf16.mxu1 %v8310_v27  ;;  %v8341_v26 = vcombine.low %v925_v8, %v929_v9  ;;  %v8595_v27 = vcombine.low %v1180_v11, %v1184_v44  ;;  %v973_v9 = vld [vmem:[#allocation8 + $0x7d8] sm:$0xff]  ;;  %v1228_v44 = vld [vmem:[#allocation8 + $0xfd0] sm:$0xff] }
 0x2d1   :  { %4297 = vmatprep.subr.bf16.mxu0 %v8564_v29  ;;  %v3993_v49 = vpop.f32.mrb[8].mxu0  ;;  %v8604_v29 = vcombine.high %v1188_v25, %v1192_v45  ;;  %v977_v11 = vld [vmem:[#allocation8 + $0x7f8] sm:$0xff] }
 0x2d2   :  { %v10398_v53 = vadd.f32 %v3993_v49, %v3871_v38  ;;  %v3995_v54 = vpop.f32.mrb[9].mxu0  ;;  %v949_v38 = vld [vmem:[#allocation8 + $0x718] sm:$0xff]  ;;  %v8611_v49 = vcombine.low %v1196_v32, %v1200_v34 }
 0x2d3   :  { %4380 = vmatpush1.bf16.msra.mxu1 %v8309_v35  ;;  %v10400_v58 = vadd.f32 %v3995_v54, %v3873_v48  ;;  %v3997_v59 = vpop.f32.mrb[10].mxu0  ;;  %v8603_v35 = vcombine.low %v1188_v25, %v1192_v45  ;;  %v8357_v48 = vcombine.low %v941_v30, %v945_v31  ;;  %v957_v54 = vld [vmem:[#allocation8 + $0x758] sm:$0xff]  ;;  %v8389_v45 = vcombine.low %v973_v9, %v977_v11 }
 0x2d4   :  { %4298 = vmatpush1.bf16.msra.mxu0 %v8563_v10  ;;  %4381 = vmatprep.subr.bf16.mxu1 %v8318_v37  ;;  %v3998_v61 = vpop.f32.mrb[11].mxu0  ;;  %v8358_v10 = vcombine.high %v941_v30, %v945_v31  ;;  %v8612_v37 = vcombine.high %v1196_v32, %v1200_v34  ;;  %v1212_v59 = vld [vmem:[#allocation8 + $0xf50] sm:$0xff]  ;;  %v985_v25 = vld [vmem:[#allocation8 + $0x838] sm:$0xff]  ;;  %v9300_v34 = vld [vmem:[#allocation11] ss:$28 sps:$4 sm:$0xff]  }
 0x2d5   :  { %4299 = vmatprep.subr.bf16.mxu0 %v8572_v0  ;;  %v953_v0 = vld [vmem:[#allocation8 + $0x738] sm:$0xff]  ;;  %v8619_v61 = vcombine.low %v1204_v40, %v1208_v46  ;;  %v4493_v31 = vmax.f32 %v10400_v58, 0.0  ;;  %v8397_v32 = vcombine.low %v981_v24, %v985_v25 }
 0x2d6   :  { %v8366_v50 = vcombine.high %v949_v38, %v953_v0  ;;  %v993_v30 = vld [vmem:[#allocation8 + $0x878] sm:$0xff] }
 0x2d7   :  { %4382 = vmatpush1.bf16.msra.mxu1 %v8317_v55  ;;  %v961_v55 = vld [vmem:[#allocation8 + $0x778] sm:$0xff] }
 0x2d8   :  { %4300 = vmatpush1.bf16.msra.mxu0 %v8571_v60  ;;  %4383 = vmatprep.subr.bf16.mxu1 %v8326_v62  ;;  %v1216_v60 = vld [vmem:[#allocation8 + $0xf70] sm:$0xff]  ;;  %v8365_v62 = vcombine.low %v949_v38, %v953_v0  ;;  %v10404_v38 = vpack.c.bf16 %v4493_v31, %v4493_v31  ;;  %v9303_v58 = vld [vmem:[#allocation11 + $0x38] ss:$28 sps:$4 sm:$0xff]  }
 0x2d9   :  { %4301 = vmatprep.subr.bf16.mxu0 %v8580_v63  ;;  %v8374_v63 = vcombine.high %v957_v54, %v961_v55  ;;  %v8628_v43 = vcombine.high %v1212_v59, %v1216_v60  ;;  %v9308_v46 = vld [vmem:[#allocation11 + $0x74] ss:$28 sps:$4 sm:$0xff]  }
 0x2db   :  { %4384 = vmatpush1.bf16.msra.mxu1 %v8325_v4  ;;  %v1224_v4 = vld [vmem:[#allocation8 + $0xfb0] sm:$0xff] }
 0x2dc   :  { %4302 = vmatpush1.bf16.msra.mxu0 %v8579_v5  ;;  %4385 = vmatprep.subr.bf16.mxu1 %v8334_v6  ;;  %v8373_v5 = vcombine.low %v957_v54, %v961_v55  ;;  %v8627_v6 = vcombine.low %v1212_v59, %v1216_v60  ;;  %v8636_v8 = vcombine.high %v1220_v14, %v1224_v4  ;;  %v9311_v54 = vld [vmem:[#allocation11 + $0xac] ss:$28 sps:$4 sm:$0xff]   ;;  %v1013_v55 = vld [vmem:[#allocation8 + $0x918] sm:$0xff] }
 0x2dd   :  { %4303 = vmatprep.subr.bf16.mxu0 %v8588_v7  ;;  %v8382_v7 = vcombine.high %v965_v2, %v969_v1  ;;  %v9309_v60 = vld [vmem:[#allocation11 + $0xa8] ss:$28 sps:$4 sm:$0xff]  }
 0x2df   :  { %4386 = vmatpush1.bf16.msra.mxu1 %v8333_v52  ;;  %v1232_v52 = vld [vmem:[#allocation8 + $0xff0] sm:$0xff] }
 0x2e0   :  { %4304 = vmatpush1.bf16.msra.mxu0 %v8587_v12  ;;  %4387 = vmatprep.subr.bf16.mxu1 %v8342_v19  ;;  %v8381_v12 = vcombine.low %v965_v2, %v969_v1  ;;  %v8635_v19 = vcombine.low %v1220_v14, %v1224_v4  ;;  %v8644_v22 = vcombine.high %v1228_v44, %v1232_v52  ;;  %v9312_v1 = vld [vmem:[#allocation11 + $0xe0] ss:$28 sps:$4 sm:$0xff]  }
 0x2e1   :  { %4305 = vmatprep.subr.bf16.mxu0 %v8596_v21  ;;  %v8390_v21 = vcombine.high %v973_v9, %v977_v11  ;;  %v9317_v4 = vld [vmem:[#allocation11 + $0x11c] ss:$28 sps:$4 sm:$0xff]   ;;  %v9320_v11 = vld [vmem:[#allocation11 + $0x154] ss:$28 sps:$4 sm:$0xff]  }
 0x2e3   :  { %4388 = vmatpush1.bf16.msra.mxu1 %v8341_v26  ;;  %v8643_v26 = vcombine.low %v1228_v44, %v1232_v52  ;;  %v1037_v44 = vld [vmem:[#allocation8 + $0x9d8] sm:$0xff] }
 0x2e4   :  { %4306 = vmatpush1.bf16.msra.mxu0 %v8595_v27  ;;  %4389 = vmatprep.subr.bf16.mxu1 %v8350_v42  ;;  %v8398_v27 = vcombine.high %v981_v24, %v985_v25  ;;  %v9302_v42 = vld [vmem:[#allocation11 + $0x4] ss:$28 sps:$4 sm:$0xff]   ;;  %v1041_v52 = vld [vmem:[#allocation8 + $0x9f8] sm:$0xff] }
 0x2e5   :  { %4307 = vmatprep.subr.bf16.mxu0 %v8604_v29  ;;  %v989_v29 = vld [vmem:[#allocation8 + $0x858] sm:$0xff] }
 0x2e6   :  { %v8405_v0 = vcombine.low %v989_v29, %v993_v30  ;;  %v1045_v24 = vld [vmem:[#allocation8 + $0xa18] sm:$0xff] }
 0x2e7   :  { %4390 = vmatpush1.bf16.msra.mxu1 %v8349_v56  ;;  %v8406_v56 = vcombine.high %v989_v29, %v993_v30  ;;  %v1049_v25 = vld [vmem:[#allocation8 + $0xa38] sm:$0xff] }
 0x2e8   :  { %4308 = vmatpush1.bf16.msra.mxu0 %v8603_v35  ;;  %4391 = vmatprep.subr.bf16.mxu1 %v8358_v10  ;;  %v997_v35 = vld [vmem:[#allocation8 + $0x898] sm:$0xff]  ;;  %v8461_v31 = vcombine.low %v1045_v24, %v1049_v25 }
 0x2e9   :  { %4309 = vmatprep.subr.bf16.mxu0 %v8612_v37  ;;  %v1001_v10 = vld [vmem:[#allocation8 + $0x8b8] sm:$0xff]  ;;  %v9305_v37 = vld [vmem:[#allocation11 + $0x3c] ss:$28 sps:$4 sm:$0xff]  }
 0x2ea   :  { %v8414_v40 = vcombine.high %v997_v35, %v1001_v10  ;;  %v1053_v29 = vld [vmem:[#allocation8 + $0xa58] sm:$0xff] }
 0x2eb   :  { %4392 = vmatpush1.bf16.msra.mxu1 %v8357_v48  ;;  %v1005_v48 = vld [vmem:[#allocation8 + $0x8d8] sm:$0xff] }
 0x2ec   :  { %4310 = vmatpush1.bf16.msra.mxu0 %v8611_v49  ;;  %4393 = vmatprep.subr.bf16.mxu1 %v8366_v50  ;;  %v1009_v49 = vld [vmem:[#allocation8 + $0x8f8] sm:$0xff] }
 0x2ed   :  { %4311 = vmatprep.subr.bf16.mxu0 %v8620_v51  ;;  %v9306_v50 = vld [vmem:[#allocation11 + $0x70] ss:$28 sps:$4 sm:$0xff]   ;;  %v8422_v51 = vcombine.high %v1005_v48, %v1009_v49  ;;  %v8421_v59 = vcombine.low %v1005_v48, %v1009_v49 }
 0x2ee   :  { %v1057_v30 = vld [vmem:[#allocation8 + $0xa78] sm:$0xff] }
 0x2ef   :  { %4394 = vmatpush1.bf16.msra.mxu1 %v8365_v62  ;;  %v1073_v48 = vld [vmem:[#allocation8 + $0xaf8] sm:$0xff] }
 0x2f0   :  { %4312 = vmatpush1.bf16.msra.mxu0 %v8619_v61  ;;  %4395 = vmatprep.subr.bf16.mxu1 %v8374_v63  ;;  %v9314_v61 = vld [vmem:[#allocation11 + $0xe4] ss:$28 sps:$4 sm:$0xff]   ;;  %v1021_v63 = vld [vmem:[#allocation8 + $0x958] sm:$0xff] }
 0x2f1   :  { %4313 = vmatprep.subr.bf16.mxu0 %v8628_v43  ;;  %v1025_v43 = vld [vmem:[#allocation8 + $0x978] sm:$0xff] }
 0x2f2   :  { %v8438_v14 = vcombine.high %v1021_v63, %v1025_v43 }
 0x2f3   :  { %4396 = vmatpush1.bf16.msra.mxu1 %v8373_v5  ;;  %v1029_v5 = vld [vmem:[#allocation8 + $0x998] sm:$0xff] }
 0x2f4   :  { %4314 = vmatpush1.bf16.msra.mxu0 %v8627_v6  ;;  %4397 = vmatprep.subr.bf16.mxu1 %v8382_v7  ;;  %v1033_v6 = vld [vmem:[#allocation8 + $0x9b8] sm:$0xff]  ;;  %v8437_v7 = vcombine.low %v1021_v63, %v1025_v43 }
 0x2f5   :  { %4315 = vmatprep.subr.bf16.mxu0 %v8636_v8  ;;  %v9315_v8 = vld [vmem:[#allocation11 + $0x118] ss:$28 sps:$4 sm:$0xff]   ;;  %v8446_v9 = vcombine.high %v1029_v5, %v1033_v6 }
 0x2f6   :  { %v1089_v63 = vld [vmem:[#allocation8 + $0xb78] sm:$0xff] }
 0x2f7   :  { %4398 = vmatpush1.bf16.msra.mxu1 %v8381_v12  ;;  %v8445_v12 = vcombine.low %v1029_v5, %v1033_v6  ;;  %v1097_v5 = vld [vmem:[#allocation8 + $0xbb8] sm:$0xff] }
 0x2f8   :  { %4316 = vmatpush1.bf16.msra.mxu0 %v8635_v19  ;;  %4399 = vmatprep.subr.bf16.mxu1 %v8390_v21  ;;  %v9318_v19 = vld [vmem:[#allocation11 + $0x150] ss:$28 sps:$4 sm:$0xff]   ;;  %v8454_v21 = vcombine.high %v1037_v44, %v1041_v52 }
 0x2f9   :  { %4317 = vmatprep.subr.bf16.mxu0 %v8644_v22  ;;  %v9323_v22 = vld [vmem:[#allocation11 + $0x18c] ss:$28 sps:$4 sm:$0xff]  }
 0x2fb   :  { %4400 = vmatpush1.bf16.msra.mxu1 %v8389_v45  ;;  %v8453_v45 = vcombine.low %v1037_v44, %v1041_v52  ;;  %v1105_v44 = vld [vmem:[#allocation8 + $0xbf8] sm:$0xff] }
 0x2fc   :  { %4318 = vmatpush1.bf16.msra.mxu0 %v8643_v26  ;;  %4410 = vmatprep.subr.bf16.mxu1 %v8398_v27  ;;  %v9321_v26 = vld [vmem:[#allocation11 + $0x188] ss:$28 sps:$4 sm:$0xff]   ;;  %v8462_v27 = vcombine.high %v1045_v24, %v1049_v25  ;;  %v1113_v24 = vld [vmem:[#allocation8 + $0xc38] sm:$0xff] }
 0x2fd   :  { %7361 = vmatprep.subr.bf16.mxu0 %v9302_v42  ;;  %v9326_v42 = vld [vmem:[#allocation11 + $0x1c4] ss:$28 sps:$4 sm:$0xff]  }
 0x2fe   :  { %4402 = vmatmul.mubr.bf16.vlgmr.msra.gmra.mrb[16].mxu1 %v10316_v41  ;;  %v8413_v41 = vcombine.low %v997_v35, %v1001_v10  ;;  %v1061_v35 = vld [vmem:[#allocation8 + $0xa98] sm:$0xff] }
 0x2ff   :  { %4320 = vmatmul.mubr.bf16.vlgmr.msra.gmra.mrb[12].mxu0 %v10368_v20  ;;  %4411 = vmatpush1.bf16.msra.mxu1 %v8397_v32  ;;  %v9324_v32 = vld [vmem:[#allocation11 + $0x1c0] ss:$28 sps:$4 sm:$0xff]   ;;  %v1065_v10 = vld [vmem:[#allocation8 + $0xab8] sm:$0xff] }
 0x300   :  { %4442 = vmatprep.mubr.bf16.mxu1 %v10340_v3  ;;  %7362 = vmatpush1.bf16.msra.mxu0 %v9300_v34  ;;  %v1017_v3 = vld [vmem:[#allocation8 + $0x938] sm:$0xff]  ;;  %v8470_v34 = vcombine.high %v1053_v29, %v1057_v30  ;;  %v8477_v49 = vcombine.low %v1061_v35, %v1065_v10 }
 0x301   :  { %7393 = vmatprep.mubr.bf16.mxu0 %v10404_v38  ;;  %4412 = vmatprep.subr.bf16.mxu1 %v8406_v56  ;;  %v8430_v62 = vcombine.high %v1013_v55, %v1017_v3  ;;  %v8429_v2 = vcombine.low %v1013_v55, %v1017_v3  ;;  %v9329_v56 = vld [vmem:[#allocation11 + $0x1fc] ss:$28 sps:$4 sm:$0xff]   ;;  %v1081_v55 = vld [vmem:[#allocation8 + $0xb38] sm:$0xff] }
 0x302   :  { %7363 = vmatprep.subr.bf16.mxu0 %v9305_v37  ;;  %v8469_v37 = vcombine.low %v1053_v29, %v1057_v30  ;;  %v1117_v29 = vld [vmem:[#allocation8 + $0xc58] sm:$0xff] }
 0x303   :  { %4413 = vmatpush1.bf16.msra.mxu1 %v8405_v0  ;;  %v9327_v0 = vld [vmem:[#allocation11 + $0x1f8] ss:$28 sps:$4 sm:$0xff]  }
 0x304   :  { %7364 = vmatpush1.bf16.msra.mxu0 %v9303_v58  ;;  %4414 = vmatprep.subr.bf16.mxu1 %v8414_v40  ;;  %v8478_v58 = vcombine.high %v1061_v35, %v1065_v10  ;;  %v9332_v40 = vld [vmem:[#allocation11 + $0x234] ss:$28 sps:$4 sm:$0xff]   ;;  %v9353_v35 = vld [vmem:[#allocation11 + $0x3bc] ss:$28 sps:$4 sm:$0xff]  }
 0x305   :  { %7365 = vmatprep.subr.bf16.mxu0 %v9308_v46  ;;  %v1069_v46 = vld [vmem:[#allocation8 + $0xad8] sm:$0xff] }
 0x306   :  { %v8485_v3 = vcombine.low %v1069_v46, %v1073_v48  ;;  %v1121_v30 = vld [vmem:[#allocation8 + $0xc78] sm:$0xff] }
 0x307   :  { %4415 = vmatpush1.bf16.msra.mxu1 %v8413_v41  ;;  %v9330_v41 = vld [vmem:[#allocation11 + $0x230] ss:$28 sps:$4 sm:$0xff]  }
 0x308   :  { %7366 = vmatpush1.bf16.msra.mxu0 %v9306_v50  ;;  %4416 = vmatprep.subr.bf16.mxu1 %v8422_v51  ;;  %v8486_v50 = vcombine.high %v1069_v46, %v1073_v48  ;;  %v9335_v51 = vld [vmem:[#allocation11 + $0x26c] ss:$28 sps:$4 sm:$0xff]   ;;  %v1125_v10 = vld [vmem:[#allocation8 + $0xc98] sm:$0xff] }
 0x309   :  { %7367 = vmatprep.subr.bf16.mxu0 %v9311_v54  ;;  %v1077_v54 = vld [vmem:[#allocation8 + $0xb18] sm:$0xff] }
 0x30a   :  { %v8493_v43 = vcombine.low %v1077_v54, %v1081_v55  ;;  %v1133_v46 = vld [vmem:[#allocation8 + $0xcd8] sm:$0xff] }
 0x30b   :  { %4417 = vmatpush1.bf16.msra.mxu1 %v8421_v59  ;;  %v9333_v59 = vld [vmem:[#allocation11 + $0x268] ss:$28 sps:$4 sm:$0xff]   ;;  %v1137_v48 = vld [vmem:[#allocation8 + $0xcf8] sm:$0xff] }
 0x30c   :  { %7368 = vmatpush1.bf16.msra.mxu0 %v9309_v60  ;;  %4418 = vmatprep.subr.bf16.mxu1 %v8430_v62  ;;  %v8494_v60 = vcombine.high %v1077_v54, %v1081_v55  ;;  %v9338_v62 = vld [vmem:[#allocation11 + $0x2a4] ss:$28 sps:$4 sm:$0xff]   ;;  %v1145_v54 = vld [vmem:[#allocation8 + $0xd38] sm:$0xff] }
 0x30d   :  { %7369 = vmatprep.subr.bf16.mxu0 %v9314_v61  ;;  %v1085_v61 = vld [vmem:[#allocation8 + $0xb58] sm:$0xff]  ;;  %v9357_v55 = vld [vmem:[#allocation11 + $0x428] ss:$28 sps:$4 sm:$0xff]  }
 0x30e   :  { %v8501_v6 = vcombine.low %v1085_v61, %v1089_v63 }
 0x30f   :  { %4419 = vmatpush1.bf16.msra.mxu1 %v8429_v2  ;;  %v9336_v2 = vld [vmem:[#allocation11 + $0x2a0] ss:$28 sps:$4 sm:$0xff]  }
 0x310   :  { %7370 = vmatpush1.bf16.msra.mxu0 %v9312_v1  ;;  %4420 = vmatprep.subr.bf16.mxu1 %v8438_v14  ;;  %v8502_v1 = vcombine.high %v1085_v61, %v1089_v63  ;;  %v9341_v14 = vld [vmem:[#allocation11 + $0x2dc] ss:$28 sps:$4 sm:$0xff]  }
 0x311   :  { %7371 = vmatprep.subr.bf16.mxu0 %v9317_v4  ;;  %v1093_v4 = vld [vmem:[#allocation8 + $0xb98] sm:$0xff]  ;;  %v9360_v63 = vld [vmem:[#allocation11 + $0x460] ss:$28 sps:$4 sm:$0xff]  }
 0x312   :  { %v8509_v52 = vcombine.low %v1093_v4, %v1097_v5 }
 0x313   :  { %4421 = vmatpush1.bf16.msra.mxu1 %v8437_v7  ;;  %v9339_v7 = vld [vmem:[#allocation11 + $0x2d8] ss:$28 sps:$4 sm:$0xff]  }
 0x314   :  { %7372 = vmatpush1.bf16.msra.mxu0 %v9315_v8  ;;  %4422 = vmatprep.subr.bf16.mxu1 %v8446_v9  ;;  %v8510_v8 = vcombine.high %v1093_v4, %v1097_v5  ;;  %v9344_v9 = vld [vmem:[#allocation11 + $0x314] ss:$28 sps:$4 sm:$0xff]   ;;  %v1251_v4 = vrot.slane %v10390_v23, %v10306_v18 }
 0x315   :  { %7373 = vmatprep.subr.bf16.mxu0 %v9320_v11  ;;  %v1101_v11 = vld [vmem:[#allocation8 + $0xbd8] sm:$0xff] }
 0x316   :  { %v8517_v25 = vcombine.low %v1101_v11, %v1105_v44 }
 0x317   :  { %4423 = vmatpush1.bf16.msra.mxu1 %v8445_v12  ;;  %v9342_v12 = vld [vmem:[#allocation11 + $0x310] ss:$28 sps:$4 sm:$0xff]  }
 0x318   :  { %7374 = vmatpush1.bf16.msra.mxu0 %v9318_v19  ;;  %4424 = vmatprep.subr.bf16.mxu1 %v8454_v21  ;;  %v8518_v19 = vcombine.high %v1101_v11, %v1105_v44  ;;  %v9347_v21 = vld [vmem:[#allocation11 + $0x34c] ss:$28 sps:$4 sm:$0xff]   ;;  %v1165_v11 = vld [vmem:[#allocation8 + $0xdd8] sm:$0xff] }
 0x319   :  { %7375 = vmatprep.subr.bf16.mxu0 %v9323_v22  ;;  %v1109_v22 = vld [vmem:[#allocation8 + $0xc18] sm:$0xff] }
 0x31a   :  { %v1169_v44 = vld [vmem:[#allocation8 + $0xdf8] sm:$0xff] }
 0x31b   :  { %4425 = vmatpush1.bf16.msra.mxu1 %v8453_v45  ;;  %v9345_v45 = vld [vmem:[#allocation11 + $0x348] ss:$28 sps:$4 sm:$0xff]  }
 0x31c   :  { %7376 = vmatpush1.bf16.msra.mxu0 %v9321_v26  ;;  %4426 = vmatprep.subr.bf16.mxu1 %v8462_v27  ;;  %v8526_v26 = vcombine.high %v1109_v22, %v1113_v24  ;;  %v4492_v27 = vmax.f32 %v10398_v53, 0.0  ;;  %v8533_v53 = vcombine.low %v1117_v29, %v1121_v30 }
 0x31d   :  { %7377 = vmatprep.subr.bf16.mxu0 %v9326_v42  ;;  %v9350_v42 = vld [vmem:[#allocation11 + $0x384] ss:$28 sps:$4 sm:$0xff]  }
 0x31f   :  { %4427 = vmatpush1.bf16.msra.mxu1 %v8461_v31  ;;  %v8525_v31 = vcombine.low %v1109_v22, %v1113_v24  ;;  %v9366_v24 = vld [vmem:[#allocation11 + $0x4d0] ss:$28 sps:$4 sm:$0xff]  }
 0x320   :  { %7378 = vmatpush1.bf16.msra.mxu0 %v9324_v32  ;;  %4428 = vmatprep.subr.bf16.mxu1 %v8470_v34  ;;  %v9348_v32 = vld [vmem:[#allocation11 + $0x380] ss:$28 sps:$4 sm:$0xff]   ;;  %v10410_v34 = vpack.c.bf16 %v4492_v27, %v4492_v27  ;;  %v1173_v27 = vld [vmem:[#allocation8 + $0xe18] sm:$0xff] }
 0x321   :  { %7379 = vmatprep.subr.bf16.mxu0 %v9329_v56  ;;  %v8534_v56 = vcombine.high %v1117_v29, %v1121_v30  ;;  %v8581_v30 = vcombine.low %v1165_v11, %v1169_v44 }
 0x323   :  { %4429 = vmatpush1.bf16.msra.mxu1 %v8469_v37  ;;  %v1129_v37 = vld [vmem:[#allocation8 + $0xcb8] sm:$0xff] }
 0x324   :  { %7380 = vmatpush1.bf16.msra.mxu0 %v9327_v0  ;;  %4430 = vmatprep.subr.bf16.mxu1 %v8478_v58  ;;  %v9351_v0 = vld [vmem:[#allocation11 + $0x3b8] ss:$28 sps:$4 sm:$0xff]   ;;  %v8542_v58 = vcombine.high %v1125_v10, %v1129_v37 }
 0x325   :  { %7381 = vmatprep.subr.bf16.mxu0 %v9332_v40  ;;  %v9356_v40 = vld [vmem:[#allocation11 + $0x3f4] ss:$28 sps:$4 sm:$0xff]  }
 0x327   :  { %4431 = vmatpush1.bf16.msra.mxu1 %v8477_v49  ;;  %v8541_v49 = vcombine.low %v1125_v10, %v1129_v37  ;;  %v1185_v10 = vld [vmem:[#allocation8 + $0xe78] sm:$0xff] }
 0x328   :  { %7382 = vmatpush1.bf16.msra.mxu0 %v9330_v41  ;;  %4432 = vmatprep.subr.bf16.mxu1 %v8486_v50  ;;  %v9354_v41 = vld [vmem:[#allocation11 + $0x3f0] ss:$28 sps:$4 sm:$0xff]  }
 0x329   :  { %7383 = vmatprep.subr.bf16.mxu0 %v9335_v51  ;;  %v9359_v50 = vld [vmem:[#allocation11 + $0x42c] ss:$28 sps:$4 sm:$0xff]   ;;  %v1141_v51 = vld [vmem:[#allocation8 + $0xd18] sm:$0xff] }
 0x32a   :  { %v8557_v61 = vcombine.low %v1141_v51, %v1145_v54 }
 0x32b   :  { %4433 = vmatpush1.bf16.msra.mxu1 %v8485_v3  ;;  %v8558_v3 = vcombine.high %v1141_v51, %v1145_v54  ;;  %v1201_v51 = vld [vmem:[#allocation8 + $0xef8] sm:$0xff] }
 0x32c   :  { %7384 = vmatpush1.bf16.msra.mxu0 %v9333_v59  ;;  %4434 = vmatprep.subr.bf16.mxu1 %v8494_v60  ;;  %v9362_v59 = vld [vmem:[#allocation11 + $0x464] ss:$28 sps:$4 sm:$0xff]   ;;  %v1149_v60 = vld [vmem:[#allocation8 + $0xd58] sm:$0xff] }
 0x32d   :  { %7385 = vmatprep.subr.bf16.mxu0 %v9338_v62  ;;  %v1153_v62 = vld [vmem:[#allocation8 + $0xd78] sm:$0xff] }
 0x32e   :  { %v8565_v5 = vcombine.low %v1149_v60, %v1153_v62 }
 0x32f   :  { %4435 = vmatpush1.bf16.msra.mxu1 %v8493_v43  ;;  %v8566_v43 = vcombine.high %v1149_v60, %v1153_v62  ;;  %v1209_v60 = vld [vmem:[#allocation8 + $0xf38] sm:$0xff] }
 0x330   :  { %7386 = vmatpush1.bf16.msra.mxu0 %v9336_v2  ;;  %4436 = vmatprep.subr.bf16.mxu1 %v8502_v1  ;;  %v9365_v2 = vld [vmem:[#allocation11 + $0x49c] ss:$28 sps:$4 sm:$0xff]   ;;  %v1157_v1 = vld [vmem:[#allocation8 + $0xd98] sm:$0xff] }
 0x331   :  { %7387 = vmatprep.subr.bf16.mxu0 %v9341_v14  ;;  %v1161_v14 = vld [vmem:[#allocation8 + $0xdb8] sm:$0xff] }
 0x333   :  { %4437 = vmatpush1.bf16.msra.mxu1 %v8501_v6  ;;  %v9363_v6 = vld [vmem:[#allocation11 + $0x498] ss:$28 sps:$4 sm:$0xff]  }
 0x334   :  { %7388 = vmatpush1.bf16.msra.mxu0 %v9339_v7  ;;  %4438 = vmatprep.subr.bf16.mxu1 %v8510_v8  ;;  %v8574_v7 = vcombine.high %v1157_v1, %v1161_v14 }
 0x335   :  { %7389 = vmatprep.subr.bf16.mxu0 %v9344_v9  ;;  %v9368_v9 = vld [vmem:[#allocation11 + $0x4d4] ss:$28 sps:$4 sm:$0xff]  }
 0x337   :  { %4439 = vmatpush1.bf16.msra.mxu1 %v8509_v52 }
 0x338   :  { %7390 = vmatpush1.bf16.msra.mxu0 %v9342_v12  ;;  %4440 = vmatprep.subr.bf16.mxu1 %v8518_v19 }
 0x339   :  { %7391 = vmatprep.subr.bf16.mxu0 %v9347_v21  ;;  %v8573_v21 = vcombine.low %v1157_v1, %v1161_v14  ;;  %v1217_v1 = vld [vmem:[#allocation8 + $0xf78] sm:$0xff] }
 0x33b   :  { %4441 = vmatpush1.bf16.msra.mxu1 %v8517_v25  ;;  %v8582_v25 = vcombine.high %v1165_v11, %v1169_v44  ;;  %v9387_v44 = vld [vmem:[#allocation11 + $0x658] ss:$28 sps:$4 sm:$0xff]  }
 0x33c   :  { %7392 = vmatpush1.bf16.msra.mxu0 %v9345_v45  ;;  %4451 = vmatprep.subr.bf16.mxu1 %v8526_v26  ;;  %v9371_v26 = vld [vmem:[#allocation11 + $0x50c] ss:$28 sps:$4 sm:$0xff]  }
 0x33d   :  { %7402 = vmatprep.subr.bf16.mxu0 %v9350_v42  ;;  %v1177_v42 = vld [vmem:[#allocation8 + $0xe38] sm:$0xff] }
 0x33e   :  { %4443 = vmatmul.mubr.bf16.vlgmr.msra.gmra.mrb[16].mxu1 %v10354_v33  ;;  %v8550_v33 = vcombine.high %v1133_v46, %v1137_v48  ;;  %v8589_v37 = vcombine.low %v1173_v27, %v1177_v42 }
 0x33f   :  { %7394 = vmatmul.mubr.bf16.vlgmr.msra.gmra.mrb[16].mxu0 %v10410_v34  ;;  %4452 = vmatpush1.bf16.msra.mxu1 %v8525_v31  ;;  %v9369_v31 = vld [vmem:[#allocation11 + $0x508] ss:$28 sps:$4 sm:$0xff]  }
 0x340   :  { %4483 = vmatprep.mubr.bf16.mxu1 %v10357_v39  ;;  %7403 = vmatpush1.bf16.msra.mxu0 %v9348_v32  ;;  %v8549_v39 = vcombine.low %v1133_v46, %v1137_v48  ;;  %v8590_v32 = vcombine.high %v1173_v27, %v1177_v42  ;;  %v1193_v46 = vld [vmem:[#allocation8 + $0xeb8] sm:$0xff]  ;;  %v9395_v27 = vld [vmem:[#allocation11 + $0x6cc] ss:$28 sps:$4 sm:$0xff]  }
 0x341   :  { %4453 = vmatprep.subr.bf16.mxu1 %v8534_v56  ;;  %7404 = vmatprep.subr.bf16.mxu0 %v9353_v35  ;;  %v9374_v56 = vld [vmem:[#allocation11 + $0x544] ss:$28 sps:$4 sm:$0xff]   ;;  %v1181_v35 = vld [vmem:[#allocation8 + $0xe58] sm:$0xff] }
 0x342   :  { %v8597_v48 = vcombine.low %v1181_v35, %v1185_v10 }
 0x343   :  { %4454 = vmatpush1.bf16.msra.mxu1 %v8533_v53  ;;  %v9372_v53 = vld [vmem:[#allocation11 + $0x540] ss:$28 sps:$4 sm:$0xff]  }
 0x344   :  { %7405 = vmatpush1.bf16.msra.mxu0 %v9351_v0  ;;  %4455 = vmatprep.subr.bf16.mxu1 %v8542_v58  ;;  %v8598_v0 = vcombine.high %v1181_v35, %v1185_v10  ;;  %v9377_v58 = vld [vmem:[#allocation11 + $0x57c] ss:$28 sps:$4 sm:$0xff]   ;;  %v9401_v35 = vld [vmem:[#allocation11 + $0x44] ss:$28 sps:$4 sm:$0xff]  }
 0x345   :  { %7406 = vmatprep.subr.bf16.mxu0 %v9356_v40  ;;  %v1189_v40 = vld [vmem:[#allocation8 + $0xe98] sm:$0xff] }
 0x346   :  { %v8605_v54 = vcombine.low %v1189_v40, %v1193_v46 }
 0x347   :  { %4456 = vmatpush1.bf16.msra.mxu1 %v8541_v49  ;;  %v9375_v49 = vld [vmem:[#allocation11 + $0x578] ss:$28 sps:$4 sm:$0xff]  }
 0x348   :  { %7407 = vmatpush1.bf16.msra.mxu0 %v9354_v41  ;;  %4457 = vmatprep.subr.bf16.mxu1 %v8550_v33  ;;  %v8606_v41 = vcombine.high %v1189_v40, %v1193_v46  ;;  %v9380_v33 = vld [vmem:[#allocation11 + $0x5b4] ss:$28 sps:$4 sm:$0xff]  }
 0x349   :  { %7408 = vmatprep.subr.bf16.mxu0 %v9359_v50  ;;  %v1197_v50 = vld [vmem:[#allocation8 + $0xed8] sm:$0xff] }
 0x34a   :  { %v8613_v62 = vcombine.low %v1197_v50, %v1201_v51  ;;  %v9431_v40 = vld [vmem:[#allocation11 + $0x774] ss:$28 sps:$4 sm:$0xff]  }
 0x34b   :  { %4458 = vmatpush1.bf16.msra.mxu1 %v8549_v39  ;;  %v9378_v39 = vld [vmem:[#allocation11 + $0x5b0] ss:$28 sps:$4 sm:$0xff]   ;;  %v9402_v46 = vld [vmem:[#allocation11 + $0x78] ss:$28 sps:$4 sm:$0xff]  }
 0x34c   :  { %7409 = vmatpush1.bf16.msra.mxu0 %v9357_v55  ;;  %4459 = vmatprep.subr.bf16.mxu1 %v8558_v3  ;;  %v8614_v55 = vcombine.high %v1197_v50, %v1201_v51  ;;  %v9383_v3 = vld [vmem:[#allocation11 + $0x5ec] ss:$28 sps:$4 sm:$0xff]   ;;  %v9443_v51 = vld [vmem:[#allocation11 + $0x7e4] ss:$28 sps:$4 sm:$0xff]  }
 0x34d   :  { %7410 = vmatprep.subr.bf16.mxu0 %v9362_v59  ;;  %v1205_v59 = vld [vmem:[#allocation8 + $0xf18] sm:$0xff]  ;;  %v9435_v50 = vld [vmem:[#allocation11 + $0x7a8] ss:$28 sps:$4 sm:$0xff]  }
 0x34e   :  { %v8621_v14 = vcombine.low %v1205_v59, %v1209_v60 }
 0x34f   :  { %4460 = vmatpush1.bf16.msra.mxu1 %v8557_v61  ;;  %v9381_v61 = vld [vmem:[#allocation11 + $0x5e8] ss:$28 sps:$4 sm:$0xff]  }
 0x350   :  { %7411 = vmatpush1.bf16.msra.mxu0 %v9360_v63  ;;  %4461 = vmatprep.subr.bf16.mxu1 %v8566_v43  ;;  %v8622_v63 = vcombine.high %v1205_v59, %v1209_v60  ;;  %v9386_v43 = vld [vmem:[#allocation11 + $0x624] ss:$28 sps:$4 sm:$0xff]   ;;  %v9416_v60 = vld [vmem:[#allocation11 + $0x15c] ss:$28 sps:$4 sm:$0xff]  }
 0x351   :  { %v10417_v8 = vpop.f32.mrb[12].mxu1  ;;  %7412 = vmatprep.subr.bf16.mxu0 %v9365_v2  ;;  %v1213_v2 = vld [vmem:[#allocation8 + $0xf58] sm:$0xff]  ;;  %v9411_v59 = vld [vmem:[#allocation11 + $0x120] ss:$28 sps:$4 sm:$0xff]  }
 0x352   :  { %v4159_v52 = vpop.f32.mrb[13].mxu1  ;;  %v8629_v11 = vcombine.low %v1213_v2, %v1217_v1 }
 0x353   :  { %v9196_v12 = vadd.f32 %v4159_v52, %v1251_v4  ;;  %v4161_v19 = vpop.f32.mrb[14].mxu1  ;;  %4462 = vmatpush1.bf16.msra.mxu1 %v8565_v5  ;;  %v9384_v4 = vld [vmem:[#allocation11 + $0x620] ss:$28 sps:$4 sm:$0xff]   ;;  %v8630_v5 = vcombine.high %v1213_v2, %v1217_v1  ;;  %v9453_v2 = vld [vmem:[#allocation11 + $0x850] ss:$28 sps:$4 sm:$0xff]  }
 0x354   :  { %7413 = vmatpush1.bf16.msra.mxu0 %v9363_v6  ;;  %v4162_v22 = vpop.f32.mrb[15].mxu1  ;;  %4463 = vmatprep.subr.bf16.mxu1 %v8574_v7  ;;  %v9389_v6 = vld [vmem:[#allocation11 + $0x65c] ss:$28 sps:$4 sm:$0xff]   ;;  %v1221_v7 = vld [vmem:[#allocation8 + $0xf98] sm:$0xff]  ;;  %v9461_v1 = vld [vmem:[#allocation11 + $0x88c] ss:$28 sps:$4 sm:$0xff]  }
 0x355   :  { %v4495_v45 = vmax.f32 %v9196_v12, 0.0  ;;  %7414 = vmatprep.subr.bf16.mxu0 %v9368_v9  ;;  %v1225_v9 = vld [vmem:[#allocation8 + $0xfb8] sm:$0xff]  ;;  %v1247_v12 = vrot.slane %v10390_v23, %v10300_v16  ;;  %v9398_v23 = vld [vmem:[#allocation11 + $0xc] ss:$28 sps:$4 sm:$0xff]  }
 0x356   :  { %v8638_v52 = vcombine.high %v1221_v7, %v1225_v9  ;;  %v9392_v19 = vld [vmem:[#allocation11 + $0x694] ss:$28 sps:$4 sm:$0xff]  }
 0x357   :  { %v10419_v29 = vpack.c.bf16 %v4495_v45, %v4495_v45  ;;  %4464 = vmatpush1.bf16.msra.mxu1 %v8573_v21  ;;  %v1229_v21 = vld [vmem:[#allocation8 + $0xfd8] sm:$0xff] }
 0x358   :  { %7415 = vmatpush1.bf16.msra.mxu0 %v9366_v24  ;;  %4465 = vmatprep.subr.bf16.mxu1 %v8582_v25  ;;  %v1233_v22 = vld [vmem:[#allocation8 + $0xff8] sm:$0xff]  ;;  %v8637_v24 = vcombine.low %v1221_v7, %v1225_v9  ;;  %v9426_v7 = vld [vmem:[#allocation11 + $0x1c8] ss:$28 sps:$4 sm:$0xff]  }
 0x359   :  { %7434 = vmatprep.mubr.bf16.mxu0 %v10419_v29  ;;  %7416 = vmatprep.subr.bf16.mxu0 %v9371_v26  ;;  %v9390_v25 = vld [vmem:[#allocation11 + $0x690] ss:$28 sps:$4 sm:$0xff]   ;;  %v8646_v45 = vcombine.high %v1229_v21, %v1233_v22  ;;  %v9195_v26 = vadd.f32 %v10417_v8, %v1247_v12  ;;  %v8645_v42 = vcombine.low %v1229_v21, %v1233_v22  ;;  %v9425_v8 = vld [vmem:[#allocation11 + $0x73c] ss:$28 sps:$4 sm:$0xff]   ;;  %v9434_v9 = vld [vmem:[#allocation11 + $0x204] ss:$28 sps:$4 sm:$0xff]  }
 0x35a   :  { %v9440_v12 = vld [vmem:[#allocation11 + $0x23c] ss:$28 sps:$4 sm:$0xff]   ;;  %v9479_v21 = vld [vmem:[#allocation11 + $0x934] ss:$28 sps:$4 sm:$0xff]  }
 0x35b   :  { %4466 = vmatpush1.bf16.msra.mxu1 %v8581_v30  ;;  %v9393_v30 = vld [vmem:[#allocation11 + $0x6c8] ss:$28 sps:$4 sm:$0xff]   ;;  %v9438_v22 = vld [vmem:[#allocation11 + $0x238] ss:$28 sps:$4 sm:$0xff]  }
 0x35c   :  { %7417 = vmatpush1.bf16.msra.mxu0 %v9369_v31  ;;  %4467 = vmatprep.subr.bf16.mxu1 %v8590_v32  ;;  %v4494_v31 = vmax.f32 %v9195_v26, 0.0  ;;  %v9419_v32 = vld [vmem:[#allocation11 + $0x704] ss:$28 sps:$4 sm:$0xff]   ;;  %v9444_v26 = vld [vmem:[#allocation11 + $0x270] ss:$28 sps:$4 sm:$0xff]  }
 0x35d   :  { %7418 = vmatprep.subr.bf16.mxu0 %v9374_v56  ;;  %v9396_v56 = vld [vmem:[#allocation11 + $0x8] ss:$28 sps:$4 sm:$0xff]  }
 0x35e   :  { %v10425_v10 = vpack.c.bf16 %v4494_v31, %v4494_v31  ;;  %v9458_v31 = vld [vmem:[#allocation11 + $0x2e4] ss:$28 sps:$4 sm:$0xff]  }
 0x35f   :  { %4468 = vmatpush1.bf16.msra.mxu1 %v8589_v37  ;;  %v9417_v37 = vld [vmem:[#allocation11 + $0x700] ss:$28 sps:$4 sm:$0xff]  }
 0x360   :  { %7419 = vmatpush1.bf16.msra.mxu0 %v9372_v53  ;;  %4469 = vmatprep.subr.bf16.mxu1 %v8598_v0  ;;  %v9399_v53 = vld [vmem:[#allocation11 + $0x40] ss:$28 sps:$4 sm:$0xff]  }
 0x361   :  { %7420 = vmatprep.subr.bf16.mxu0 %v9377_v58  ;;  %v9404_v0 = vld [vmem:[#allocation11 + $0x7c] ss:$28 sps:$4 sm:$0xff]  }
 0x362   :  { %v9423_v58 = vld [vmem:[#allocation11 + $0x738] ss:$28 sps:$4 sm:$0xff]  }
 0x363   :  { %4470 = vmatpush1.bf16.msra.mxu1 %v8597_v48  ;;  %v9407_v48 = vld [vmem:[#allocation11 + $0xb4] ss:$28 sps:$4 sm:$0xff]  }
 0x364   :  { %7421 = vmatpush1.bf16.msra.mxu0 %v9375_v49  ;;  %4471 = vmatprep.subr.bf16.mxu1 %v8606_v41  ;;  %v9429_v49 = vld [vmem:[#allocation11 + $0x770] ss:$28 sps:$4 sm:$0xff]  }
 0x365   :  { %7422 = vmatprep.subr.bf16.mxu0 %v9380_v33  ;;  %v9405_v41 = vld [vmem:[#allocation11 + $0xb0] ss:$28 sps:$4 sm:$0xff]  }
 0x366   :  { %v9410_v33 = vld [vmem:[#allocation11 + $0xec] ss:$28 sps:$4 sm:$0xff]  }
 0x367   :  { %4472 = vmatpush1.bf16.msra.mxu1 %v8605_v54  ;;  %v9408_v54 = vld [vmem:[#allocation11 + $0xe8] ss:$28 sps:$4 sm:$0xff]  }
 0x368   :  { %7423 = vmatpush1.bf16.msra.mxu0 %v9378_v39  ;;  %4473 = vmatprep.subr.bf16.mxu1 %v8614_v55  ;;  %v9413_v39 = vld [vmem:[#allocation11 + $0x124] ss:$28 sps:$4 sm:$0xff]  }
 0x369   :  { %7424 = vmatprep.subr.bf16.mxu0 %v9383_v3  ;;  %v9441_v55 = vld [vmem:[#allocation11 + $0x7e0] ss:$28 sps:$4 sm:$0xff]  }
 0x36a   :  { %v9449_v3 = vld [vmem:[#allocation11 + $0x81c] ss:$28 sps:$4 sm:$0xff]  }
 0x36b   :  { %4474 = vmatpush1.bf16.msra.mxu1 %v8613_v62  ;;  %v9447_v62 = vld [vmem:[#allocation11 + $0x818] ss:$28 sps:$4 sm:$0xff]  }
 0x36c   :  { %7425 = vmatpush1.bf16.msra.mxu0 %v9381_v61  ;;  %4475 = vmatprep.subr.bf16.mxu1 %v8622_v63  ;;  %v9455_v61 = vld [vmem:[#allocation11 + $0x854] ss:$28 sps:$4 sm:$0xff]  }
 0x36d   :  { %7426 = vmatprep.subr.bf16.mxu0 %v9386_v43  ;;  %v9414_v63 = vld [vmem:[#allocation11 + $0x158] ss:$28 sps:$4 sm:$0xff]  }
 0x36e   :  { %v9422_v43 = vld [vmem:[#allocation11 + $0x194] ss:$28 sps:$4 sm:$0xff]  }
 0x36f   :  { %4476 = vmatpush1.bf16.msra.mxu1 %v8621_v14  ;;  %v9420_v14 = vld [vmem:[#allocation11 + $0x190] ss:$28 sps:$4 sm:$0xff]  }
 0x370   :  { %7427 = vmatpush1.bf16.msra.mxu0 %v9384_v4  ;;  %4477 = vmatprep.subr.bf16.mxu1 %v8630_v5  ;;  %v9428_v4 = vld [vmem:[#allocation11 + $0x1cc] ss:$28 sps:$4 sm:$0xff]  }
 0x371   :  { %7428 = vmatprep.subr.bf16.mxu0 %v9389_v6  ;;  %v9459_v5 = vld [vmem:[#allocation11 + $0x888] ss:$28 sps:$4 sm:$0xff]  }
 0x372   :  { %v9467_v6 = vld [vmem:[#allocation11 + $0x8c4] ss:$28 sps:$4 sm:$0xff]  }
 0x373   :  { %4478 = vmatpush1.bf16.msra.mxu1 %v8629_v11  ;;  %v9465_v11 = vld [vmem:[#allocation11 + $0x8c0] ss:$28 sps:$4 sm:$0xff]  }
 0x374   :  { %7429 = vmatpush1.bf16.msra.mxu0 %v9387_v44  ;;  %4479 = vmatprep.subr.bf16.mxu1 %v8638_v52  ;;  %v9473_v44 = vld [vmem:[#allocation11 + $0x8fc] ss:$28 sps:$4 sm:$0xff]  }
 0x375   :  { %7430 = vmatprep.subr.bf16.mxu0 %v9392_v19  ;;  %v9432_v52 = vld [vmem:[#allocation11 + $0x200] ss:$28 sps:$4 sm:$0xff]   ;;  %v9471_v19 = vld [vmem:[#allocation11 + $0x8f8] ss:$28 sps:$4 sm:$0xff]  }
 0x377   :  { %4480 = vmatpush1.bf16.msra.mxu1 %v8637_v24  ;;  %v9446_v24 = vld [vmem:[#allocation11 + $0x274] ss:$28 sps:$4 sm:$0xff]  }
 0x378   :  { %7431 = vmatpush1.bf16.msra.mxu0 %v9390_v25  ;;  %4481 = vmatprep.subr.bf16.mxu1 %v8646_v45  ;;  %v9477_v25 = vld [vmem:[#allocation11 + $0x930] ss:$28 sps:$4 sm:$0xff]  }
 0x379   :  { %7432 = vmatprep.subr.bf16.mxu0 %v9395_v27  ;;  %v9485_v45 = vld [vmem:[#allocation11 + $0x96c] ss:$28 sps:$4 sm:$0xff]  }
 0x37a   :  { %v9452_v27 = vld [vmem:[#allocation11 + $0x2ac] ss:$28 sps:$4 sm:$0xff]  }
 0x37b   :  { %4482 = vmatpush1.bf16.msra.mxu1 %v8645_v42  ;;  %v9483_v42 = vld [vmem:[#allocation11 + $0x968] ss:$28 sps:$4 sm:$0xff]  }
 0x37c   :  { %7433 = vmatpush1.bf16.msra.mxu0 %v9393_v30  ;;  %7525 = vmatprep.subr.bf16.mxu1 %v9398_v23  ;;  %v9491_v30 = vld [vmem:[#allocation11 + $0x9a4] ss:$28 sps:$4 sm:$0xff]  }
 0x37d   :  { %7443 = vmatprep.subr.bf16.mxu0 %v9419_v32  ;;  %v9450_v23 = vld [vmem:[#allocation11 + $0x2a8] ss:$28 sps:$4 sm:$0xff]   ;;  %v9489_v32 = vld [vmem:[#allocation11 + $0x9a0] ss:$28 sps:$4 sm:$0xff]  }
 0x37e   :  { %4484 = vmatmul.mubr.bf16.vlgmr.msra.gmra.mrb[16].mxu1 %v10368_v20  ;;  %v9437_v20 = vld [vmem:[#allocation11 + $0x7ac] ss:$28 sps:$4 sm:$0xff]  }
 0x37f   :  { %7435 = vmatmul.mubr.bf16.vlgmr.msra.gmra.mrb[16].mxu0 %v10425_v10  ;;  %7526 = vmatpush1.bf16.msra.mxu1 %v9396_v56  ;;  %v9497_v56 = vld [vmem:[#allocation11 + $0x9dc] ss:$28 sps:$4 sm:$0xff]  }
 0x380   :  { %7557 = vmatprep.mubr.bf16.mxu1 %v10404_v38  ;;  %7527 = vmatprep.subr.bf16.mxu1 %v9401_v35  ;;  %v9456_v35 = vld [vmem:[#allocation11 + $0x2e0] ss:$28 sps:$4 sm:$0xff]  }
 0x381   :  { %7444 = vmatpush1.bf16.msra.mxu0 %v9417_v37  ;;  %v9464_v37 = vld [vmem:[#allocation11 + $0x31c] ss:$28 sps:$4 sm:$0xff]  }
 0x382   :  { %7445 = vmatprep.subr.bf16.mxu0 %v9425_v8  ;;  %v9495_v8 = vld [vmem:[#allocation11 + $0x9d8] ss:$28 sps:$4 sm:$0xff]  }
 0x383   :  { %7528 = vmatpush1.bf16.msra.mxu1 %v9399_v53  ;;  %v9503_v53 = vld [vmem:[#allocation11 + $0xa14] ss:$28 sps:$4 sm:$0xff]  }
 0x384   :  { %7529 = vmatprep.subr.bf16.mxu1 %v9404_v0  ;;  %v9462_v0 = vld [vmem:[#allocation11 + $0x318] ss:$28 sps:$4 sm:$0xff]  }
 0x385   :  { %7446 = vmatpush1.bf16.msra.mxu0 %v9423_v58  ;;  %v9470_v58 = vld [vmem:[#allocation11 + $0x354] ss:$28 sps:$4 sm:$0xff]  }
 0x386   :  { %7447 = vmatprep.subr.bf16.mxu0 %v9431_v40  ;;  %v9501_v40 = vld [vmem:[#allocation11 + $0xa10] ss:$28 sps:$4 sm:$0xff]  }
 0x387   :  { %7530 = vmatpush1.bf16.msra.mxu1 %v9402_v46  ;;  %v9509_v46 = vld [vmem:[#allocation11 + $0xa4c] ss:$28 sps:$4 sm:$0xff]  }
 0x388   :  { %7531 = vmatprep.subr.bf16.mxu1 %v9407_v48  ;;  %v9468_v48 = vld [vmem:[#allocation11 + $0x350] ss:$28 sps:$4 sm:$0xff]  }
 0x389   :  { %7448 = vmatpush1.bf16.msra.mxu0 %v9429_v49  ;;  %v9476_v49 = vld [vmem:[#allocation11 + $0x38c] ss:$28 sps:$4 sm:$0xff]  }
 0x38a   :  { %7449 = vmatprep.subr.bf16.mxu0 %v9437_v20  ;;  %v9507_v20 = vld [vmem:[#allocation11 + $0xa48] ss:$28 sps:$4 sm:$0xff]  }
 0x38b   :  { %7532 = vmatpush1.bf16.msra.mxu1 %v9405_v41  ;;  %v9563_v41 = vld [vmem:[#allocation11 + $0xa84] ss:$28 sps:$4 sm:$0xff]  }
 0x38c   :  { %7533 = vmatprep.subr.bf16.mxu1 %v9410_v33  ;;  %v9474_v33 = vld [vmem:[#allocation11 + $0x388] ss:$28 sps:$4 sm:$0xff]  }
 0x38d   :  { %7450 = vmatpush1.bf16.msra.mxu0 %v9435_v50  ;;  %v9482_v50 = vld [vmem:[#allocation11 + $0x3c4] ss:$28 sps:$4 sm:$0xff]  }
 0x38e   :  { %7451 = vmatprep.subr.bf16.mxu0 %v9443_v51  ;;  %v9480_v51 = vld [vmem:[#allocation11 + $0x3c0] ss:$28 sps:$4 sm:$0xff]  }
 0x38f   :  { %7534 = vmatpush1.bf16.msra.mxu1 %v9408_v54  ;;  %v9488_v54 = vld [vmem:[#allocation11 + $0x3fc] ss:$28 sps:$4 sm:$0xff]  }
 0x390   :  { %7535 = vmatprep.subr.bf16.mxu1 %v9413_v39  ;;  %v9486_v39 = vld [vmem:[#allocation11 + $0x3f8] ss:$28 sps:$4 sm:$0xff]  }
 0x391   :  { %7452 = vmatpush1.bf16.msra.mxu0 %v9441_v55  ;;  %v9494_v55 = vld [vmem:[#allocation11 + $0x434] ss:$28 sps:$4 sm:$0xff]  }
 0x392   :  { %7453 = vmatprep.subr.bf16.mxu0 %v9449_v3  ;;  %v9492_v3 = vld [vmem:[#allocation11 + $0x430] ss:$28 sps:$4 sm:$0xff]  }
 0x393   :  { %7536 = vmatpush1.bf16.msra.mxu1 %v9411_v59  ;;  %v9500_v59 = vld [vmem:[#allocation11 + $0x46c] ss:$28 sps:$4 sm:$0xff]  }
 0x394   :  { %7537 = vmatprep.subr.bf16.mxu1 %v9416_v60  ;;  %v9498_v60 = vld [vmem:[#allocation11 + $0x468] ss:$28 sps:$4 sm:$0xff]  }
 0x395   :  { %7454 = vmatpush1.bf16.msra.mxu0 %v9447_v62  ;;  %v9506_v62 = vld [vmem:[#allocation11 + $0x4a4] ss:$28 sps:$4 sm:$0xff]  }
 0x396   :  { %7455 = vmatprep.subr.bf16.mxu0 %v9455_v61  ;;  %v10432_v61 = vld [vmem:[#allocation10] sm:$0xff] }
 0x397   :  { %7538 = vmatpush1.bf16.msra.mxu1 %v9414_v63  ;;  %v1255_v63 = vrot.slane %v10432_v61, %v10344_v47 }
 0x398   :  { %7539 = vmatprep.subr.bf16.mxu1 %v9422_v43  ;;  %v9504_v43 = vld [vmem:[#allocation11 + $0x4a0] ss:$28 sps:$4 sm:$0xff]  }
 0x399   :  { %7456 = vmatpush1.bf16.msra.mxu0 %v9453_v2  ;;  %v1259_v2 = vrot.slane %v10432_v61, %v10330_v28 }
 0x39a   :  { %7457 = vmatprep.subr.bf16.mxu0 %v9461_v1  ;;  %v9512_v1 = vld [vmem:[#allocation11 + $0x4dc] ss:$28 sps:$4 sm:$0xff]  }
 0x39b   :  { %7540 = vmatpush1.bf16.msra.mxu1 %v9420_v14 }
 0x39c   :  { %7541 = vmatprep.subr.bf16.mxu1 %v9428_v4 }
 0x39d   :  { %7458 = vmatpush1.bf16.msra.mxu0 %v9459_v5 }
 0x39e   :  { %7459 = vmatprep.subr.bf16.mxu0 %v9467_v6  ;;  %v9510_v6 = vld [vmem:[#allocation11 + $0x4d8] ss:$28 sps:$4 sm:$0xff]  }
 0x39f   :  { %7542 = vmatpush1.bf16.msra.mxu1 %v9426_v7 }
 0x3a0   :  { %7543 = vmatprep.subr.bf16.mxu1 %v9434_v9 }
 0x3a1   :  { %7460 = vmatpush1.bf16.msra.mxu0 %v9465_v11  ;;  %v9515_v11 = vld [vmem:[#allocation11 + $0x514] ss:$28 sps:$4 sm:$0xff]  }
 0x3a2   :  { %7461 = vmatprep.subr.bf16.mxu0 %v9473_v44 }
 0x3a3   :  { %7544 = vmatpush1.bf16.msra.mxu1 %v9432_v52 }
 0x3a4   :  { %7545 = vmatprep.subr.bf16.mxu1 %v9440_v12 }
 0x3a5   :  { %7462 = vmatpush1.bf16.msra.mxu0 %v9471_v19  ;;  %v9513_v19 = vld [vmem:[#allocation11 + $0x510] ss:$28 sps:$4 sm:$0xff]  }
 0x3a6   :  { %7463 = vmatprep.subr.bf16.mxu0 %v9479_v21 }
 0x3a7   :  { %7546 = vmatpush1.bf16.msra.mxu1 %v9438_v22  ;;  %v9518_v22 = vld [vmem:[#allocation11 + $0x54c] ss:$28 sps:$4 sm:$0xff]  }
 0x3a8   :  { %7547 = vmatprep.subr.bf16.mxu1 %v9446_v24  ;;  %v9561_v24 = vld [vmem:[#allocation11 + $0xa80] ss:$28 sps:$4 sm:$0xff]  }
 0x3a9   :  { %7464 = vmatpush1.bf16.msra.mxu0 %v9477_v25 }
 0x3aa   :  { %7465 = vmatprep.subr.bf16.mxu0 %v9485_v45  ;;  %v9569_v45 = vld [vmem:[#allocation11 + $0xabc] ss:$28 sps:$4 sm:$0xff]  }
 0x3ab   :  { %7548 = vmatpush1.bf16.msra.mxu1 %v9444_v26  ;;  %v9516_v26 = vld [vmem:[#allocation11 + $0x548] ss:$28 sps:$4 sm:$0xff]  }
 0x3ac   :  { %7549 = vmatprep.subr.bf16.mxu1 %v9452_v27  ;;  %v9521_v27 = vld [vmem:[#allocation11 + $0x584] ss:$28 sps:$4 sm:$0xff]  }
 0x3ad   :  { %7466 = vmatpush1.bf16.msra.mxu0 %v9483_v42  ;;  %v9567_v42 = vld [vmem:[#allocation11 + $0xab8] ss:$28 sps:$4 sm:$0xff]  }
 0x3ae   :  { %7467 = vmatprep.subr.bf16.mxu0 %v9491_v30  ;;  %v9575_v30 = vld [vmem:[#allocation11 + $0xaf4] ss:$28 sps:$4 sm:$0xff]  }
 0x3af   :  { %7550 = vmatpush1.bf16.msra.mxu1 %v9450_v23  ;;  %v9519_v23 = vld [vmem:[#allocation11 + $0x580] ss:$28 sps:$4 sm:$0xff]  }
 0x3b0   :  { %7551 = vmatprep.subr.bf16.mxu1 %v9458_v31  ;;  %v9524_v31 = vld [vmem:[#allocation11 + $0x5bc] ss:$28 sps:$4 sm:$0xff]  }
 0x3b1   :  { %7468 = vmatpush1.bf16.msra.mxu0 %v9489_v32  ;;  %v9573_v32 = vld [vmem:[#allocation11 + $0xaf0] ss:$28 sps:$4 sm:$0xff]  }
 0x3b2   :  { %7469 = vmatprep.subr.bf16.mxu0 %v9497_v56  ;;  %v9581_v56 = vld [vmem:[#allocation11 + $0xb2c] ss:$28 sps:$4 sm:$0xff]  }
 0x3b3   :  { %7552 = vmatpush1.bf16.msra.mxu1 %v9456_v35  ;;  %v9522_v35 = vld [vmem:[#allocation11 + $0x5b8] ss:$28 sps:$4 sm:$0xff]  }
 0x3b4   :  { %7553 = vmatprep.subr.bf16.mxu1 %v9464_v37  ;;  %v9527_v37 = vld [vmem:[#allocation11 + $0x5f4] ss:$28 sps:$4 sm:$0xff]  }
 0x3b5   :  { %7470 = vmatpush1.bf16.msra.mxu0 %v9495_v8  ;;  %v9579_v8 = vld [vmem:[#allocation11 + $0xb28] ss:$28 sps:$4 sm:$0xff]  }
 0x3b6   :  { %7471 = vmatprep.subr.bf16.mxu0 %v9503_v53  ;;  %v9587_v53 = vld [vmem:[#allocation11 + $0xb64] ss:$28 sps:$4 sm:$0xff]  }
 0x3b7   :  { %7554 = vmatpush1.bf16.msra.mxu1 %v9462_v0  ;;  %v9525_v0 = vld [vmem:[#allocation11 + $0x5f0] ss:$28 sps:$4 sm:$0xff]  }
 0x3b8   :  { %7555 = vmatprep.subr.bf16.mxu1 %v9470_v58  ;;  %v9530_v58 = vld [vmem:[#allocation11 + $0x62c] ss:$28 sps:$4 sm:$0xff]  }
 0x3b9   :  { %7472 = vmatpush1.bf16.msra.mxu0 %v9501_v40  ;;  %v9585_v40 = vld [vmem:[#allocation11 + $0xb60] ss:$28 sps:$4 sm:$0xff]  }
 0x3ba   :  { %7473 = vmatprep.subr.bf16.mxu0 %v9509_v46  ;;  %v9593_v46 = vld [vmem:[#allocation11 + $0xb9c] ss:$28 sps:$4 sm:$0xff]  }
 0x3bb   :  { %7556 = vmatpush1.bf16.msra.mxu1 %v9468_v48  ;;  %v9528_v48 = vld [vmem:[#allocation11 + $0x628] ss:$28 sps:$4 sm:$0xff]  }
 0x3bc   :  { %7566 = vmatprep.subr.bf16.mxu1 %v9476_v49  ;;  %v9533_v49 = vld [vmem:[#allocation11 + $0x664] ss:$28 sps:$4 sm:$0xff]  }
 0x3bd   :  { %7474 = vmatpush1.bf16.msra.mxu0 %v9507_v20  ;;  %v9591_v20 = vld [vmem:[#allocation11 + $0xb98] ss:$28 sps:$4 sm:$0xff]  }
 0x3be   :  { %7558 = vmatmul.mubr.bf16.vlgmr.msra.gmra.mrb[20].mxu1 %v10410_v34  ;;  %7484 = vmatprep.subr.bf16.mxu0 %v9563_v41  ;;  %v9599_v41 = vld [vmem:[#allocation11 + $0xbd4] ss:$28 sps:$4 sm:$0xff]  }
 0x3bf   :  { %7567 = vmatpush1.bf16.msra.mxu1 %v9474_v33  ;;  %7598 = vmatprep.mubr.bf16.mxu1 %v10419_v29  ;;  %v9531_v33 = vld [vmem:[#allocation11 + $0x660] ss:$28 sps:$4 sm:$0xff]  }
 0x3c0   :  { %7568 = vmatprep.subr.bf16.mxu1 %v9482_v50  ;;  %v9536_v50 = vld [vmem:[#allocation11 + $0x69c] ss:$28 sps:$4 sm:$0xff]  }
 0x3c3   :  { %7569 = vmatpush1.bf16.msra.mxu1 %v9480_v51  ;;  %v9597_v51 = vld [vmem:[#allocation11 + $0xbd0] ss:$28 sps:$4 sm:$0xff]  }
 0x3c4   :  { %7570 = vmatprep.subr.bf16.mxu1 %v9488_v54  ;;  %v9605_v54 = vld [vmem:[#allocation11 + $0xc0c] ss:$28 sps:$4 sm:$0xff]  }
 0x3c7   :  { %7571 = vmatpush1.bf16.msra.mxu1 %v9486_v39  ;;  %v9534_v39 = vld [vmem:[#allocation11 + $0x698] ss:$28 sps:$4 sm:$0xff]  }
 0x3c8   :  { %7572 = vmatprep.subr.bf16.mxu1 %v9494_v55  ;;  %v9539_v55 = vld [vmem:[#allocation11 + $0x6d4] ss:$28 sps:$4 sm:$0xff]  }
 0x3cb   :  { %7573 = vmatpush1.bf16.msra.mxu1 %v9492_v3  ;;  %v9603_v3 = vld [vmem:[#allocation11 + $0xc08] ss:$28 sps:$4 sm:$0xff]  }
 0x3cc   :  { %7574 = vmatprep.subr.bf16.mxu1 %v9500_v59  ;;  %v9611_v59 = vld [vmem:[#allocation11 + $0xc44] ss:$28 sps:$4 sm:$0xff]  }
 0x3cf   :  { %7575 = vmatpush1.bf16.msra.mxu1 %v9498_v60  ;;  %v9537_v60 = vld [vmem:[#allocation11 + $0x6d0] ss:$28 sps:$4 sm:$0xff]  }
 0x3d0   :  { %7576 = vmatprep.subr.bf16.mxu1 %v9506_v62  ;;  %v9542_v62 = vld [vmem:[#allocation11 + $0x70c] ss:$28 sps:$4 sm:$0xff]  }
 0x3d2   :  { %v4321_v14 = vpop.f32.mrb[12].mxu0 }
 0x3d3   :  { %v9197_v4 = vadd.f32 %v4321_v14, %v1255_v63  ;;  %v4323_v5 = vpop.f32.mrb[13].mxu0  ;;  %7577 = vmatpush1.bf16.msra.mxu1 %v9504_v43  ;;  %v9609_v63 = vld [vmem:[#allocation11 + $0xc40] ss:$28 sps:$4 sm:$0xff]   ;;  %v9615_v14 = vld [vmem:[#allocation11 + $0xc78] ss:$28 sps:$4 sm:$0xff]  }
 0x3d4   :  { %v9198_v7 = vadd.f32 %v4323_v5, %v1259_v2  ;;  %v4325_v9 = vpop.f32.mrb[14].mxu0  ;;  %7578 = vmatprep.subr.bf16.mxu1 %v9512_v1  ;;  %v9617_v43 = vld [vmem:[#allocation11 + $0xc7c] ss:$28 sps:$4 sm:$0xff]   ;;  %v9540_v2 = vld [vmem:[#allocation11 + $0x708] ss:$28 sps:$4 sm:$0xff]  }
 0x3d5   :  { %v4496_v44 = vmax.f32 %v9197_v4, 0.0  ;;  %v4326_v52 = vpop.f32.mrb[15].mxu0  ;;  %v9545_v1 = vld [vmem:[#allocation11 + $0x744] ss:$28 sps:$4 sm:$0xff]   ;;  %v9623_v4 = vld [vmem:[#allocation11 + $0xcb4] ss:$28 sps:$4 sm:$0xff]  }
 0x3d6   :  { %v4497_v12 = vmax.f32 %v9198_v7, 0.0  ;;  %v9543_v5 = vld [vmem:[#allocation11 + $0x740] ss:$28 sps:$4 sm:$0xff]   ;;  %v9621_v7 = vld [vmem:[#allocation11 + $0xcb0] ss:$28 sps:$4 sm:$0xff]  }
 0x3d7   :  { %7579 = vmatpush1.bf16.msra.mxu1 %v9510_v6  ;;  %v10440_v25 = vpack.c.bf16 %v4496_v44, %v4496_v44  ;;  %v9548_v6 = vld [vmem:[#allocation11 + $0x77c] ss:$28 sps:$4 sm:$0xff]   ;;  %v9629_v9 = vld [vmem:[#allocation11 + $0xcec] ss:$28 sps:$4 sm:$0xff]   ;;  %v9551_v44 = vld [vmem:[#allocation11 + $0x7b4] ss:$28 sps:$4 sm:$0xff]  }
 0x3d8   :  { %v10438_v21 = vpack.c.bf16 %v4497_v12, %v4497_v12  ;;  %7580 = vmatprep.subr.bf16.mxu1 %v9515_v11  ;;  %v9546_v11 = vld [vmem:[#allocation11 + $0x778] ss:$28 sps:$4 sm:$0xff]   ;;  %v9627_v52 = vld [vmem:[#allocation11 + $0xce8] ss:$28 sps:$4 sm:$0xff]  }
 0x3d9   :  { %v9635_v12 = vld [vmem:[#allocation11 + $0xd24] ss:$28 sps:$4 sm:$0xff]  }
 0x3da   :  { %7475 = vmatprep.mubr.bf16.mxu0 %v10438_v21 }
 0x3db   :  { %7476 = vmatmul.mubr.bf16.vlgmr.msra.gmra.mrb[16].mxu0 %v10440_v25  ;;  %7581 = vmatpush1.bf16.msra.mxu1 %v9513_v19  ;;  %v9549_v19 = vld [vmem:[#allocation11 + $0x7b0] ss:$28 sps:$4 sm:$0xff]  }
 0x3dc   :  { %7582 = vmatprep.subr.bf16.mxu1 %v9518_v22  ;;  %7485 = vmatpush1.bf16.msra.mxu0 %v9561_v24  ;;  %v9554_v22 = vld [vmem:[#allocation11 + $0x7ec] ss:$28 sps:$4 sm:$0xff]   ;;  %v9633_v24 = vld [vmem:[#allocation11 + $0xd20] ss:$28 sps:$4 sm:$0xff]  }
 0x3dd   :  { %7486 = vmatprep.subr.bf16.mxu0 %v9569_v45  ;;  %v9641_v45 = vld [vmem:[#allocation11 + $0xd5c] ss:$28 sps:$4 sm:$0xff]  }
 0x3df   :  { %7583 = vmatpush1.bf16.msra.mxu1 %v9516_v26  ;;  %v9552_v26 = vld [vmem:[#allocation11 + $0x7e8] ss:$28 sps:$4 sm:$0xff]  }
 0x3e0   :  { %7584 = vmatprep.subr.bf16.mxu1 %v9521_v27  ;;  %7487 = vmatpush1.bf16.msra.mxu0 %v9567_v42  ;;  %v9557_v27 = vld [vmem:[#allocation11 + $0x824] ss:$28 sps:$4 sm:$0xff]   ;;  %v9639_v42 = vld [vmem:[#allocation11 + $0xd58] ss:$28 sps:$4 sm:$0xff]  }
 0x3e1   :  { %7488 = vmatprep.subr.bf16.mxu0 %v9575_v30  ;;  %v9647_v30 = vld [vmem:[#allocation11 + $0xd94] ss:$28 sps:$4 sm:$0xff]  }
 0x3e3   :  { %7585 = vmatpush1.bf16.msra.mxu1 %v9519_v23  ;;  %v9555_v23 = vld [vmem:[#allocation11 + $0x820] ss:$28 sps:$4 sm:$0xff]  }
 0x3e4   :  { %7586 = vmatprep.subr.bf16.mxu1 %v9524_v31  ;;  %7489 = vmatpush1.bf16.msra.mxu0 %v9573_v32  ;;  %v9560_v31 = vld [vmem:[#allocation11 + $0x85c] ss:$28 sps:$4 sm:$0xff]   ;;  %v9645_v32 = vld [vmem:[#allocation11 + $0xd90] ss:$28 sps:$4 sm:$0xff]  }
 0x3e5   :  { %7490 = vmatprep.subr.bf16.mxu0 %v9581_v56  ;;  %v9653_v56 = vld [vmem:[#allocation11 + $0xdcc] ss:$28 sps:$4 sm:$0xff]  }
 0x3e7   :  { %7587 = vmatpush1.bf16.msra.mxu1 %v9522_v35  ;;  %v9558_v35 = vld [vmem:[#allocation11 + $0x858] ss:$28 sps:$4 sm:$0xff]  }
 0x3e8   :  { %7588 = vmatprep.subr.bf16.mxu1 %v9527_v37  ;;  %7491 = vmatpush1.bf16.msra.mxu0 %v9579_v8  ;;  %v9566_v37 = vld [vmem:[#allocation11 + $0x894] ss:$28 sps:$4 sm:$0xff]   ;;  %v9651_v8 = vld [vmem:[#allocation11 + $0xdc8] ss:$28 sps:$4 sm:$0xff]  }
 0x3e9   :  { %7492 = vmatprep.subr.bf16.mxu0 %v9587_v53  ;;  %v9659_v53 = vld [vmem:[#allocation11 + $0x14] ss:$28 sps:$4 sm:$0xff]  }
 0x3eb   :  { %7589 = vmatpush1.bf16.msra.mxu1 %v9525_v0  ;;  %v9564_v0 = vld [vmem:[#allocation11 + $0x890] ss:$28 sps:$4 sm:$0xff]  }
 0x3ec   :  { %7590 = vmatprep.subr.bf16.mxu1 %v9530_v58  ;;  %7493 = vmatpush1.bf16.msra.mxu0 %v9585_v40  ;;  %v9572_v58 = vld [vmem:[#allocation11 + $0x8cc] ss:$28 sps:$4 sm:$0xff]  }
 0x3ed   :  { %7494 = vmatprep.subr.bf16.mxu0 %v9593_v46  ;;  %v9570_v40 = vld [vmem:[#allocation11 + $0x8c8] ss:$28 sps:$4 sm:$0xff]  }
 0x3ee   :  { %v9578_v46 = vld [vmem:[#allocation11 + $0x904] ss:$28 sps:$4 sm:$0xff]  }
 0x3ef   :  { %7591 = vmatpush1.bf16.msra.mxu1 %v9528_v48  ;;  %v9576_v48 = vld [vmem:[#allocation11 + $0x900] ss:$28 sps:$4 sm:$0xff]  }
 0x3f0   :  { %7592 = vmatprep.subr.bf16.mxu1 %v9533_v49  ;;  %7495 = vmatpush1.bf16.msra.mxu0 %v9591_v20  ;;  %v9584_v49 = vld [vmem:[#allocation11 + $0x93c] ss:$28 sps:$4 sm:$0xff]  }
 0x3f1   :  { %7496 = vmatprep.subr.bf16.mxu0 %v9599_v41  ;;  %v9582_v20 = vld [vmem:[#allocation11 + $0x938] ss:$28 sps:$4 sm:$0xff]  }
 0x3f2   :  { %v9590_v41 = vld [vmem:[#allocation11 + $0x974] ss:$28 sps:$4 sm:$0xff]  }
 0x3f3   :  { %7593 = vmatpush1.bf16.msra.mxu1 %v9531_v33  ;;  %v9588_v33 = vld [vmem:[#allocation11 + $0x970] ss:$28 sps:$4 sm:$0xff]  }
 0x3f4   :  { %7594 = vmatprep.subr.bf16.mxu1 %v9536_v50  ;;  %7497 = vmatpush1.bf16.msra.mxu0 %v9597_v51  ;;  %v9596_v50 = vld [vmem:[#allocation11 + $0x9ac] ss:$28 sps:$4 sm:$0xff]  }
 0x3f5   :  { %7498 = vmatprep.subr.bf16.mxu0 %v9605_v54  ;;  %v9594_v51 = vld [vmem:[#allocation11 + $0x9a8] ss:$28 sps:$4 sm:$0xff]  }
 0x3f6   :  { %v9602_v54 = vld [vmem:[#allocation11 + $0x9e4] ss:$28 sps:$4 sm:$0xff]  }
 0x3f7   :  { %7595 = vmatpush1.bf16.msra.mxu1 %v9534_v39  ;;  %v9600_v39 = vld [vmem:[#allocation11 + $0x9e0] ss:$28 sps:$4 sm:$0xff]  }
 0x3f8   :  { %7596 = vmatprep.subr.bf16.mxu1 %v9539_v55  ;;  %7499 = vmatpush1.bf16.msra.mxu0 %v9603_v3  ;;  %v9608_v55 = vld [vmem:[#allocation11 + $0xa1c] ss:$28 sps:$4 sm:$0xff]  }
 0x3f9   :  { %7500 = vmatprep.subr.bf16.mxu0 %v9611_v59  ;;  %v9606_v3 = vld [vmem:[#allocation11 + $0xa18] ss:$28 sps:$4 sm:$0xff]  }
 0x3fa   :  { %v9614_v59 = vld [vmem:[#allocation11 + $0xa54] ss:$28 sps:$4 sm:$0xff]  }
 0x3fb   :  { %7597 = vmatpush1.bf16.msra.mxu1 %v9537_v60  ;;  %v9612_v60 = vld [vmem:[#allocation11 + $0xa50] ss:$28 sps:$4 sm:$0xff]  }
 0x3fc   :  { %7607 = vmatprep.subr.bf16.mxu1 %v9542_v62  ;;  %7501 = vmatpush1.bf16.msra.mxu0 %v9609_v63  ;;  %v9620_v62 = vld [vmem:[#allocation11 + $0xa8c] ss:$28 sps:$4 sm:$0xff]  }
 0x3fd   :  { %7502 = vmatprep.subr.bf16.mxu0 %v9617_v43  ;;  %v9618_v63 = vld [vmem:[#allocation11 + $0xa88] ss:$28 sps:$4 sm:$0xff]  }
 0x3fe   :  { %7599 = vmatmul.mubr.bf16.vlgmr.msra.gmra.mrb[20].mxu1 %v10425_v10  ;;  %v9626_v43 = vld [vmem:[#allocation11 + $0xac4] ss:$28 sps:$4 sm:$0xff]  }
 0x3ff   :  { %7608 = vmatpush1.bf16.msra.mxu1 %v9540_v2  ;;  %7639 = vmatprep.mubr.bf16.mxu1 %v10438_v21  ;;  %v9624_v2 = vld [vmem:[#allocation11 + $0xac0] ss:$28 sps:$4 sm:$0xff]  }
 0x400   :  { %7609 = vmatprep.subr.bf16.mxu1 %v9545_v1  ;;  %7503 = vmatpush1.bf16.msra.mxu0 %v9615_v14  ;;  %v9632_v1 = vld [vmem:[#allocation11 + $0xafc] ss:$28 sps:$4 sm:$0xff]  }
 0x401   :  { %7504 = vmatprep.subr.bf16.mxu0 %v9623_v4  ;;  %v9630_v14 = vld [vmem:[#allocation11 + $0xaf8] ss:$28 sps:$4 sm:$0xff]  }
 0x402   :  { %v9638_v4 = vld [vmem:[#allocation11 + $0xb34] ss:$28 sps:$4 sm:$0xff]  }
 0x403   :  { %7610 = vmatpush1.bf16.msra.mxu1 %v9543_v5  ;;  %v9636_v5 = vld [vmem:[#allocation11 + $0xb30] ss:$28 sps:$4 sm:$0xff]  }
 0x404   :  { %7611 = vmatprep.subr.bf16.mxu1 %v9548_v6  ;;  %7505 = vmatpush1.bf16.msra.mxu0 %v9621_v7  ;;  %v9644_v6 = vld [vmem:[#allocation11 + $0xb6c] ss:$28 sps:$4 sm:$0xff]  }
 0x405   :  { %7506 = vmatprep.subr.bf16.mxu0 %v9629_v9  ;;  %v9642_v7 = vld [vmem:[#allocation11 + $0xb68] ss:$28 sps:$4 sm:$0xff]  }
 0x406   :  { %v9650_v9 = vld [vmem:[#allocation11 + $0xba4] ss:$28 sps:$4 sm:$0xff]  }
 0x407   :  { %7612 = vmatpush1.bf16.msra.mxu1 %v9546_v11  ;;  %v1263_v11 = vrot.slane %v10432_v61, %v10363_v36 }
 0x408   :  { %7613 = vmatprep.subr.bf16.mxu1 %v9551_v44  ;;  %7507 = vmatpush1.bf16.msra.mxu0 %v9627_v52  ;;  %v1267_v44 = vrot.slane %v10432_v61, %v212_v57  ;;  %v9648_v52 = vld [vmem:[#allocation11 + $0xba0] ss:$28 sps:$4 sm:$0xff]   ;;  %v9660_v57 = vld [vmem:[#allocation11 + $0xc10] ss:$28 sps:$4 sm:$0xff]  }
 0x409   :  { %7508 = vmatprep.subr.bf16.mxu0 %v9635_v12  ;;  %v9656_v12 = vld [vmem:[#allocation11 + $0xbdc] ss:$28 sps:$4 sm:$0xff]  }
 0x40b   :  { %7614 = vmatpush1.bf16.msra.mxu1 %v9549_v19 }
 0x40c   :  { %7615 = vmatprep.subr.bf16.mxu1 %v9554_v22  ;;  %7509 = vmatpush1.bf16.msra.mxu0 %v9633_v24 }
 0x40d   :  { %7510 = vmatprep.subr.bf16.mxu0 %v9641_v45 }
 0x40f   :  { %7616 = vmatpush1.bf16.msra.mxu1 %v9552_v26 }
 0x410   :  { %7617 = vmatprep.subr.bf16.mxu1 %v9557_v27  ;;  %7511 = vmatpush1.bf16.msra.mxu0 %v9639_v42  ;;  %v9654_v27 = vld [vmem:[#allocation11 + $0xbd8] ss:$28 sps:$4 sm:$0xff]  }
 0x411   :  { %7512 = vmatprep.subr.bf16.mxu0 %v9647_v30 }
 0x413   :  { %7618 = vmatpush1.bf16.msra.mxu1 %v9555_v23  ;;  %v9662_v23 = vld [vmem:[#allocation11 + $0xc14] ss:$28 sps:$4 sm:$0xff]  }
 0x414   :  { %7619 = vmatprep.subr.bf16.mxu1 %v9560_v31  ;;  %7513 = vmatpush1.bf16.msra.mxu0 %v9645_v32 }
 0x415   :  { %7514 = vmatprep.subr.bf16.mxu0 %v9653_v56  ;;  %v9665_v56 = vld [vmem:[#allocation11 + $0x4c] ss:$28 sps:$4 sm:$0xff]  }
 0x417   :  { %7620 = vmatpush1.bf16.msra.mxu1 %v9558_v35  ;;  %v9668_v35 = vld [vmem:[#allocation11 + $0xc4c] ss:$28 sps:$4 sm:$0xff]  }
 0x418   :  { %7621 = vmatprep.subr.bf16.mxu1 %v9566_v37  ;;  %7515 = vmatpush1.bf16.msra.mxu0 %v9651_v8  ;;  %v9663_v37 = vld [vmem:[#allocation11 + $0x48] ss:$28 sps:$4 sm:$0xff]  }
 0x419   :  { %7689 = vmatprep.subr.bf16.mxu0 %v9659_v53  ;;  %v9666_v8 = vld [vmem:[#allocation11 + $0xc48] ss:$28 sps:$4 sm:$0xff]  }
 0x41a   :  { %v9671_v53 = vld [vmem:[#allocation11 + $0x84] ss:$28 sps:$4 sm:$0xff]  }
 0x41b   :  { %7622 = vmatpush1.bf16.msra.mxu1 %v9564_v0  ;;  %v9674_v0 = vld [vmem:[#allocation11 + $0xc84] ss:$28 sps:$4 sm:$0xff]  }
 0x41c   :  { %7623 = vmatprep.subr.bf16.mxu1 %v9572_v58  ;;  %v9669_v58 = vld [vmem:[#allocation11 + $0x80] ss:$28 sps:$4 sm:$0xff]  }
 0x41f   :  { %7624 = vmatpush1.bf16.msra.mxu1 %v9570_v40  ;;  %v9672_v40 = vld [vmem:[#allocation11 + $0xc80] ss:$28 sps:$4 sm:$0xff]  }
 0x420   :  { %7625 = vmatprep.subr.bf16.mxu1 %v9578_v46  ;;  %v9677_v46 = vld [vmem:[#allocation11 + $0xbc] ss:$28 sps:$4 sm:$0xff]  }
 0x423   :  { %7626 = vmatpush1.bf16.msra.mxu1 %v9576_v48  ;;  %v9680_v48 = vld [vmem:[#allocation11 + $0xcbc] ss:$28 sps:$4 sm:$0xff]  }
 0x424   :  { %7627 = vmatprep.subr.bf16.mxu1 %v9584_v49  ;;  %v9675_v49 = vld [vmem:[#allocation11 + $0xb8] ss:$28 sps:$4 sm:$0xff]  }
 0x427   :  { %7628 = vmatpush1.bf16.msra.mxu1 %v9582_v20  ;;  %v9678_v20 = vld [vmem:[#allocation11 + $0xcb8] ss:$28 sps:$4 sm:$0xff]  }
 0x428   :  { %7629 = vmatprep.subr.bf16.mxu1 %v9590_v41  ;;  %v9683_v41 = vld [vmem:[#allocation11 + $0xf4] ss:$28 sps:$4 sm:$0xff]  }
 0x42b   :  { %7630 = vmatpush1.bf16.msra.mxu1 %v9588_v33  ;;  %v9686_v33 = vld [vmem:[#allocation11 + $0xcf4] ss:$28 sps:$4 sm:$0xff]  }
 0x42c   :  { %7631 = vmatprep.subr.bf16.mxu1 %v9596_v50  ;;  %v9681_v50 = vld [vmem:[#allocation11 + $0xf0] ss:$28 sps:$4 sm:$0xff]  }
 0x42f   :  { %7632 = vmatpush1.bf16.msra.mxu1 %v9594_v51  ;;  %v9684_v51 = vld [vmem:[#allocation11 + $0xcf0] ss:$28 sps:$4 sm:$0xff]  }
 0x430   :  { %7633 = vmatprep.subr.bf16.mxu1 %v9602_v54  ;;  %v9689_v54 = vld [vmem:[#allocation11 + $0x12c] ss:$28 sps:$4 sm:$0xff]  }
 0x433   :  { %7634 = vmatpush1.bf16.msra.mxu1 %v9600_v39  ;;  %v9692_v39 = vld [vmem:[#allocation11 + $0xd2c] ss:$28 sps:$4 sm:$0xff]  }
 0x434   :  { %7635 = vmatprep.subr.bf16.mxu1 %v9608_v55  ;;  %v9687_v55 = vld [vmem:[#allocation11 + $0x128] ss:$28 sps:$4 sm:$0xff]  }
 0x437   :  { %7636 = vmatpush1.bf16.msra.mxu1 %v9606_v3  ;;  %v9690_v3 = vld [vmem:[#allocation11 + $0xd28] ss:$28 sps:$4 sm:$0xff]  }
 0x438   :  { %7637 = vmatprep.subr.bf16.mxu1 %v9614_v59  ;;  %v9695_v59 = vld [vmem:[#allocation11 + $0x164] ss:$28 sps:$4 sm:$0xff]  }
 0x43b   :  { %7638 = vmatpush1.bf16.msra.mxu1 %v9612_v60  ;;  %v9698_v60 = vld [vmem:[#allocation11 + $0xd64] ss:$28 sps:$4 sm:$0xff]  }
 0x43c   :  { %7648 = vmatprep.subr.bf16.mxu1 %v9620_v62  ;;  %v9693_v62 = vld [vmem:[#allocation11 + $0x160] ss:$28 sps:$4 sm:$0xff]  }
 0x43e   :  { %7640 = vmatmul.mubr.bf16.vlgmr.msra.gmra.mrb[20].mxu1 %v10440_v25 }
 0x43f   :  { %7649 = vmatpush1.bf16.msra.mxu1 %v9618_v63  ;;  %v9696_v63 = vld [vmem:[#allocation11 + $0xd60] ss:$28 sps:$4 sm:$0xff]  }
 0x440   :  { %7650 = vmatprep.subr.bf16.mxu1 %v9626_v43  ;;  %v9701_v43 = vld [vmem:[#allocation11 + $0x19c] ss:$28 sps:$4 sm:$0xff]  }
 0x443   :  { %7651 = vmatpush1.bf16.msra.mxu1 %v9624_v2  ;;  %v9704_v2 = vld [vmem:[#allocation11 + $0xd9c] ss:$28 sps:$4 sm:$0xff]  }
 0x444   :  { %7652 = vmatprep.subr.bf16.mxu1 %v9632_v1  ;;  %v9699_v1 = vld [vmem:[#allocation11 + $0x198] ss:$28 sps:$4 sm:$0xff]  }
 0x447   :  { %7653 = vmatpush1.bf16.msra.mxu1 %v9630_v14  ;;  %v9702_v14 = vld [vmem:[#allocation11 + $0xd98] ss:$28 sps:$4 sm:$0xff]  }
 0x448   :  { %7654 = vmatprep.subr.bf16.mxu1 %v9638_v4  ;;  %v9707_v4 = vld [vmem:[#allocation11 + $0x1d4] ss:$28 sps:$4 sm:$0xff]  }
 0x44b   :  { %7655 = vmatpush1.bf16.msra.mxu1 %v9636_v5  ;;  %v9710_v5 = vld [vmem:[#allocation11 + $0xdd4] ss:$28 sps:$4 sm:$0xff]  }
 0x44c   :  { %7656 = vmatprep.subr.bf16.mxu1 %v9644_v6  ;;  %v9705_v6 = vld [vmem:[#allocation11 + $0x1d0] ss:$28 sps:$4 sm:$0xff]  }
 0x44f   :  { %7657 = vmatpush1.bf16.msra.mxu1 %v9642_v7  ;;  %v9708_v7 = vld [vmem:[#allocation11 + $0xdd0] ss:$28 sps:$4 sm:$0xff]  }
 0x450   :  { %7658 = vmatprep.subr.bf16.mxu1 %v9650_v9  ;;  %v9713_v9 = vld [vmem:[#allocation11 + $0x20c] ss:$28 sps:$4 sm:$0xff]  }
 0x451   :  { %v4485_v19 = vpop.f32.mrb[16].mxu1 }
 0x452   :  { %v9199_v22 = vadd.f32 %v4485_v19, %v1263_v11  ;;  %v4487_v24 = vpop.f32.mrb[17].mxu1  ;;  %v9714_v11 = vld [vmem:[#allocation11 + $0x1d8] ss:$28 sps:$4 sm:$0xff]   ;;  %v9719_v19 = vld [vmem:[#allocation11 + $0x210] ss:$28 sps:$4 sm:$0xff]  }
 0x453   :  { %v9200_v45 = vadd.f32 %v4487_v24, %v1267_v44  ;;  %v4489_v26 = vpop.f32.mrb[18].mxu1  ;;  %7659 = vmatpush1.bf16.msra.mxu1 %v9648_v52  ;;  %v9711_v44 = vld [vmem:[#allocation11 + $0x208] ss:$28 sps:$4 sm:$0xff]   ;;  %v9715_v52 = vld [vmem:[#allocation11 + $0x18] ss:$28 sps:$4 sm:$0xff]  }
 0x454   :  { %v4498_v42 = vmax.f32 %v9199_v22, 0.0  ;;  %v4490_v30 = vpop.f32.mrb[19].mxu1  ;;  %7660 = vmatprep.subr.bf16.mxu1 %v9656_v12  ;;  %v9718_v12 = vld [vmem:[#allocation11 + $0x244] ss:$28 sps:$4 sm:$0xff]   ;;  %v9720_v24 = vld [vmem:[#allocation11 + $0x50] ss:$28 sps:$4 sm:$0xff]  }
 0x455   :  { %v4499_v31 = vmax.f32 %v9200_v45, 0.0  ;;  %v9716_v22 = vld [vmem:[#allocation11 + $0x240] ss:$28 sps:$4 sm:$0xff]   ;;  %v9724_v26 = vld [vmem:[#allocation11 + $0x248] ss:$28 sps:$4 sm:$0xff]  }
 0x456   :  { %v10454_v61 = vpack.c.bf16 %v4498_v42, %v4498_v42  ;;  %v9723_v45 = vld [vmem:[#allocation11 + $0x27c] ss:$28 sps:$4 sm:$0xff]   ;;  %v9725_v42 = vld [vmem:[#allocation11 + $0x88] ss:$28 sps:$4 sm:$0xff]   ;;  %v9728_v30 = vld [vmem:[#allocation11 + $0x2b4] ss:$28 sps:$4 sm:$0xff]  }
 0x457   :  { %v10452_v32 = vpack.c.bf16 %v4499_v31, %v4499_v31  ;;  %7661 = vmatpush1.bf16.msra.mxu1 %v9654_v27  ;;  %v9721_v27 = vld [vmem:[#allocation11 + $0x278] ss:$28 sps:$4 sm:$0xff]   ;;  %v9726_v31 = vld [vmem:[#allocation11 + $0x2b0] ss:$28 sps:$4 sm:$0xff]  }
 0x458   :  { %7662 = vmatprep.subr.bf16.mxu1 %v9662_v23  ;;  %v9729_v23 = vld [vmem:[#allocation11 + $0x280] ss:$28 sps:$4 sm:$0xff]  }
 0x459   :  { %7516 = vmatprep.mubr.bf16.mxu0 %v10452_v32  ;;  %7680 = vmatprep.mubr.bf16.mxu1 %v10452_v32 }
 0x45a   :  { %7517 = vmatmul.mubr.bf16.vlgmr.msra.gmra.mrb[16].mxu0 %v10454_v61 }
 0x45b   :  { %7690 = vmatpush1.bf16.msra.mxu0 %v9657_v13  ;;  %7663 = vmatpush1.bf16.msra.mxu1 %v9660_v57  ;;  %v9730_v13 = vld [vmem:[#allocation11 + $0xc0] ss:$28 sps:$4 sm:$0xff]   ;;  %v9733_v57 = vld [vmem:[#allocation11 + $0x2ec] ss:$28 sps:$4 sm:$0xff]  }
 0x45c   :  { %7721 = vmatprep.mubr.bf16.mxu0 %v10404_v38  ;;  %7691 = vmatprep.subr.bf16.mxu0 %v9665_v56  ;;  %v9731_v56 = vld [vmem:[#allocation11 + $0x2e8] ss:$28 sps:$4 sm:$0xff]  }
 0x45d   :  { %7664 = vmatprep.subr.bf16.mxu1 %v9668_v35  ;;  %v9735_v35 = vld [vmem:[#allocation11 + $0xf8] ss:$28 sps:$4 sm:$0xff]  }
 0x45f   :  { %7692 = vmatpush1.bf16.msra.mxu0 %v9663_v37  ;;  %7665 = vmatpush1.bf16.msra.mxu1 %v9666_v8  ;;  %v9738_v37 = vld [vmem:[#allocation11 + $0x324] ss:$28 sps:$4 sm:$0xff]   ;;  %v9739_v8 = vld [vmem:[#allocation11 + $0x2f0] ss:$28 sps:$4 sm:$0xff]  }
 0x460   :  { %7693 = vmatprep.subr.bf16.mxu0 %v9671_v53  ;;  %7666 = vmatprep.subr.bf16.mxu1 %v9674_v0  ;;  %v9736_v53 = vld [vmem:[#allocation11 + $0x320] ss:$28 sps:$4 sm:$0xff]   ;;  %v9740_v0 = vld [vmem:[#allocation11 + $0x130] ss:$28 sps:$4 sm:$0xff]  }
 0x463   :  { %7694 = vmatpush1.bf16.msra.mxu0 %v9669_v58  ;;  %7667 = vmatpush1.bf16.msra.mxu1 %v9672_v40  ;;  %v9743_v58 = vld [vmem:[#allocation11 + $0x35c] ss:$28 sps:$4 sm:$0xff]   ;;  %v9744_v40 = vld [vmem:[#allocation11 + $0x328] ss:$28 sps:$4 sm:$0xff]  }
 0x464   :  { %7695 = vmatprep.subr.bf16.mxu0 %v9677_v46  ;;  %7668 = vmatprep.subr.bf16.mxu1 %v9680_v48  ;;  %v9741_v46 = vld [vmem:[#allocation11 + $0x358] ss:$28 sps:$4 sm:$0xff]   ;;  %v9745_v48 = vld [vmem:[#allocation11 + $0x168] ss:$28 sps:$4 sm:$0xff]  }
 0x467   :  { %7696 = vmatpush1.bf16.msra.mxu0 %v9675_v49  ;;  %7669 = vmatpush1.bf16.msra.mxu1 %v9678_v20  ;;  %v9748_v49 = vld [vmem:[#allocation11 + $0x394] ss:$28 sps:$4 sm:$0xff]   ;;  %v9749_v20 = vld [vmem:[#allocation11 + $0x360] ss:$28 sps:$4 sm:$0xff]  }
 0x468   :  { %7697 = vmatprep.subr.bf16.mxu0 %v9683_v41  ;;  %7670 = vmatprep.subr.bf16.mxu1 %v9686_v33  ;;  %v9746_v41 = vld [vmem:[#allocation11 + $0x390] ss:$28 sps:$4 sm:$0xff]   ;;  %v9750_v33 = vld [vmem:[#allocation11 + $0x1a0] ss:$28 sps:$4 sm:$0xff]  }
 0x46b   :  { %7698 = vmatpush1.bf16.msra.mxu0 %v9681_v50  ;;  %7671 = vmatpush1.bf16.msra.mxu1 %v9684_v51  ;;  %v9753_v50 = vld [vmem:[#allocation11 + $0x3cc] ss:$28 sps:$4 sm:$0xff]   ;;  %v9754_v51 = vld [vmem:[#allocation11 + $0x558] ss:$28 sps:$4 sm:$0xff]  }
 0x46c   :  { %7699 = vmatprep.subr.bf16.mxu0 %v9689_v54  ;;  %7672 = vmatprep.subr.bf16.mxu1 %v9692_v39  ;;  %v9751_v54 = vld [vmem:[#allocation11 + $0x3c8] ss:$28 sps:$4 sm:$0xff]   ;;  %v9755_v39 = vld [vmem:[#allocation11 + $0x398] ss:$28 sps:$4 sm:$0xff]  }
 0x46f   :  { %7700 = vmatpush1.bf16.msra.mxu0 %v9687_v55  ;;  %7673 = vmatpush1.bf16.msra.mxu1 %v9690_v3  ;;  %v9758_v55 = vld [vmem:[#allocation11 + $0x404] ss:$28 sps:$4 sm:$0xff]   ;;  %v9759_v3 = vld [vmem:[#allocation11 + $0x590] ss:$28 sps:$4 sm:$0xff]  }
 0x470   :  { %7701 = vmatprep.subr.bf16.mxu0 %v9695_v59  ;;  %7674 = vmatprep.subr.bf16.mxu1 %v9698_v60  ;;  %v9756_v59 = vld [vmem:[#allocation11 + $0x400] ss:$28 sps:$4 sm:$0xff]   ;;  %v9760_v60 = vld [vmem:[#allocation11 + $0x3d0] ss:$28 sps:$4 sm:$0xff]  }
 0x473   :  { %7702 = vmatpush1.bf16.msra.mxu0 %v9693_v62  ;;  %7675 = vmatpush1.bf16.msra.mxu1 %v9696_v63  ;;  %v9763_v62 = vld [vmem:[#allocation11 + $0x43c] ss:$28 sps:$4 sm:$0xff]   ;;  %v9764_v63 = vld [vmem:[#allocation11 + $0x5c8] ss:$28 sps:$4 sm:$0xff]  }
 0x474   :  { %7703 = vmatprep.subr.bf16.mxu0 %v9701_v43  ;;  %7676 = vmatprep.subr.bf16.mxu1 %v9704_v2  ;;  %v9761_v43 = vld [vmem:[#allocation11 + $0x438] ss:$28 sps:$4 sm:$0xff]   ;;  %v9765_v2 = vld [vmem:[#allocation11 + $0x408] ss:$28 sps:$4 sm:$0xff]  }
 0x477   :  { %7704 = vmatpush1.bf16.msra.mxu0 %v9699_v1  ;;  %7677 = vmatpush1.bf16.msra.mxu1 %v9702_v14  ;;  %v9768_v1 = vld [vmem:[#allocation11 + $0x474] ss:$28 sps:$4 sm:$0xff]   ;;  %v9769_v14 = vld [vmem:[#allocation11 + $0x600] ss:$28 sps:$4 sm:$0xff]  }
 0x478   :  { %7705 = vmatprep.subr.bf16.mxu0 %v9707_v4  ;;  %7678 = vmatprep.subr.bf16.mxu1 %v9710_v5  ;;  %v9766_v4 = vld [vmem:[#allocation11 + $0x470] ss:$28 sps:$4 sm:$0xff]  }
 0x479   :  { %v9773_v5 = vld [vmem:[#allocation11 + $0x4ac] ss:$28 sps:$4 sm:$0xff]  }
 0x47b   :  { %7706 = vmatpush1.bf16.msra.mxu0 %v9705_v6  ;;  %7679 = vmatpush1.bf16.msra.mxu1 %v9708_v7  ;;  %v9771_v6 = vld [vmem:[#allocation11 + $0x4a8] ss:$28 sps:$4 sm:$0xff]   ;;  %v9775_v7 = vld [vmem:[#allocation11 + $0x478] ss:$28 sps:$4 sm:$0xff]  }
 0x47c   :  { %7707 = vmatprep.subr.bf16.mxu0 %v9713_v9  ;;  %9103 = vmatprep.subr.bf16.mxu1 %v9714_v11  ;;  %v9778_v9 = vld [vmem:[#allocation11 + $0x4e4] ss:$28 sps:$4 sm:$0xff]   ;;  %v9779_v11 = vld [vmem:[#allocation11 + $0x670] ss:$28 sps:$4 sm:$0xff]  }
 0x47e   :  { %7681 = vmatmul.mubr.bf16.vlgmr.msra.gmra.mrb[20].mxu1 %v10454_v61 }
 0x47f   :  { %7708 = vmatpush1.bf16.msra.mxu0 %v9711_v44  ;;  %9104 = vmatpush3.bf16.msra.mxu1 %v9715_v52  ;;  %v9776_v44 = vld [vmem:[#allocation11 + $0x4e0] ss:$28 sps:$4 sm:$0xff]   ;;  %v9780_v52 = vld [vmem:[#allocation11 + $0x4b0] ss:$28 sps:$4 sm:$0xff]  }
 0x480   :  { %7885 = vmatprep.mubr.bf16.mxu1 %v10404_v38  ;;  %7709 = vmatprep.subr.bf16.mxu0 %v9718_v12  ;;  %v9734_v38 = vld [vmem:[#allocation11 + $0x2b8] ss:$28 sps:$4 sm:$0xff]  }
 0x481   :  { %9105 = vmatprep.subr.bf16.mxu1 %v9719_v19  ;;  %v9783_v12 = vld [vmem:[#allocation11 + $0x51c] ss:$28 sps:$4 sm:$0xff]   ;;  %v9784_v19 = vld [vmem:[#allocation11 + $0x6a8] ss:$28 sps:$4 sm:$0xff]  }
 0x483   :  { %7710 = vmatpush1.bf16.msra.mxu0 %v9716_v22  ;;  %9106 = vmatpush3.bf16.msra.mxu1 %v9720_v24  ;;  %v9781_v22 = vld [vmem:[#allocation11 + $0x518] ss:$28 sps:$4 sm:$0xff]   ;;  %v9785_v24 = vld [vmem:[#allocation11 + $0x4e8] ss:$28 sps:$4 sm:$0xff]  }
 0x484   :  { %7711 = vmatprep.subr.bf16.mxu0 %v9723_v45  ;;  %9107 = vmatprep.subr.bf16.mxu1 %v9724_v26  ;;  %v9788_v45 = vld [vmem:[#allocation11 + $0x554] ss:$28 sps:$4 sm:$0xff]   ;;  %v9789_v26 = vld [vmem:[#allocation11 + $0x6e0] ss:$28 sps:$4 sm:$0xff]  }
 0x487   :  { %7712 = vmatpush1.bf16.msra.mxu0 %v9721_v27  ;;  %9108 = vmatpush3.bf16.msra.mxu1 %v9725_v42  ;;  %v9786_v27 = vld [vmem:[#allocation11 + $0x550] ss:$28 sps:$4 sm:$0xff]   ;;  %v9790_v42 = vld [vmem:[#allocation11 + $0x520] ss:$28 sps:$4 sm:$0xff]  }
 0x488   :  { %7713 = vmatprep.subr.bf16.mxu0 %v9728_v30  ;;  %9109 = vmatprep.subr.bf16.mxu1 %v9729_v23  ;;  %v9793_v30 = vld [vmem:[#allocation11 + $0x58c] ss:$28 sps:$4 sm:$0xff]   ;;  %v9794_v23 = vld [vmem:[#allocation11 + $0x8d8] ss:$28 sps:$4 sm:$0xff]  }
 0x48b   :  { %7714 = vmatpush1.bf16.msra.mxu0 %v9726_v31  ;;  %9110 = vmatpush3.bf16.msra.mxu1 %v9730_v13  ;;  %v9791_v31 = vld [vmem:[#allocation11 + $0x588] ss:$28 sps:$4 sm:$0xff]   ;;  %v9795_v13 = vld [vmem:[#allocation11 + $0x718] ss:$28 sps:$4 sm:$0xff]  }
 0x48c   :  { %7715 = vmatprep.subr.bf16.mxu0 %v9733_v57  ;;  %9111 = vmatprep.subr.bf16.mxu1 %v9734_v38  ;;  %v9798_v57 = vld [vmem:[#allocation11 + $0x5c4] ss:$28 sps:$4 sm:$0xff]   ;;  %v9799_v38 = vld [vmem:[#allocation11 + $0x910] ss:$28 sps:$4 sm:$0xff]  }
 0x48f   :  { %7716 = vmatpush1.bf16.msra.mxu0 %v9731_v56  ;;  %9112 = vmatpush3.bf16.msra.mxu1 %v9735_v35  ;;  %v9796_v56 = vld [vmem:[#allocation11 + $0x5c0] ss:$28 sps:$4 sm:$0xff]   ;;  %v9800_v35 = vld [vmem:[#allocation11 + $0x750] ss:$28 sps:$4 sm:$0xff]  }
 0x490   :  { %7717 = vmatprep.subr.bf16.mxu0 %v9738_v37  ;;  %9113 = vmatprep.subr.bf16.mxu1 %v9739_v8  ;;  %v9803_v37 = vld [vmem:[#allocation11 + $0x5fc] ss:$28 sps:$4 sm:$0xff]   ;;  %v9804_v8 = vld [vmem:[#allocation11 + $0x948] ss:$28 sps:$4 sm:$0xff]  }
 0x493   :  { %7718 = vmatpush1.bf16.msra.mxu0 %v9736_v53  ;;  %9114 = vmatpush3.bf16.msra.mxu1 %v9740_v0  ;;  %v9801_v53 = vld [vmem:[#allocation11 + $0x5f8] ss:$28 sps:$4 sm:$0xff]   ;;  %v9805_v0 = vld [vmem:[#allocation11 + $0x788] ss:$28 sps:$4 sm:$0xff]  }
 0x494   :  { %7719 = vmatprep.subr.bf16.mxu0 %v9743_v58  ;;  %9115 = vmatprep.subr.bf16.mxu1 %v9744_v40  ;;  %v9808_v58 = vld [vmem:[#allocation11 + $0x634] ss:$28 sps:$4 sm:$0xff]   ;;  %v9809_v40 = vld [vmem:[#allocation11 + $0x980] ss:$28 sps:$4 sm:$0xff]  }
 0x497   :  { %7720 = vmatpush1.bf16.msra.mxu0 %v9741_v46  ;;  %9116 = vmatpush3.bf16.msra.mxu1 %v9745_v48  ;;  %v9806_v46 = vld [vmem:[#allocation11 + $0x630] ss:$28 sps:$4 sm:$0xff]   ;;  %v9810_v48 = vld [vmem:[#allocation11 + $0x7c0] ss:$28 sps:$4 sm:$0xff]  }
 0x498   :  { %7730 = vmatprep.subr.bf16.mxu0 %v9748_v49  ;;  %9117 = vmatprep.subr.bf16.mxu1 %v9749_v20  ;;  %v9813_v49 = vld [vmem:[#allocation11 + $0x66c] ss:$28 sps:$4 sm:$0xff]   ;;  %v9814_v20 = vld [vmem:[#allocation11 + $0x9b8] ss:$28 sps:$4 sm:$0xff]  }
 0x49a   :  { %7722 = vmatmul.mubr.bf16.vlgmr.msra.gmra.mrb[20].mxu0 %v10410_v34 }
 0x49b   :  { %7731 = vmatpush1.bf16.msra.mxu0 %v9746_v41  ;;  %7762 = vmatprep.mubr.bf16.mxu0 %v10419_v29  ;;  %v9811_v41 = vld [vmem:[#allocation11 + $0x668] ss:$28 sps:$4 sm:$0xff]  }
 0x49c   :  { %9118 = vmatpush3.bf16.msra.mxu1 %v9750_v33  ;;  %7732 = vmatprep.subr.bf16.mxu0 %v9753_v50  ;;  %v9815_v33 = vld [vmem:[#allocation11 + $0x7f8] ss:$28 sps:$4 sm:$0xff]   ;;  %v9818_v50 = vld [vmem:[#allocation11 + $0x6a4] ss:$28 sps:$4 sm:$0xff]  }
 0x49d   :  { %9125 = vmatprep.subr.bf16.mxu1 %v9754_v51  ;;  %v9819_v51 = vld [vmem:[#allocation11 + $0x9f0] ss:$28 sps:$4 sm:$0xff]  }
 0x49f   :  { %7733 = vmatpush1.bf16.msra.mxu0 %v9751_v54  ;;  %7886 = vmatmul.mubr.bf16.vlgmr.msra.gmra.mrb[24].mxu1 %v10410_v34  ;;  %v9770_v34 = vld [vmem:[#allocation11 + $0x440] ss:$28 sps:$4 sm:$0xff]  }
 0x4a0   :  { %9126 = vmatpush3.bf16.msra.mxu1 %v9755_v39  ;;  %7925 = vmatprep.mubr.bf16.mxu1 %v10419_v29  ;;  %v9774_v29 = vld [vmem:[#allocation11 + $0x638] ss:$28 sps:$4 sm:$0xff]   ;;  %v9816_v54 = vld [vmem:[#allocation11 + $0x6a0] ss:$28 sps:$4 sm:$0xff]   ;;  %v9820_v39 = vld [vmem:[#allocation11 + $0x830] ss:$28 sps:$4 sm:$0xff]  }
 0x4a1   :  { %7734 = vmatprep.subr.bf16.mxu0 %v9758_v55  ;;  %9127 = vmatprep.subr.bf16.mxu1 %v9759_v3  ;;  %v9823_v55 = vld [vmem:[#allocation11 + $0x6dc] ss:$28 sps:$4 sm:$0xff]   ;;  %v9824_v3 = vld [vmem:[#allocation11 + $0xa28] ss:$28 sps:$4 sm:$0xff]  }
 0x4a3   :  { %7735 = vmatpush1.bf16.msra.mxu0 %v9756_v59  ;;  %v9821_v59 = vld [vmem:[#allocation11 + $0x6d8] ss:$28 sps:$4 sm:$0xff]  }
 0x4a4   :  { %9128 = vmatpush3.bf16.msra.mxu1 %v9760_v60  ;;  %7736 = vmatprep.subr.bf16.mxu0 %v9763_v62  ;;  %v9825_v60 = vld [vmem:[#allocation11 + $0x868] ss:$28 sps:$4 sm:$0xff]   ;;  %v9828_v62 = vld [vmem:[#allocation11 + $0x714] ss:$28 sps:$4 sm:$0xff]  }
 0x4a5   :  { %9129 = vmatprep.subr.bf16.mxu1 %v9764_v63  ;;  %v9829_v63 = vld [vmem:[#allocation11 + $0xa60] ss:$28 sps:$4 sm:$0xff]  }
 0x4a7   :  { %7737 = vmatpush1.bf16.msra.mxu0 %v9761_v43  ;;  %v9826_v43 = vld [vmem:[#allocation11 + $0x710] ss:$28 sps:$4 sm:$0xff]  }
 0x4a8   :  { %9130 = vmatpush3.bf16.msra.mxu1 %v9765_v2  ;;  %7738 = vmatprep.subr.bf16.mxu0 %v9768_v1  ;;  %v9830_v2 = vld [vmem:[#allocation11 + $0x8a0] ss:$28 sps:$4 sm:$0xff]   ;;  %v9833_v1 = vld [vmem:[#allocation11 + $0x74c] ss:$28 sps:$4 sm:$0xff]  }
 0x4a9   :  { %9131 = vmatprep.subr.bf16.mxu1 %v9769_v14  ;;  %v9834_v14 = vld [vmem:[#allocation11 + $0xc58] ss:$28 sps:$4 sm:$0xff]  }
 0x4ab   :  { %7739 = vmatpush1.bf16.msra.mxu0 %v9766_v4  ;;  %v9831_v4 = vld [vmem:[#allocation11 + $0x748] ss:$28 sps:$4 sm:$0xff]  }
 0x4ac   :  { %9132 = vmatpush3.bf16.msra.mxu1 %v9770_v34  ;;  %7740 = vmatprep.subr.bf16.mxu0 %v9773_v5  ;;  %v9835_v34 = vld [vmem:[#allocation11 + $0xa98] ss:$28 sps:$4 sm:$0xff]   ;;  %v9838_v5 = vld [vmem:[#allocation11 + $0x784] ss:$28 sps:$4 sm:$0xff]  }
 0x4ad   :  { %9133 = vmatprep.subr.bf16.mxu1 %v9774_v29  ;;  %v9839_v29 = vld [vmem:[#allocation11 + $0xc90] ss:$28 sps:$4 sm:$0xff]  }
 0x4af   :  { %7741 = vmatpush1.bf16.msra.mxu0 %v9771_v6  ;;  %v9836_v6 = vld [vmem:[#allocation11 + $0x780] ss:$28 sps:$4 sm:$0xff]  }
 0x4b0   :  { %9134 = vmatpush3.bf16.msra.mxu1 %v9775_v7  ;;  %7742 = vmatprep.subr.bf16.mxu0 %v9778_v9  ;;  %v9840_v7 = vld [vmem:[#allocation11 + $0xad0] ss:$28 sps:$4 sm:$0xff]   ;;  %v9843_v9 = vld [vmem:[#allocation11 + $0x7bc] ss:$28 sps:$4 sm:$0xff]  }
 0x4b1   :  { %9135 = vmatprep.subr.bf16.mxu1 %v9779_v11  ;;  %v9845_v11 = vld [vmem:[#allocation11 + $0xb08] ss:$28 sps:$4 sm:$0xff]  }
 0x4b3   :  { %7743 = vmatpush1.bf16.msra.mxu0 %v9776_v44  ;;  %v9848_v44 = vld [vmem:[#allocation11 + $0x7f4] ss:$28 sps:$4 sm:$0xff]  }
 0x4b4   :  { %9136 = vmatpush3.bf16.msra.mxu1 %v9780_v52  ;;  %7744 = vmatprep.subr.bf16.mxu0 %v9783_v12  ;;  %v9849_v52 = vld [vmem:[#allocation11 + $0xd00] ss:$28 sps:$4 sm:$0xff]   ;;  %v9846_v12 = vld [vmem:[#allocation11 + $0x7f0] ss:$28 sps:$4 sm:$0xff]  }
 0x4b5   :  { %9137 = vmatprep.subr.bf16.mxu1 %v9784_v19  ;;  %v9850_v19 = vld [vmem:[#allocation11 + $0xb40] ss:$28 sps:$4 sm:$0xff]  }
 0x4b7   :  { %7745 = vmatpush1.bf16.msra.mxu0 %v9781_v22  ;;  %v9853_v22 = vld [vmem:[#allocation11 + $0x82c] ss:$28 sps:$4 sm:$0xff]  }
 0x4b8   :  { %9138 = vmatpush3.bf16.msra.mxu1 %v9785_v24  ;;  %7746 = vmatprep.subr.bf16.mxu0 %v9788_v45  ;;  %v9854_v24 = vld [vmem:[#allocation11 + $0xd38] ss:$28 sps:$4 sm:$0xff]   ;;  %v9851_v45 = vld [vmem:[#allocation11 + $0x828] ss:$28 sps:$4 sm:$0xff]  }
 0x4b9   :  { %9139 = vmatprep.subr.bf16.mxu1 %v9789_v26  ;;  %v9855_v26 = vld [vmem:[#allocation11 + $0xb78] ss:$28 sps:$4 sm:$0xff]  }
 0x4bb   :  { %7747 = vmatpush1.bf16.msra.mxu0 %v9786_v27  ;;  %v9858_v27 = vld [vmem:[#allocation11 + $0x864] ss:$28 sps:$4 sm:$0xff]  }
 0x4bc   :  { %9140 = vmatpush3.bf16.msra.mxu1 %v9790_v42  ;;  %7748 = vmatprep.subr.bf16.mxu0 %v9793_v30  ;;  %v9859_v42 = vld [vmem:[#allocation11 + $0xd70] ss:$28 sps:$4 sm:$0xff]   ;;  %v9856_v30 = vld [vmem:[#allocation11 + $0x860] ss:$28 sps:$4 sm:$0xff]  }
 0x4bd   :  { %9147 = vmatprep.subr.bf16.mxu1 %v9794_v23  ;;  %v9860_v23 = vld [vmem:[#allocation11 + $0xbb0] ss:$28 sps:$4 sm:$0xff]  }
 0x4bf   :  { %7749 = vmatpush1.bf16.msra.mxu0 %v9791_v31  ;;  %7926 = vmatmul.mubr.bf16.vlgmr.msra.gmra.mrb[28].mxu1 %v10425_v10  ;;  %v9863_v31 = vld [vmem:[#allocation11 + $0x89c] ss:$28 sps:$4 sm:$0xff]  }
 0x4c0   :  { %9148 = vmatpush3.bf16.msra.mxu1 %v9795_v13  ;;  %7965 = vmatprep.mubr.bf16.mxu1 %v10438_v21  ;;  %v9864_v13 = vld [vmem:[#allocation11 + $0xda8] ss:$28 sps:$4 sm:$0xff]  }
 0x4c1   :  { %7750 = vmatprep.subr.bf16.mxu0 %v9798_v57  ;;  %9149 = vmatprep.subr.bf16.mxu1 %v9799_v38  ;;  %v9861_v57 = vld [vmem:[#allocation11 + $0x898] ss:$28 sps:$4 sm:$0xff]   ;;  %v9865_v38 = vld [vmem:[#allocation11 + $0xbe8] ss:$28 sps:$4 sm:$0xff]  }
 0x4c3   :  { %7751 = vmatpush1.bf16.msra.mxu0 %v9796_v56  ;;  %v9868_v56 = vld [vmem:[#allocation11 + $0x8d4] ss:$28 sps:$4 sm:$0xff]  }
 0x4c4   :  { %9150 = vmatpush3.bf16.msra.mxu1 %v9800_v35  ;;  %7752 = vmatprep.subr.bf16.mxu0 %v9803_v37  ;;  %v9869_v35 = vld [vmem:[#allocation11 + $0xde0] ss:$28 sps:$4 sm:$0xff]   ;;  %v9866_v37 = vld [vmem:[#allocation11 + $0x8d0] ss:$28 sps:$4 sm:$0xff]  }
 0x4c5   :  { %9151 = vmatprep.subr.bf16.mxu1 %v9804_v8  ;;  %v9870_v8 = vld [vmem:[#allocation11 + $0xc20] ss:$28 sps:$4 sm:$0xff]  }
 0x4c7   :  { %7753 = vmatpush1.bf16.msra.mxu0 %v9801_v53  ;;  %v9873_v53 = vld [vmem:[#allocation11 + $0x90c] ss:$28 sps:$4 sm:$0xff]  }
 0x4c8   :  { %9152 = vmatpush3.bf16.msra.mxu1 %v9805_v0  ;;  %7754 = vmatprep.subr.bf16.mxu0 %v9808_v58  ;;  %v9871_v0 = vld [vmem:[#allocation11 + $0x908] ss:$28 sps:$4 sm:$0xff]  }
 0x4c9   :  { %9153 = vmatprep.subr.bf16.mxu1 %v9809_v40  ;;  %v9876_v58 = vld [vmem:[#allocation11 + $0x944] ss:$28 sps:$4 sm:$0xff]  }
 0x4ca   :  { %v9874_v40 = vld [vmem:[#allocation11 + $0x940] ss:$28 sps:$4 sm:$0xff]  }
 0x4cb   :  { %7755 = vmatpush1.bf16.msra.mxu0 %v9806_v46  ;;  %v9879_v46 = vld [vmem:[#allocation11 + $0x97c] ss:$28 sps:$4 sm:$0xff]  }
 0x4cc   :  { %9154 = vmatpush3.bf16.msra.mxu1 %v9810_v48  ;;  %7756 = vmatprep.subr.bf16.mxu0 %v9813_v49  ;;  %v9877_v48 = vld [vmem:[#allocation11 + $0x978] ss:$28 sps:$4 sm:$0xff]  }
 0x4cd   :  { %9155 = vmatprep.subr.bf16.mxu1 %v9814_v20  ;;  %v9882_v49 = vld [vmem:[#allocation11 + $0x9b4] ss:$28 sps:$4 sm:$0xff]  }
 0x4ce   :  { %v9880_v20 = vld [vmem:[#allocation11 + $0x9b0] ss:$28 sps:$4 sm:$0xff]  }
 0x4cf   :  { %7757 = vmatpush1.bf16.msra.mxu0 %v9811_v41  ;;  %v9885_v41 = vld [vmem:[#allocation11 + $0x9ec] ss:$28 sps:$4 sm:$0xff]  }
 0x4d0   :  { %9156 = vmatpush3.bf16.msra.mxu1 %v9815_v33  ;;  %7758 = vmatprep.subr.bf16.mxu0 %v9818_v50  ;;  %v9883_v33 = vld [vmem:[#allocation11 + $0x9e8] ss:$28 sps:$4 sm:$0xff]  }
 0x4d1   :  { %9157 = vmatprep.subr.bf16.mxu1 %v9819_v51  ;;  %v9888_v50 = vld [vmem:[#allocation11 + $0xa24] ss:$28 sps:$4 sm:$0xff]  }
 0x4d2   :  { %v9886_v51 = vld [vmem:[#allocation11 + $0xa20] ss:$28 sps:$4 sm:$0xff]  }
 0x4d3   :  { %7759 = vmatpush1.bf16.msra.mxu0 %v9816_v54  ;;  %v9891_v54 = vld [vmem:[#allocation11 + $0xa5c] ss:$28 sps:$4 sm:$0xff]  }
 0x4d4   :  { %9158 = vmatpush3.bf16.msra.mxu1 %v9820_v39  ;;  %7760 = vmatprep.subr.bf16.mxu0 %v9823_v55  ;;  %v9889_v39 = vld [vmem:[#allocation11 + $0xa58] ss:$28 sps:$4 sm:$0xff]  }
 0x4d5   :  { %9159 = vmatprep.subr.bf16.mxu1 %v9824_v3  ;;  %v9894_v55 = vld [vmem:[#allocation11 + $0xa94] ss:$28 sps:$4 sm:$0xff]  }
 0x4d6   :  { %v9892_v3 = vld [vmem:[#allocation11 + $0xa90] ss:$28 sps:$4 sm:$0xff]  }
 0x4d7   :  { %7761 = vmatpush1.bf16.msra.mxu0 %v9821_v59  ;;  %v9897_v59 = vld [vmem:[#allocation11 + $0xacc] ss:$28 sps:$4 sm:$0xff]  }
 0x4d8   :  { %9160 = vmatpush3.bf16.msra.mxu1 %v9825_v60  ;;  %7771 = vmatprep.subr.bf16.mxu0 %v9828_v62  ;;  %v9895_v60 = vld [vmem:[#allocation11 + $0xac8] ss:$28 sps:$4 sm:$0xff]  }
 0x4d9   :  { %9161 = vmatprep.subr.bf16.mxu1 %v9829_v63  ;;  %v9900_v62 = vld [vmem:[#allocation11 + $0xb04] ss:$28 sps:$4 sm:$0xff]  }
 0x4da   :  { %7763 = vmatmul.mubr.bf16.vlgmr.msra.gmra.mrb[20].mxu0 %v10425_v10  ;;  %v9844_v10 = vld [vmem:[#allocation11 + $0xcc8] ss:$28 sps:$4 sm:$0xff]   ;;  %v9898_v63 = vld [vmem:[#allocation11 + $0xb00] ss:$28 sps:$4 sm:$0xff]  }
 0x4db   :  { %7772 = vmatpush1.bf16.msra.mxu0 %v9826_v43  ;;  %7803 = vmatprep.mubr.bf16.mxu0 %v10438_v21  ;;  %v9841_v21 = vld [vmem:[#allocation11 + $0x7b8] ss:$28 sps:$4 sm:$0xff]  }
 0x4dc   :  { %9162 = vmatpush3.bf16.msra.mxu1 %v9830_v2  ;;  %7773 = vmatprep.subr.bf16.mxu0 %v9833_v1  ;;  %v9903_v43 = vld [vmem:[#allocation11 + $0xb3c] ss:$28 sps:$4 sm:$0xff]   ;;  %v9906_v1 = vld [vmem:[#allocation11 + $0xb74] ss:$28 sps:$4 sm:$0xff]  }
 0x4dd   :  { %9169 = vmatprep.subr.bf16.mxu1 %v9834_v14  ;;  %v9901_v2 = vld [vmem:[#allocation11 + $0xb38] ss:$28 sps:$4 sm:$0xff]   ;;  %v9904_v14 = vld [vmem:[#allocation11 + $0xb70] ss:$28 sps:$4 sm:$0xff]  }
 0x4df   :  { %7774 = vmatpush1.bf16.msra.mxu0 %v9831_v4  ;;  %7966 = vmatmul.mubr.bf16.vlgmr.msra.gmra.mrb[32].mxu1 %v10440_v25  ;;  %v10475_v4 = vld [vmem:[#allocation13] sm:$0xff] }
 0x4e0   :  { %9170 = vmatpush3.bf16.msra.mxu1 %v9835_v34  ;;  %8005 = vmatprep.mubr.bf16.mxu1 %v10452_v32  ;;  %v9907_v34 = vld [vmem:[#allocation11 + $0xba8] ss:$28 sps:$4 sm:$0xff]  }
 0x4e1   :  { %7775 = vmatprep.subr.bf16.mxu0 %v9838_v5  ;;  %9171 = vmatprep.subr.bf16.mxu1 %v9839_v29  ;;  %v5029_v5 = vrot.slane %v10475_v4, %v10303_v17  ;;  %v9912_v29 = vld [vmem:[#allocation11 + $0xbe4] ss:$28 sps:$4 sm:$0xff]   ;;  %v9916_v17 = vld [vmem:[#allocation11 + $0xc50] ss:$28 sps:$4 sm:$0xff]  }
 0x4e3   :  { %7776 = vmatpush1.bf16.msra.mxu0 %v9836_v6 }
 0x4e4   :  { %9172 = vmatpush3.bf16.msra.mxu1 %v9840_v7  ;;  %7777 = vmatprep.subr.bf16.mxu0 %v9843_v9 }
 0x4e5   :  { %9173 = vmatprep.subr.bf16.mxu1 %v9844_v10 }
 0x4e7   :  { %7778 = vmatpush1.bf16.msra.mxu0 %v9841_v21 }
 0x4e8   :  { %9174 = vmatpush3.bf16.msra.mxu1 %v9845_v11  ;;  %7779 = vmatprep.subr.bf16.mxu0 %v9848_v44  ;;  %v9910_v11 = vld [vmem:[#allocation11 + $0xbe0] ss:$28 sps:$4 sm:$0xff]  }
 0x4e9   :  { %9175 = vmatprep.subr.bf16.mxu1 %v9849_v52  ;;  %v9915_v52 = vld [vmem:[#allocation11 + $0xc1c] ss:$28 sps:$4 sm:$0xff]  }
 0x4eb   :  { %7780 = vmatpush1.bf16.msra.mxu0 %v9846_v12  ;;  %v9918_v12 = vld [vmem:[#allocation11 + $0xc54] ss:$28 sps:$4 sm:$0xff]  }
 0x4ec   :  { %9176 = vmatpush3.bf16.msra.mxu1 %v9850_v19  ;;  %7781 = vmatprep.subr.bf16.mxu0 %v9853_v22  ;;  %v9921_v19 = vld [vmem:[#allocation11 + $0xc8c] ss:$28 sps:$4 sm:$0xff]  }
 0x4ed   :  { %9177 = vmatprep.subr.bf16.mxu1 %v9854_v24 }
 0x4ef   :  { %7782 = vmatpush1.bf16.msra.mxu0 %v9851_v45  ;;  %v9919_v45 = vld [vmem:[#allocation11 + $0xc88] ss:$28 sps:$4 sm:$0xff]  }
 0x4f0   :  { %9178 = vmatpush3.bf16.msra.mxu1 %v9855_v26  ;;  %7783 = vmatprep.subr.bf16.mxu0 %v9858_v27  ;;  %v9924_v26 = vld [vmem:[#allocation11 + $0xcc4] ss:$28 sps:$4 sm:$0xff]  }
 0x4f1   :  { %9179 = vmatprep.subr.bf16.mxu1 %v9859_v42  ;;  %v9922_v42 = vld [vmem:[#allocation11 + $0xcc0] ss:$28 sps:$4 sm:$0xff]  }
 0x4f3   :  { %7784 = vmatpush1.bf16.msra.mxu0 %v9856_v30  ;;  %v9927_v30 = vld [vmem:[#allocation11 + $0xcfc] ss:$28 sps:$4 sm:$0xff]  }
 0x4f4   :  { %9180 = vmatpush3.bf16.msra.mxu1 %v9860_v23  ;;  %7785 = vmatprep.subr.bf16.mxu0 %v9863_v31  ;;  %v9925_v23 = vld [vmem:[#allocation11 + $0xcf8] ss:$28 sps:$4 sm:$0xff]  }
 0x4f5   :  { %9181 = vmatprep.subr.bf16.mxu1 %v9864_v13  ;;  %v9930_v31 = vld [vmem:[#allocation11 + $0xd34] ss:$28 sps:$4 sm:$0xff]  }
 0x4f6   :  { %v9928_v13 = vld [vmem:[#allocation11 + $0xd30] ss:$28 sps:$4 sm:$0xff]  }
 0x4f7   :  { %7786 = vmatpush1.bf16.msra.mxu0 %v9861_v57  ;;  %v9933_v57 = vld [vmem:[#allocation11 + $0xd6c] ss:$28 sps:$4 sm:$0xff]  }
 0x4f8   :  { %9182 = vmatpush3.bf16.msra.mxu1 %v9865_v38  ;;  %7787 = vmatprep.subr.bf16.mxu0 %v9868_v56  ;;  %v9931_v38 = vld [vmem:[#allocation11 + $0xd68] ss:$28 sps:$4 sm:$0xff]  }
 0x4f9   :  { %9183 = vmatprep.subr.bf16.mxu1 %v9869_v35  ;;  %v9936_v56 = vld [vmem:[#allocation11 + $0xda4] ss:$28 sps:$4 sm:$0xff]   ;;  %v5033_v35 = vrot.slane %v10475_v4, %v10300_v16 }
 0x4fb   :  { %7788 = vmatpush1.bf16.msra.mxu0 %v9866_v37  ;;  %v9934_v37 = vld [vmem:[#allocation11 + $0xda0] ss:$28 sps:$4 sm:$0xff]  }
 0x4fc   :  { %9184 = vmatpush3.bf16.msra.mxu1 %v9870_v8  ;;  %7789 = vmatprep.subr.bf16.mxu0 %v9873_v53  ;;  %v5037_v8 = vrot.slane %v10475_v4, %v10306_v18  ;;  %v9939_v53 = vld [vmem:[#allocation11 + $0xddc] ss:$28 sps:$4 sm:$0xff]  }
 0x4ff   :  { %7790 = vmatpush1.bf16.msra.mxu0 %v9871_v0  ;;  %8006 = vmatmul.mubr.bf16.vlgmr.msra.gmra.mrb[36].mxu1 %v10454_v61 }
 0x500   :  { %7791 = vmatprep.subr.bf16.mxu0 %v9876_v58 }
 0x503   :  { %7792 = vmatpush1.bf16.msra.mxu0 %v9874_v40 }
 0x504   :  { %7793 = vmatprep.subr.bf16.mxu0 %v9879_v46 }
 0x507   :  { %7794 = vmatpush1.bf16.msra.mxu0 %v9877_v48 }
 0x508   :  { %7795 = vmatprep.subr.bf16.mxu0 %v9882_v49  ;;  %v9937_v49 = vld [vmem:[#allocation11 + $0xdd8] ss:$28 sps:$4 sm:$0xff]  }
 0x50b   :  { %7796 = vmatpush1.bf16.msra.mxu0 %v9880_v20 }
 0x50c   :  { %7797 = vmatprep.subr.bf16.mxu0 %v9885_v41 }
 0x50f   :  { %7798 = vmatpush1.bf16.msra.mxu0 %v9883_v33 }
 0x510   :  { %7799 = vmatprep.subr.bf16.mxu0 %v9888_v50 }
 0x513   :  { %7800 = vmatpush1.bf16.msra.mxu0 %v9886_v51 }
 0x514   :  { %7801 = vmatprep.subr.bf16.mxu0 %v9891_v54 }
 0x517   :  { %7802 = vmatpush1.bf16.msra.mxu0 %v9889_v39 }
 0x518   :  { %7812 = vmatprep.subr.bf16.mxu0 %v9894_v55  ;;  %v5049_v55 = vrot.slane %v10475_v4, %v10363_v36 }
 0x51a   :  { %7804 = vmatmul.mubr.bf16.vlgmr.msra.gmra.mrb[20].mxu0 %v10440_v25  ;;  %v9909_v25 = vld [vmem:[#allocation11 + $0xbac] ss:$28 sps:$4 sm:$0xff]  }
 0x51b   :  { %7813 = vmatpush1.bf16.msra.mxu0 %v9892_v3  ;;  %7844 = vmatprep.mubr.bf16.mxu0 %v10452_v32  ;;  %v5025_v32 = vrot.slane %v10475_v4, %v10297_v15  ;;  %v9913_v15 = vld [vmem:[#allocation11 + $0xc18] ss:$28 sps:$4 sm:$0xff]  }
 0x51c   :  { %7814 = vmatprep.subr.bf16.mxu0 %v9897_v59 }
 0x51f   :  { %7815 = vmatpush1.bf16.msra.mxu0 %v9895_v60 }
 0x520   :  { %7816 = vmatprep.subr.bf16.mxu0 %v9900_v62 }
 0x523   :  { %7817 = vmatpush1.bf16.msra.mxu0 %v9898_v63 }
 0x524   :  { %7818 = vmatprep.subr.bf16.mxu0 %v9903_v43 }
 0x527   :  { %7819 = vmatpush1.bf16.msra.mxu0 %v9901_v2 }
 0x528   :  { %7820 = vmatprep.subr.bf16.mxu0 %v9906_v1 }
 0x52b   :  { %7821 = vmatpush1.bf16.msra.mxu0 %v9904_v14 }
 0x52c   :  { %7822 = vmatprep.subr.bf16.mxu0 %v9909_v25 }
 0x52d   :  { %v7518_v6 = vpop.f32.mrb[16].mxu0 }
 0x52e   :  { %v9201_v7 = vadd.f32 %v7518_v6, %v5025_v32  ;;  %v7520_v9 = vpop.f32.mrb[17].mxu0 }
 0x52f   :  { %v9202_v10 = vadd.f32 %v7520_v9, %v5029_v5  ;;  %7823 = vmatpush1.bf16.msra.mxu0 %v9907_v34  ;;  %v7522_v21 = vpop.f32.mrb[18].mxu0 }
 0x530   :  { %9940 = vtanh.f32 %v9201_v7  ;;  %v7523_v44 = vpop.f32.mrb[19].mxu0  ;;  %7824 = vmatprep.subr.bf16.mxu0 %v9912_v29 }
 0x531   :  { %9942 = vtanh.f32 %v9202_v10  ;;  %v5045_v44 = vrot.slane %v10475_v4, %v10330_v28 }
 0x533   :  { %7825 = vmatpush1.bf16.msra.mxu0 %v9910_v11  ;;  %v5041_v11 = vrot.slane %v10475_v4, %v10344_v47 }
 0x534   :  { %7826 = vmatprep.subr.bf16.mxu0 %v9915_v52 }
 0x537   :  { %7827 = vmatpush1.bf16.msra.mxu0 %v9913_v15 }
 0x538   :  { %7828 = vmatprep.subr.bf16.mxu0 %v9918_v12 }
 0x53a   :  { %v9941_v22 = vpop.eup %9940 }
 0x53b   :  { %v9943_v24 = vpop.eup %9942  ;;  %7829 = vmatpush1.bf16.msra.mxu0 %v9916_v17 }
 0x53c   :  { %7830 = vmatprep.subr.bf16.mxu0 %v9921_v19  ;;  %v9099_v27 = vpack.c.bf16 %v9943_v24, %v9941_v22 }
 0x53e   :  { %8049 = vst [vmem:[#allocation14] sm:$0xff] %v9099_v27 }
 0x53f   :  { %7831 = vmatpush1.bf16.msra.mxu0 %v9919_v45 }
 0x540   :  { %7832 = vmatprep.subr.bf16.mxu0 %v9924_v26 }
 0x543   :  { %7833 = vmatpush1.bf16.msra.mxu0 %v9922_v42 }
 0x544   :  { %7834 = vmatprep.subr.bf16.mxu0 %v9927_v30 }
 0x547   :  { %7835 = vmatpush1.bf16.msra.mxu0 %v9925_v23 }
 0x548   :  { %7836 = vmatprep.subr.bf16.mxu0 %v9930_v31 }
 0x54b   :  { %7837 = vmatpush1.bf16.msra.mxu0 %v9928_v13 }
 0x54c   :  { %7838 = vmatprep.subr.bf16.mxu0 %v9933_v57 }
 0x54f   :  { %7839 = vmatpush1.bf16.msra.mxu0 %v9931_v38 }
 0x550   :  { %7840 = vmatprep.subr.bf16.mxu0 %v9936_v56 }
 0x551   :  { %v7682_v0 = vpop.f32.mrb[20].mxu1 }
 0x552   :  { %v9203_v58 = vadd.f32 %v7682_v0, %v5033_v35  ;;  %v7684_v40 = vpop.f32.mrb[21].mxu1 }
 0x553   :  { %v9204_v46 = vadd.f32 %v7684_v40, %v5037_v8  ;;  %7841 = vmatpush1.bf16.msra.mxu0 %v9934_v37  ;;  %v7686_v48 = vpop.f32.mrb[22].mxu1 }
 0x554   :  { %9944 = vtanh.f32 %v9203_v58  ;;  %v7687_v20 = vpop.f32.mrb[23].mxu1  ;;  %7842 = vmatprep.subr.bf16.mxu0 %v9939_v53 }
 0x555   :  { %9946 = vtanh.f32 %v9204_v46 }
 0x557   :  { %7843 = vmatpush1.bf16.msra.mxu0 %v9937_v49 }
 0x55a   :  { %7845 = vmatmul.mubr.bf16.vlgmr.msra.gmra.mrb[20].mxu0 %v10454_v61 }
 0x55e   :  { %v9945_v16 = vpop.eup %9944 }
 0x55f   :  { %v9947_v41 = vpop.eup %9946 }
 0x560   :  { %v9100_v33 = vpack.c.bf16 %v9947_v41, %v9945_v16 }
 0x562   :  { %8050 = vst [vmem:[#allocation14 + $0x8] sm:$0xff] %v9100_v33 }
 0x572   :  { %v9119_v18 = vpop.f32.mrb[24].mxu1 }
 0x573   :  { %v9120_v50 = vpop.f32.mrb[25].mxu1 }
 0x574   :  { %v9121_v51 = vadd.f32 %v9120_v50, %v9119_v18  ;;  %v9122_v54 = vpop.f32.mrb[26].mxu1 }
 0x575   :  { %v9123_v39 = vpop.f32.mrb[27].mxu1 }
 0x576   :  { %v7888_v60 = vadd.f32 %v9121_v51, %v5049_v55 }
 0x592   :  { %v9141_v3 = vpop.f32.mrb[28].mxu1 }
 0x593   :  { %v9142_v59 = vpop.f32.mrb[29].mxu1 }
 0x594   :  { %v9143_v62 = vadd.f32 %v9142_v59, %v9141_v3  ;;  %v9144_v63 = vpop.f32.mrb[30].mxu1 }
 0x595   :  { %v9145_v43 = vpop.f32.mrb[31].mxu1 }
 0x596   :  { %v7928_v2 = vadd.f32 %v9143_v62, %v7888_v60 }
 0x5b2   :  { %v9163_v61 = vpop.f32.mrb[32].mxu1 }
 0x5b3   :  { %v9164_v1 = vpop.f32.mrb[33].mxu1 }
 0x5b4   :  { %v9165_v14 = vadd.f32 %v9164_v1, %v9163_v61  ;;  %v9166_v25 = vpop.f32.mrb[34].mxu1 }
 0x5b5   :  { %v9167_v32 = vpop.f32.mrb[35].mxu1 }
 0x5b6   :  { %v7968_v34 = vadd.f32 %v9165_v14, %v7928_v2 }
 0x5d2   :  { %v9185_v5 = vpop.f32.mrb[36].mxu1 }
 0x5d3   :  { %v9186_v29 = vpop.f32.mrb[37].mxu1 }
 0x5d4   :  { %v9187_v6 = vadd.f32 %v9186_v29, %v9185_v5  ;;  %v9188_v7 = vpop.f32.mrb[38].mxu1 }
 0x5d5   :  { %v9189_v9 = vpop.f32.mrb[39].mxu1 }
 0x5d6   :  { %v8008_v10 = vadd.f32 %v9187_v6, %v7968_v34 }
 0x5d8   :  { %9948 = vtanh.f32 %v8008_v10 }
 0x5e2   :  { %v9949_v36 = vpop.eup %9948 }
 0x5e3   :  { %v9102_v21 = vpack.c.bf16 %v9949_v36, %v9949_v36 }
 0x5e5   :  { %8052 = vst [vmem:[#allocation14 + $0x18] sm:$0xf] %v9102_v21 }
 0x62d   :  { %v7846_v52 = vpop.f32.mrb[20].mxu0 }
 0x62e   :  { %v9205_v15 = vadd.f32 %v7846_v52, %v5041_v11  ;;  %v7848_v12 = vpop.f32.mrb[21].mxu0 }
 0x62f   :  { %v9206_v17 = vadd.f32 %v7848_v12, %v5045_v44  ;;  %v7850_v19 = vpop.f32.mrb[22].mxu0 }
 0x630   :  { %9950 = vtanh.f32 %v9205_v15  ;;  %v7851_v22 = vpop.f32.mrb[23].mxu0 }
 0x631   :  { %9952 = vtanh.f32 %v9206_v17 }
 0x63a   :  { %v9951_v24 = vpop.eup %9950 }
 0x63b   :  { %v9953_v45 = vpop.eup %9952 }
 0x63c   :  { %v9101_v26 = vpack.c.bf16 %v9953_v45, %v9951_v24 }
 0x63e   :  { %8051 = vst [vmem:[#allocation14 + $0x10] sm:$0xff] %v9101_v26 }
 0x63f   :  { %10120 = shalt.err (!%p10117_p4)
}
 0x640   :  { %s10121_s11 = scalar_lea.hbm %s10511_s7, 448 }
 0x641   :  { %p10122_p5 = scmp.ne.s32.totalorder %s10511_s7, %s10121_s11  ;;  %p10125_p6 = scmp.lt.u32.totalorder %s10121_s11, %s10511_s7 }
 0x643   :  { %p10127_p7 = pnand %p10125_p6, %p10122_p5 }
 0x645   :  { %10130 = shalt.err (!%p10127_p7)
}
 0x646   :  { %8062 = dma.vmem_to_hbm [thread:$0]  %s8060_s13, 448, %s10511_s7, [#allocation4]  }
 0x647   :  { %10139 = dma.done.wait [#allocation4], 448  }
 0x648   :  { %10140 = vsyncadd [#allocation4], 4294966848 }
 0x649   :  { %8066 = vsyncpa [#allocation3], 1 }
 0x64a   :  { %8067 = vsyncpa [#allocation6], 1 }
 0x64b   :  { %8068 = vsyncpa [#allocation9], 1 }
 0x64c   :  { %8069 = vsyncpa [#allocation12], 1 }
 0x64d   :  { %8070 = vsyncpa [#allocation4], 1 }

</bundles_post_ra>
